<compile_context>
chip_gen: v5e
topology: v5e:2x2
jax: 0.10.0
libtpu: 0.0.40
codegen_flags: <defaults>
</compile_context>

<pallas_src>
import functools

import numpy as np
import jax
import jax.numpy as jnp
from jax.experimental import pallas as pl
from jax.experimental.pallas import tpu as pltpu


# ----------------------------- static helpers ------------------------------

def _row_block(h_out, w_out, target=512):
    """Smallest divisor R of h_out with R*w_out >= target (else whole image):
    keeps matmul M reasonably large while giving big layers several grid
    steps per image (pipelining / megacore balance)."""
    for r in range(1, h_out + 1):
        if h_out % r == 0 and r * w_out >= target:
            return r
    return h_out


def _vmem_limit(estimate_bytes):
    return int(min(max(2 * estimate_bytes, 16 * 2**20), 40 * 2**20))


# ------------------------------ Pallas kernels ------------------------------

def _conv_kernel(*refs, taps, r_block, w_out, c_in, c_out, kh, relu,
                 in_affine, with_stats):
    """Fused VALID conv: [input affine] -> per-tap bf16 matmuls (accumulated
    in f32, initialised from the first dot) -> bias [-> ReLU]
    [-> per-channel sum / sum-of-squares statistics].
    One (image, row-block) per grid step; x_ref holds the full image,
    y_ref the output row-block."""
    if in_affine:
        x_ref, w_ref, b_ref, s_ref, t_ref = refs[:5]
        rest = refs[5:]
    else:
        x_ref, w_ref, b_ref = refs[:3]
        rest = refs[3:]
    y_ref, rest = rest[0], rest[1:]
    stats_ref = None
    if with_stats:
        stats_ref, rest = rest[0], rest[1:]
    xa_ref = rest[0] if in_affine else None

    r0 = pl.program_id(1) * r_block
    rows = r_block + kh - 1
    m = r_block * w_out

    if in_affine:
        # Apply the previous layer's BatchNorm (scale, shift) once to the rows
        # needed by this block, then slice all taps from the VMEM scratch.
        s = s_ref[...].astype(jnp.float32)                    # (1, c_in)
        t = t_ref[...].astype(jnp.float32)
        raw = x_ref[0, pl.ds(r0, rows), :, :].astype(jnp.float32)
        xa_ref[...] = (raw * s + t).astype(xa_ref.dtype)

        def tap(a, b):
            return xa_ref[pl.ds(a, r_block), pl.ds(b, w_out), :]
    else:
        def tap(a, b):
            return x_ref[0, pl.ds(r0 + a, r_block), pl.ds(b, w_out), :]

    acc = None
    for ti, (a, b) in enumerate(taps):                        # static unroll
        lhs = tap(a, b).reshape(m, c_in)
        part = jnp.dot(lhs, w_ref[ti], preferred_element_type=jnp.float32)
        acc = part if acc is None else acc + part

    y = acc + b_ref[...]
    if relu:
        y = jnp.maximum(y, 0.0)
    if with_stats:
        stats_ref[0, 0, 0, :] = jnp.sum(y, axis=0)
        stats_ref[0, 0, 1, :] = jnp.sum(y * y, axis=0)
    y_ref[0, :, :, :] = y.reshape(r_block, w_out, c_out).astype(y_ref.dtype)


def _affine_pool_kernel(x_ref, s_ref, t_ref, o_ref):
    """BatchNorm affine + 2x2/stride-2 max-pool.  No strided ref slices:
    load the block once, pair-reduce over H (leading dim split) then W."""
    h, w, c = x_ref.shape[1], x_ref.shape[2], x_ref.shape[3]
    ho, wo = h // 2, w // 2
    s = s_ref[...].astype(jnp.float32)                        # (1, C)
    t = t_ref[...].astype(jnp.float32)
    x = x_ref[0, :, :, :].astype(jnp.float32) * s + t         # (h, w, C)
    x = jnp.max(x.reshape(ho, 2, w, c), axis=1)               # H-pair max
    x = jnp.max(x.reshape(ho, wo, 2, c), axis=2)              # W-pair max
    o_ref[0, :, :, :] = x.astype(o_ref.dtype)


# ------------------------------ Pallas wrappers -----------------------------

def conv2d_pallas(x, wp, *, kh, kw, relu, in_affine=None, with_stats=True):
    """x: (N,H,W,C) bf16.  wp: {"w": (kh*kw, Cin, Cout) bf16 per-tap weights,
    "b": (1, Cout) f32}.  Returns (y bf16, stats (N,RB,2,Cout) f32 or None)."""
    w, b = wp["w"], wp["b"]
    n_taps, c_in, c_out = w.shape
    assert n_taps == kh * kw
    taps = tuple((a, b2) for a in range(kh) for b2 in range(kw))

    n, h_in, w_in, c_x = x.shape
    if c_x < c_in:                                            # first layer 3 -> 8
        x = jnp.pad(x, ((0, 0), (0, 0), (0, 0), (0, c_in - c_x)))
    h_out, w_out = h_in - kh + 1, w_in - kw + 1
    r_block = _row_block(h_out, w_out)
    rb = h_out // r_block
    rows = r_block + kh - 1
    m = r_block * w_out

    in_specs = [
        pl.BlockSpec((1, h_in, w_in, c_in), lambda i, j: (i, 0, 0, 0)),
        pl.BlockSpec((n_taps, c_in, c_out), lambda i, j: (0, 0, 0)),
        pl.BlockSpec((1, c_out), lambda i, j: (0, 0)),
    ]
    inputs = [x, w, b]
    if in_affine is not None:
        s, t = in_affine
        if s.shape[0] < c_in:
            s = jnp.pad(s, (0, c_in - s.shape[0]), constant_values=1.0)
            t = jnp.pad(t, (0, c_in - t.shape[0]))
        in_specs += [pl.BlockSpec((1, c_in), lambda i, j: (0, 0)),
                     pl.BlockSpec((1, c_in), lambda i, j: (0, 0))]
        inputs += [s.reshape(1, c_in).astype(jnp.float32),
                   t.reshape(1, c_in).astype(jnp.float32)]

    out_shape = [jax.ShapeDtypeStruct((n, h_out, w_out, c_out), jnp.bfloat16)]
    out_specs = [pl.BlockSpec((1, r_block, w_out, c_out),
                              lambda i, j: (i, j, 0, 0))]
    if with_stats:
        out_shape.append(jax.ShapeDtypeStruct((n, rb, 2, c_out), jnp.float32))
        out_specs.append(pl.BlockSpec((1, 1, 2, c_out), lambda i, j: (i, j, 0, 0)))

    scratch = []
    if in_affine is not None:
        scratch.append(pltpu.VMEM((rows, w_in, c_in), jnp.bfloat16))

    est = (2 * h_in * w_in * c_in * 2            # double-buffered input image
           + 2 * n_taps * c_in * c_out * 2       # double-buffered weights
           + 2 * r_block * w_out * c_out * 2     # double-buffered output block
           + m * c_out * 4 + m * c_in * 4        # acc + one staged operand
           + rows * w_in * c_in * 2              # affine scratch
           + (4 << 20))
    kernel = functools.partial(
        _conv_kernel, taps=taps, r_block=r_block, w_out=w_out, c_in=c_in,
        c_out=c_out, kh=kh, relu=relu,
        in_affine=in_affine is not None, with_stats=with_stats)

    outs = pl.pallas_call(
        kernel,
        out_shape=tuple(out_shape),
        grid=(n, rb),
        in_specs=in_specs,
        out_specs=tuple(out_specs),
        scratch_shapes=tuple(scratch),
        compiler_params=pltpu.CompilerParams(
            dimension_semantics=("parallel", "parallel"),
            vmem_limit_bytes=_vmem_limit(est)),
    )(*inputs)
    if with_stats:
        return outs[0], outs[1]
    return outs[0], None


def affine_maxpool_pallas(x, scale, shift):
    n, h, w, c = x.shape
    ho, wo = h // 2, w // 2
    hob = _row_block(ho, wo, target=256)          # output rows per grid step
    rb = ho // hob
    est = (2 * 2 * hob * w * c * 2 + 2 * hob * wo * c * 2
           + 4 * hob * w * c * 4 + (4 << 20))
    return pl.pallas_call(
        _affine_pool_kernel,
        out_shape=jax.ShapeDtypeStruct((n, ho, wo, c), x.dtype),
        grid=(n, rb),
        in_specs=[pl.BlockSpec((1, 2 * hob, w, c), lambda i, j: (i, j, 0, 0)),
                  pl.BlockSpec((1, c), lambda i, j: (0, 0)),
                  pl.BlockSpec((1, c), lambda i, j: (0, 0))],
        out_specs=pl.BlockSpec((1, hob, wo, c), lambda i, j: (i, j, 0, 0)),
        compiler_params=pltpu.CompilerParams(
            dimension_semantics=("parallel", "parallel"),
            vmem_limit_bytes=_vmem_limit(est)),
    )(x, scale.reshape(1, c).astype(jnp.float32),
      shift.reshape(1, c).astype(jnp.float32))


# ------------------------- BatchNorm / deconv helpers ------------------------

def _bn_affine(stats, count, gamma, beta, eps=1e-5):
    """Training-mode BatchNorm as a per-channel (scale, shift) from summed
    sum / sum-of-squares statistics (biased variance, eps=1e-5)."""
    s = jnp.sum(stats, axis=(0, 1))                           # (2, C)
    mean = s[0] / count
    var = jnp.maximum(s[1] / count - mean * mean, 0.0)
    scale = gamma * jax.lax.rsqrt(var + eps)
    shift = beta - mean * scale
    return scale, shift


def _apply_affine(x, aff):
    s, t = aff
    return (x.astype(jnp.float32) * s + t).astype(x.dtype)


def make_deconv_weight(w):
    """Sub-pixel decomposition of ConvTranspose2d(k=3, s=2, p=1, op=1): one
    VALID 2x2 conv whose 4*Cout outputs are the four output parities.
    # TODO(synk): `w` is assumed to already be the equivalent regular-conv
    # HWIO weight (synthetic here); real PyTorch IOHW weights would need the
    # in/out swap + 180-degree flip first."""
    cin, cout = w.shape[2], w.shape[3]
    wb = jnp.zeros((2, 2, cin, 4, cout), w.dtype)
    wb = wb.at[0, 0, :, 0, :].set(w[1, 1])                    # out[2i,   2j  ]
    wb = wb.at[0, 0, :, 1, :].set(w[1, 0])                    # out[2i,   2j+1]
    wb = wb.at[0, 1, :, 1, :].set(w[1, 2])
    wb = wb.at[0, 0, :, 2, :].set(w[0, 1])                    # out[2i+1, 2j  ]
    wb = wb.at[1, 0, :, 2, :].set(w[2, 1])
    wb = wb.at[0, 0, :, 3, :].set(w[0, 0])                    # out[2i+1, 2j+1]
    wb = wb.at[0, 1, :, 3, :].set(w[0, 2])
    wb = wb.at[1, 0, :, 3, :].set(w[2, 0])
    wb = wb.at[1, 1, :, 3, :].set(w[2, 2])
    return wb.reshape(2, 2, cin, 4 * cout)


def deconv_pallas(x, aff, wp):
    """ConvTranspose2d(3, stride 2, pad 1, out-pad 1).  The optional BatchNorm
    affine is applied in glue *before* the zero padding (so padded entries stay
    exactly zero), then the 2x2 parity conv kernel, then parity interleave."""
    if aff is not None:
        x = _apply_affine(x, aff)
    x = jnp.pad(x, ((0, 0), (0, 1), (0, 1), (0, 0)))
    y, _ = conv2d_pallas(x, wp, kh=2, kw=2, relu=False, with_stats=False)
    n, h, w, c4 = y.shape
    c = c4 // 4
    y = y.reshape(n, h, w, 2, 2, c).transpose(0, 1, 3, 2, 4, 5)
    return y.reshape(n, 2 * h, 2 * w, c)


# ------------------------------- UNet blocks --------------------------------

def encoder_block(x, p):
    # Conv -> ReLU -> BN -> Conv -> ReLU -> BN (one shared BN module, as in the
    # PyTorch reference: same gamma/beta, fresh batch statistics per use).
    y1, s1 = conv2d_pallas(x, p["c1"], kh=3, kw=3, relu=True)
    a1 = _bn_affine(s1, float(np.prod(y1.shape[:3])), p["bn_g"], p["bn_b"])
    y2, s2 = conv2d_pallas(y1, p["c2"], kh=3, kw=3, relu=True, in_affine=a1)
    a2 = _bn_affine(s2, float(np.prod(y2.shape[:3])), p["bn_g"], p["bn_b"])
    return y2, a2                     # pre-BN activation + its BN (scale, shift)


def decoder_block(x, aff_in, p):
    y1, s1 = conv2d_pallas(x, p["c1"], kh=3, kw=3, relu=True, in_affine=aff_in)
    a1 = _bn_affine(s1, float(np.prod(y1.shape[:3])), p["bn1_g"], p["bn1_b"])
    y2, s2 = conv2d_pallas(y1, p["c2"], kh=3, kw=3, relu=True, in_affine=a1)
    a2 = _bn_affine(s2, float(np.prod(y2.shape[:3])), p["bn2_g"], p["bn2_b"])
    return deconv_pallas(y2, a2, p["up"])


def final_block(x, aff_in, p):
    y1, s1 = conv2d_pallas(x, p["c1"], kh=3, kw=3, relu=True, in_affine=aff_in)
    a1 = _bn_affine(s1, float(np.prod(y1.shape[:3])), p["bn1_g"], p["bn1_b"])
    y2, s2 = conv2d_pallas(y1, p["c2"], kh=3, kw=3, relu=True, in_affine=a1)
    a2 = _bn_affine(s2, float(np.prod(y2.shape[:3])), p["bn2_g"], p["bn2_b"])
    # Last Conv2d(padding=1, out_ch=2) + ReLU + BatchNorm in plain XLA glue:
    # a 2-lane / 2-MXU-column Pallas kernel for a (N,4,4,2) result would be
    # pure overhead.  BN affine must precede the explicit zero padding.
    z = jnp.pad(_apply_affine(y2, a2).astype(jnp.float32),
                ((0, 0), (1, 1), (1, 1), (0, 0)))
    y3 = jax.lax.conv_general_dilated(
        z, p["w3"].astype(jnp.float32), (1, 1), "VALID",
        dimension_numbers=("NHWC", "HWIO", "NHWC"),
        precision=jax.lax.Precision.HIGHEST) + p["b3"]
    y3 = jnp.maximum(y3, 0.0)
    mean = jnp.mean(y3, axis=(0, 1, 2))
    var = jnp.mean(jnp.square(y3 - mean), axis=(0, 1, 2))
    scale = p["bn3_g"] * jax.lax.rsqrt(var + 1e-5)
    return (y3 - mean) * scale + p["bn3_b"]


def crop_concat(up, bypass, bypass_aff):
    # torch F.pad(bypass, (-c,)*4) == symmetric spatial crop, then channel cat.
    # The bypass is stored pre-BatchNorm; its (scale, shift) is forwarded into
    # the consuming conv's input affine (identity for the upsampled half).
    n, hu, wu, cu = up.shape
    c = (bypass.shape[1] - hu) // 2
    by = bypass[:, c:c + hu, c:c + wu, :]
    x = jnp.concatenate([up, by], axis=-1)
    s = jnp.concatenate([jnp.ones((cu,), jnp.float32), bypass_aff[0]])
    t = jnp.concatenate([jnp.zeros((cu,), jnp.float32), bypass_aff[1]])
    return x, (s, t)


def unet_forward(x_nhwc, params):
    x = x_nhwc.astype(jnp.bfloat16)
    e1, a1 = encoder_block(x, params["enc1"])
    p1 = affine_maxpool_pallas(e1, *a1)
    e2, a2 = encoder_block(p1, params["enc2"])
    p2 = affine_maxpool_pallas(e2, *a2)
    e3, a3 = encoder_block(p2, params["enc3"])
    p3 = affine_maxpool_pallas(e3, *a3)
    ef, af = encoder_block(p3, params["bridge"])
    up = deconv_pallas(ef, af, params["up0"])
    x3, aff3 = crop_concat(up, e3, a3)
    d3 = decoder_block(x3, aff3, params["dec3"])
    x2, aff2 = crop_concat(d3, e2, a2)
    d2 = decoder_block(x2, aff2, params["dec2"])
    x1, aff1 = crop_concat(d2, e1, a1)
    return final_block(x1, aff1, params["final"])


# --------------------------- deterministic params ---------------------------

def init_params(key, in_ch, out_ch):
    ch = [64, 128, 256, 512]
    keys = iter(jax.random.split(key, 64))

    def conv(cin, cout, k=3):
        w = 0.05 * jax.random.normal(next(keys), (k, k, cin, cout), jnp.float32)
        b = 0.01 * jax.random.normal(next(keys), (cout,), jnp.float32)
        return w, b

    def bn(c):
        g = 1.0 + 0.1 * jax.random.normal(next(keys), (c,), jnp.float32)
        b = 0.1 * jax.random.normal(next(keys), (c,), jnp.float32)
        return g, b

    def enc(cin, cout):
        w1, b1 = conv(cin, cout)
        w2, b2 = conv(cout, cout)
        g, bb = bn(cout)
        return dict(w1=w1, b1=b1, w2=w2, b2=b2, bn_g=g, bn_b=bb)

    def dec(cin, cint, cout):
        w1, b1 = conv(cin, cint)
        g1, bb1 = bn(cint)
        w2, b2 = conv(cint, cint)
        g2, bb2 = bn(cint)
        wt, bt = conv(cint, cout)   # ConvTranspose weight (equivalent-conv HWIO)
        return dict(w1=w1, b1=b1, bn1_g=g1, bn1_b=bb1,
                    w2=w2, b2=b2, bn2_g=g2, bn2_b=bb2, wt=wt, bt=bt)

    def fin(cin, cint, cout):
        w1, b1 = conv(cin, cint)
        g1, bb1 = bn(cint)
        w2, b2 = conv(cint, cint)
        g2, bb2 = bn(cint)
        w3, b3 = conv(cint, cout)
        g3, bb3 = bn(cout)
        return dict(w1=w1, b1=b1, bn1_g=g1, bn1_b=bb1,
                    w2=w2, b2=b2, bn2_g=g2, bn2_b=bb2,
                    w3=w3, b3=b3, bn3_g=g3, bn3_b=bb3)

    deconv_w, deconv_b = conv(ch[3], ch[2])
    return dict(
        enc1=enc(in_ch, ch[0]), enc2=enc(ch[0], ch[1]), enc3=enc(ch[1], ch[2]),
        bridge=enc(ch[2], ch[3]),
        deconv_w=deconv_w, deconv_b=deconv_b,
        dec3=dec(ch[3], ch[2], ch[1]), dec2=dec(ch[2], ch[1], ch[0]),
        final=fin(ch[1], ch[0], out_ch),
    )


def prep_conv(w, b):
    """One-time prep: pad tiny Cin to 8, flatten taps to the leading dim and
    cast to bf16 -> {"w": (kh*kw, Cin, Cout) bf16, "b": (1, Cout) f32}."""
    kh, kw, c_in, c_out = w.shape
    pad_c = (-c_in) % 8
    if pad_c:
        w = jnp.pad(w, ((0, 0), (0, 0), (0, pad_c), (0, 0)))
        c_in += pad_c
    wt = w.reshape(kh * kw, c_in, c_out)          # tap ti = a*kw + b
    return dict(w=wt.astype(jnp.bfloat16),
                b=jnp.asarray(b, jnp.float32).reshape(1, c_out))


def prep_deconv(w, b):
    return prep_conv(make_deconv_weight(w), jnp.tile(b, 4))


def prepare_params(raw):
    def enc(p):
        return dict(c1=prep_conv(p["w1"], p["b1"]), c2=prep_conv(p["w2"], p["b2"]),
                    bn_g=p["bn_g"], bn_b=p["bn_b"])

    def dec(p):
        return dict(c1=prep_conv(p["w1"], p["b1"]), c2=prep_conv(p["w2"], p["b2"]),
                    bn1_g=p["bn1_g"], bn1_b=p["bn1_b"],
                    bn2_g=p["bn2_g"], bn2_b=p["bn2_b"],
                    up=prep_deconv(p["wt"], p["bt"]))

    def fin(p):
        return dict(c1=prep_conv(p["w1"], p["b1"]), c2=prep_conv(p["w2"], p["b2"]),
                    w3=p["w3"], b3=p["b3"],
                    bn1_g=p["bn1_g"], bn1_b=p["bn1_b"],
                    bn2_g=p["bn2_g"], bn2_b=p["bn2_b"],
                    bn3_g=p["bn3_g"], bn3_b=p["bn3_b"])

    return dict(
        enc1=enc(raw["enc1"]), enc2=enc(raw["enc2"]), enc3=enc(raw["enc3"]),
        bridge=enc(raw["bridge"]),
        up0=prep_deconv(raw["deconv_w"], raw["deconv_b"]),
        dec3=dec(raw["dec3"]), dec2=dec(raw["dec2"]), final=fin(raw["final"]))


# ------------------------------ sanity checks --------------------------------

def _sanity_checks():
    k = jax.random.split(jax.random.PRNGKey(1), 10)

    # (1) fused conv kernel vs XLA VALID conv (bf16-rounded inputs).
    xc = jax.random.normal(k[0], (2, 12, 12, 16), jnp.float32)
    wc = 0.05 * jax.random.normal(k[1], (3, 3, 16, 32), jnp.float32)
    bc = 0.01 * jax.random.normal(k[2], (32,), jnp.float32)
    pc = prep_conv(wc, bc)
    xb = xc.astype(jnp.bfloat16)
    got, _ = conv2d_pallas(xb, pc, kh=3, kw=3, relu=False, with_stats=False)
    xr = xb.astype(jnp.float32)
    wr = wc.astype(jnp.bfloat16).astype(jnp.float32)
    ref = jax.lax.conv_general_dilated(
        xr, wr, (1, 1), "VALID", dimension_numbers=("NHWC", "HWIO", "NHWC"),
        precision=jax.lax.Precision.HIGHEST) + bc[None, None, None, :]
    np.testing.assert_allclose(np.asarray(got, np.float32), np.asarray(ref),
                               rtol=2e-2, atol=2e-2)

    # (2) input-affine + ReLU + statistics path.
    sc = 1.0 + 0.2 * jax.random.normal(k[3], (16,), jnp.float32)
    tc = 0.2 * jax.random.normal(k[4], (16,), jnp.float32)
    got2, stats = conv2d_pallas(xb, pc, kh=3, kw=3, relu=True,
                                in_affine=(sc, tc), with_stats=True)
    xa = (xr * sc + tc).astype(jnp.bfloat16).astype(jnp.float32)
    ref2 = jax.lax.conv_general_dilated(
        xa, wr, (1, 1), "VALID", dimension_numbers=("NHWC", "HWIO", "NHWC"),
        precision=jax.lax.Precision.HIGHEST) + bc[None, None, None, :]
    ref2 = jnp.maximum(ref2, 0.0)
    np.testing.assert_allclose(np.asarray(got2, np.float32), np.asarray(ref2),
                               rtol=2e-2, atol=2e-2)
    ssum = np.asarray(jnp.sum(stats, axis=(0, 1)))
    np.testing.assert_allclose(ssum[0], np.asarray(jnp.sum(ref2, axis=(0, 1, 2))),
                               rtol=2e-2, atol=0.5)

    # (3) sub-pixel ConvTranspose2d(3,2,1,1) vs XLA dilated-conv equivalent.
    xd = jax.random.normal(k[5], (1, 6, 6, 16), jnp.float32)
    wd = 0.05 * jax.random.normal(k[6], (3, 3, 16, 8), jnp.float32)
    bd = 0.01 * jax.random.normal(k[7], (8,), jnp.float32)
    gotd = deconv_pallas(xd.astype(jnp.bfloat16), None, prep_deconv(wd, bd))
    refd = jax.lax.conv_general_dilated(
        xd.astype(jnp.bfloat16).astype(jnp.float32),
        wd.astype(jnp.bfloat16).astype(jnp.float32),
        (1, 1), [(1, 2), (1, 2)], lhs_dilation=(2, 2),
        dimension_numbers=("NHWC", "HWIO", "NHWC"),
        precision=jax.lax.Precision.HIGHEST) + bd[None, None, None, :]
    assert gotd.shape == (1, 12, 12, 8), gotd.shape
    np.testing.assert_allclose(np.asarray(gotd, np.float32), np.asarray(refd),
                               rtol=2e-2, atol=2e-2)

    # (4) affine + 2x2 max-pool kernel.
    xp = jax.random.normal(k[8], (2, 8, 8, 128), jnp.float32).astype(jnp.bfloat16)
    sp = jax.random.normal(k[9], (128,), jnp.float32)
    tp = 0.1 * sp
    gotp = affine_maxpool_pallas(xp, sp, tp)
    xpa = xp.astype(jnp.float32) * sp + tp
    refp = jnp.max(xpa.reshape(2, 4, 2, 4, 2, 128), axis=(2, 4))
    np.testing.assert_allclose(np.asarray(gotp, np.float32), np.asarray(refp),
                               rtol=3e-2, atol=3e-2)


# ------------------------------------ main -----------------------------------

if __name__ == "__main__":
    IN_CH, OUT_CH = 3, 2
    # 92 is the smallest spatial size for which this UNet's VALID-conv / pool /
    # crop arithmetic is consistent (all skip concats line up exactly).
    N, H, W = 2, 92, 92

    key = jax.random.PRNGKey(0)
    k_param, k_x = jax.random.split(key)
    raw_params = init_params(k_param, IN_CH, OUT_CH)
    params = prepare_params(raw_params)     # one-time bf16 / per-tap weight prep

    _sanity_checks()

    x_nchw = jax.random.normal(k_x, (N, IN_CH, H, W), jnp.float32)  # PyTorch layout
    x_nhwc = jnp.transpose(x_nchw, (0, 2, 3, 1))

    fwd = jax.jit(unet_forward)
    out_nhwc = fwd(x_nhwc, params)
    out_nchw = jnp.transpose(out_nhwc, (0, 3, 1, 2))
    out_nchw = jax.block_until_ready(out_nchw)

    assert out_nchw.shape == (N, OUT_CH, 4, 4), out_nchw.shape
    assert bool(jnp.all(jnp.isfinite(out_nchw)))
    print("KERNEL_OK")
</pallas_src>

<mosaic_0001>
module attributes {stable_mosaic.version = 11 : i64} {
  func.func @_conv_kernel(%arg0: i32, %arg1: i32, %arg2: memref<1x12x12x16xbf16, #tpu.memory_space<vmem>>, %arg3: memref<9x16x32xbf16, #tpu.memory_space<vmem>>, %arg4: memref<1x32xf32, #tpu.memory_space<vmem>>, %arg5: memref<1x10x10x32xbf16, #tpu.memory_space<vmem>>) attributes {dimension_semantics = [#tpu.dimension_semantics<parallel>, #tpu.dimension_semantics<parallel>], iteration_bounds = array<i64: 2, 1>, scalar_prefetch = 0 : i64, scratch_operands = 0 : i64, tpu.core_type = #tpu.core_type<tc>, window_params = [{transform_indices = @transform_0, window_bounds = array<i64: 1, 12, 12, 16>}, {pipeline_mode = #tpu.pipeline_mode<synchronous>, transform_indices = @transform_1, window_bounds = array<i64: 9, 16, 32>}, {pipeline_mode = #tpu.pipeline_mode<synchronous>, transform_indices = @transform_2, window_bounds = array<i64: 1, 32>}, {transform_indices = @transform_3, window_bounds = array<i64: 1, 10, 10, 32>}]} {
    %c10_i32 = arith.constant 10 : i32
    %0 = arith.muli %arg1, %c10_i32 : i32
    %c0_i32 = arith.constant 0 : i32
    %1 = arith.addi %0, %c0_i32 : i32
    %c0 = arith.constant 0 : index
    %2 = arith.index_cast %1 : i32 to index
    %c0_0 = arith.constant 0 : index
    %c0_1 = arith.constant 0 : index
    %3 = vector.load %arg2[%c0, %2, %c0_0, %c0_1] : memref<1x12x12x16xbf16, #tpu.memory_space<vmem>>, vector<1x10x10x16xbf16>
    %4 = vector.shape_cast %3 : vector<1x10x10x16xbf16> to vector<10x10x16xbf16>
    %5 = vector.shape_cast %4 : vector<10x10x16xbf16> to vector<100x16xbf16>
    %c0_2 = arith.constant 0 : index
    %c0_3 = arith.constant 0 : index
    %c0_4 = arith.constant 0 : index
    %6 = vector.load %arg3[%c0_2, %c0_3, %c0_4] : memref<9x16x32xbf16, #tpu.memory_space<vmem>>, vector<1x16x32xbf16>
    %7 = vector.shape_cast %6 : vector<1x16x32xbf16> to vector<16x32xbf16>
    %cst = arith.constant dense<0.000000e+00> : vector<100x32xf32>
    %8 = tpu.matmul %5, %7, %cst {dimension_numbers = #tpu.dot_dimension_numbers<[1], [0], [0], [1], [0, 0, 1, 1], [], []>} : vector<100x16xbf16>, vector<16x32xbf16>, vector<100x32xf32> -> vector<100x32xf32>
    %c0_i32_5 = arith.constant 0 : i32
    %9 = arith.addi %0, %c0_i32_5 : i32
    %c0_6 = arith.constant 0 : index
    %10 = arith.index_cast %9 : i32 to index
    %c1 = arith.constant 1 : index
    %c0_7 = arith.constant 0 : index
    %11 = vector.load %arg2[%c0_6, %10, %c1, %c0_7] : memref<1x12x12x16xbf16, #tpu.memory_space<vmem>>, vector<1x10x10x16xbf16>
    %12 = vector.shape_cast %11 : vector<1x10x10x16xbf16> to vector<10x10x16xbf16>
    %13 = vector.shape_cast %12 : vector<10x10x16xbf16> to vector<100x16xbf16>
    %c1_8 = arith.constant 1 : index
    %c0_9 = arith.constant 0 : index
    %c0_10 = arith.constant 0 : index
    %14 = vector.load %arg3[%c1_8, %c0_9, %c0_10] : memref<9x16x32xbf16, #tpu.memory_space<vmem>>, vector<1x16x32xbf16>
    %15 = vector.shape_cast %14 : vector<1x16x32xbf16> to vector<16x32xbf16>
    %cst_11 = arith.constant dense<0.000000e+00> : vector<100x32xf32>
    %16 = tpu.matmul %13, %15, %cst_11 {dimension_numbers = #tpu.dot_dimension_numbers<[1], [0], [0], [1], [0, 0, 1, 1], [], []>} : vector<100x16xbf16>, vector<16x32xbf16>, vector<100x32xf32> -> vector<100x32xf32>
    %17 = arith.addf %8, %16 : vector<100x32xf32>
    %c0_i32_12 = arith.constant 0 : i32
    %18 = arith.addi %0, %c0_i32_12 : i32
    %c0_13 = arith.constant 0 : index
    %19 = arith.index_cast %18 : i32 to index
    %c2 = arith.constant 2 : index
    %c0_14 = arith.constant 0 : index
    %20 = vector.load %arg2[%c0_13, %19, %c2, %c0_14] : memref<1x12x12x16xbf16, #tpu.memory_space<vmem>>, vector<1x10x10x16xbf16>
    %21 = vector.shape_cast %20 : vector<1x10x10x16xbf16> to vector<10x10x16xbf16>
    %22 = vector.shape_cast %21 : vector<10x10x16xbf16> to vector<100x16xbf16>
    %c2_15 = arith.constant 2 : index
    %c0_16 = arith.constant 0 : index
    %c0_17 = arith.constant 0 : index
    %23 = vector.load %arg3[%c2_15, %c0_16, %c0_17] : memref<9x16x32xbf16, #tpu.memory_space<vmem>>, vector<1x16x32xbf16>
    %24 = vector.shape_cast %23 : vector<1x16x32xbf16> to vector<16x32xbf16>
    %cst_18 = arith.constant dense<0.000000e+00> : vector<100x32xf32>
    %25 = tpu.matmul %22, %24, %cst_18 {dimension_numbers = #tpu.dot_dimension_numbers<[1], [0], [0], [1], [0, 0, 1, 1], [], []>} : vector<100x16xbf16>, vector<16x32xbf16>, vector<100x32xf32> -> vector<100x32xf32>
    %26 = arith.addf %17, %25 : vector<100x32xf32>
    %c1_i32 = arith.constant 1 : i32
    %27 = arith.addi %0, %c1_i32 : i32
    %c0_19 = arith.constant 0 : index
    %28 = arith.index_cast %27 : i32 to index
    %c0_20 = arith.constant 0 : index
    %c0_21 = arith.constant 0 : index
    %29 = vector.load %arg2[%c0_19, %28, %c0_20, %c0_21] : memref<1x12x12x16xbf16, #tpu.memory_space<vmem>>, vector<1x10x10x16xbf16>
    %30 = vector.shape_cast %29 : vector<1x10x10x16xbf16> to vector<10x10x16xbf16>
    %31 = vector.shape_cast %30 : vector<10x10x16xbf16> to vector<100x16xbf16>
    %c3 = arith.constant 3 : index
    %c0_22 = arith.constant 0 : index
    %c0_23 = arith.constant 0 : index
    %32 = vector.load %arg3[%c3, %c0_22, %c0_23] : memref<9x16x32xbf16, #tpu.memory_space<vmem>>, vector<1x16x32xbf16>
    %33 = vector.shape_cast %32 : vector<1x16x32xbf16> to vector<16x32xbf16>
    %cst_24 = arith.constant dense<0.000000e+00> : vector<100x32xf32>
    %34 = tpu.matmul %31, %33, %cst_24 {dimension_numbers = #tpu.dot_dimension_numbers<[1], [0], [0], [1], [0, 0, 1, 1], [], []>} : vector<100x16xbf16>, vector<16x32xbf16>, vector<100x32xf32> -> vector<100x32xf32>
    %35 = arith.addf %26, %34 : vector<100x32xf32>
    %c1_i32_25 = arith.constant 1 : i32
    %36 = arith.addi %0, %c1_i32_25 : i32
    %c0_26 = arith.constant 0 : index
    %37 = arith.index_cast %36 : i32 to index
    %c1_27 = arith.constant 1 : index
    %c0_28 = arith.constant 0 : index
    %38 = vector.load %arg2[%c0_26, %37, %c1_27, %c0_28] : memref<1x12x12x16xbf16, #tpu.memory_space<vmem>>, vector<1x10x10x16xbf16>
    %39 = vector.shape_cast %38 : vector<1x10x10x16xbf16> to vector<10x10x16xbf16>
    %40 = vector.shape_cast %39 : vector<10x10x16xbf16> to vector<100x16xbf16>
    %c4 = arith.constant 4 : index
    %c0_29 = arith.constant 0 : index
    %c0_30 = arith.constant 0 : index
    %41 = vector.load %arg3[%c4, %c0_29, %c0_30] : memref<9x16x32xbf16, #tpu.memory_space<vmem>>, vector<1x16x32xbf16>
    %42 = vector.shape_cast %41 : vector<1x16x32xbf16> to vector<16x32xbf16>
    %cst_31 = arith.constant dense<0.000000e+00> : vector<100x32xf32>
    %43 = tpu.matmul %40, %42, %cst_31 {dimension_numbers = #tpu.dot_dimension_numbers<[1], [0], [0], [1], [0, 0, 1, 1], [], []>} : vector<100x16xbf16>, vector<16x32xbf16>, vector<100x32xf32> -> vector<100x32xf32>
    %44 = arith.addf %35, %43 : vector<100x32xf32>
    %c1_i32_32 = arith.constant 1 : i32
    %45 = arith.addi %0, %c1_i32_32 : i32
    %c0_33 = arith.constant 0 : index
    %46 = arith.index_cast %45 : i32 to index
    %c2_34 = arith.constant 2 : index
    %c0_35 = arith.constant 0 : index
    %47 = vector.load %arg2[%c0_33, %46, %c2_34, %c0_35] : memref<1x12x12x16xbf16, #tpu.memory_space<vmem>>, vector<1x10x10x16xbf16>
    %48 = vector.shape_cast %47 : vector<1x10x10x16xbf16> to vector<10x10x16xbf16>
    %49 = vector.shape_cast %48 : vector<10x10x16xbf16> to vector<100x16xbf16>
    %c5 = arith.constant 5 : index
    %c0_36 = arith.constant 0 : index
    %c0_37 = arith.constant 0 : index
    %50 = vector.load %arg3[%c5, %c0_36, %c0_37] : memref<9x16x32xbf16, #tpu.memory_space<vmem>>, vector<1x16x32xbf16>
    %51 = vector.shape_cast %50 : vector<1x16x32xbf16> to vector<16x32xbf16>
    %cst_38 = arith.constant dense<0.000000e+00> : vector<100x32xf32>
    %52 = tpu.matmul %49, %51, %cst_38 {dimension_numbers = #tpu.dot_dimension_numbers<[1], [0], [0], [1], [0, 0, 1, 1], [], []>} : vector<100x16xbf16>, vector<16x32xbf16>, vector<100x32xf32> -> vector<100x32xf32>
    %53 = arith.addf %44, %52 : vector<100x32xf32>
    %c2_i32 = arith.constant 2 : i32
    %54 = arith.addi %0, %c2_i32 : i32
    %c0_39 = arith.constant 0 : index
    %55 = arith.index_cast %54 : i32 to index
    %c0_40 = arith.constant 0 : index
    %c0_41 = arith.constant 0 : index
    %56 = vector.load %arg2[%c0_39, %55, %c0_40, %c0_41] : memref<1x12x12x16xbf16, #tpu.memory_space<vmem>>, vector<1x10x10x16xbf16>
    %57 = vector.shape_cast %56 : vector<1x10x10x16xbf16> to vector<10x10x16xbf16>
    %58 = vector.shape_cast %57 : vector<10x10x16xbf16> to vector<100x16xbf16>
    %c6 = arith.constant 6 : index
    %c0_42 = arith.constant 0 : index
    %c0_43 = arith.constant 0 : index
    %59 = vector.load %arg3[%c6, %c0_42, %c0_43] : memref<9x16x32xbf16, #tpu.memory_space<vmem>>, vector<1x16x32xbf16>
    %60 = vector.shape_cast %59 : vector<1x16x32xbf16> to vector<16x32xbf16>
    %cst_44 = arith.constant dense<0.000000e+00> : vector<100x32xf32>
    %61 = tpu.matmul %58, %60, %cst_44 {dimension_numbers = #tpu.dot_dimension_numbers<[1], [0], [0], [1], [0, 0, 1, 1], [], []>} : vector<100x16xbf16>, vector<16x32xbf16>, vector<100x32xf32> -> vector<100x32xf32>
    %62 = arith.addf %53, %61 : vector<100x32xf32>
    %c2_i32_45 = arith.constant 2 : i32
    %63 = arith.addi %0, %c2_i32_45 : i32
    %c0_46 = arith.constant 0 : index
    %64 = arith.index_cast %63 : i32 to index
    %c1_47 = arith.constant 1 : index
    %c0_48 = arith.constant 0 : index
    %65 = vector.load %arg2[%c0_46, %64, %c1_47, %c0_48] : memref<1x12x12x16xbf16, #tpu.memory_space<vmem>>, vector<1x10x10x16xbf16>
    %66 = vector.shape_cast %65 : vector<1x10x10x16xbf16> to vector<10x10x16xbf16>
    %67 = vector.shape_cast %66 : vector<10x10x16xbf16> to vector<100x16xbf16>
    %c7 = arith.constant 7 : index
    %c0_49 = arith.constant 0 : index
    %c0_50 = arith.constant 0 : index
    %68 = vector.load %arg3[%c7, %c0_49, %c0_50] : memref<9x16x32xbf16, #tpu.memory_space<vmem>>, vector<1x16x32xbf16>
    %69 = vector.shape_cast %68 : vector<1x16x32xbf16> to vector<16x32xbf16>
    %cst_51 = arith.constant dense<0.000000e+00> : vector<100x32xf32>
    %70 = tpu.matmul %67, %69, %cst_51 {dimension_numbers = #tpu.dot_dimension_numbers<[1], [0], [0], [1], [0, 0, 1, 1], [], []>} : vector<100x16xbf16>, vector<16x32xbf16>, vector<100x32xf32> -> vector<100x32xf32>
    %71 = arith.addf %62, %70 : vector<100x32xf32>
    %c2_i32_52 = arith.constant 2 : i32
    %72 = arith.addi %0, %c2_i32_52 : i32
    %c0_53 = arith.constant 0 : index
    %73 = arith.index_cast %72 : i32 to index
    %c2_54 = arith.constant 2 : index
    %c0_55 = arith.constant 0 : index
    %74 = vector.load %arg2[%c0_53, %73, %c2_54, %c0_55] : memref<1x12x12x16xbf16, #tpu.memory_space<vmem>>, vector<1x10x10x16xbf16>
    %75 = vector.shape_cast %74 : vector<1x10x10x16xbf16> to vector<10x10x16xbf16>
    %76 = vector.shape_cast %75 : vector<10x10x16xbf16> to vector<100x16xbf16>
    %c8 = arith.constant 8 : index
    %c0_56 = arith.constant 0 : index
    %c0_57 = arith.constant 0 : index
    %77 = vector.load %arg3[%c8, %c0_56, %c0_57] : memref<9x16x32xbf16, #tpu.memory_space<vmem>>, vector<1x16x32xbf16>
    %78 = vector.shape_cast %77 : vector<1x16x32xbf16> to vector<16x32xbf16>
    %cst_58 = arith.constant dense<0.000000e+00> : vector<100x32xf32>
    %79 = tpu.matmul %76, %78, %cst_58 {dimension_numbers = #tpu.dot_dimension_numbers<[1], [0], [0], [1], [0, 0, 1, 1], [], []>} : vector<100x16xbf16>, vector<16x32xbf16>, vector<100x32xf32> -> vector<100x32xf32>
    %80 = arith.addf %71, %79 : vector<100x32xf32>
    %c0_59 = arith.constant 0 : index
    %c0_60 = arith.constant 0 : index
    %81 = vector.load %arg4[%c0_59, %c0_60] : memref<1x32xf32, #tpu.memory_space<vmem>>, vector<1x32xf32>
    %82 = vector.broadcast %81 : vector<1x32xf32> to vector<100x32xf32>
    %83 = arith.addf %80, %82 : vector<100x32xf32>
    %84 = vector.shape_cast %83 : vector<100x32xf32> to vector<10x10x32xf32>
    %85 = arith.truncf %84 : vector<10x10x32xf32> to vector<10x10x32xbf16>
    %c0_61 = arith.constant 0 : index
    %c0_62 = arith.constant 0 : index
    %c0_63 = arith.constant 0 : index
    %c0_64 = arith.constant 0 : index
    %86 = vector.load %arg5[%c0_61, %c0_62, %c0_63, %c0_64] : memref<1x10x10x32xbf16, #tpu.memory_space<vmem>>, vector<1x10x10x32xbf16>
    %87 = vector.shape_cast %86 : vector<1x10x10x32xbf16> to vector<10x10x32xbf16>
    %88 = vector.shape_cast %85 : vector<10x10x32xbf16> to vector<1x10x10x32xbf16>
    tpu.vector_store %arg5[%c0_61, %c0_62, %c0_63, %c0_64], %88 {strides = array<i32>} : memref<1x10x10x32xbf16, #tpu.memory_space<vmem>>, vector<1x10x10x32xbf16>,
    return
  }
  func.func @transform_0(%arg0: i32, %arg1: i32) -> (i32, i32, i32, i32) {
    %c0_i32 = arith.constant 0 : i32
    %c0_i32_0 = arith.constant 0 : i32
    %c0_i32_1 = arith.constant 0 : i32
    %c0_i32_2 = arith.constant 0 : i32
    return %arg0, %c0_i32, %c0_i32_0, %c0_i32_1 : i32, i32, i32, i32
  }
  func.func @transform_1(%arg0: i32, %arg1: i32) -> (i32, i32, i32) {
    %c0_i32 = arith.constant 0 : i32
    %c0_i32_0 = arith.constant 0 : i32
    %c0_i32_1 = arith.constant 0 : i32
    %c0_i32_2 = arith.constant 0 : i32
    return %c0_i32, %c0_i32_0, %c0_i32_1 : i32, i32, i32
  }
  func.func @transform_2(%arg0: i32, %arg1: i32) -> (i32, i32) {
    %c0_i32 = arith.constant 0 : i32
    %c0_i32_0 = arith.constant 0 : i32
    %c0_i32_1 = arith.constant 0 : i32
    return %c0_i32, %c0_i32_0 : i32, i32
  }
  func.func @transform_3(%arg0: i32, %arg1: i32) -> (i32, i32, i32, i32) {
    %c0_i32 = arith.constant 0 : i32
    %c0_i32_0 = arith.constant 0 : i32
    %c0_i32_1 = arith.constant 0 : i32
    return %arg0, %arg1, %c0_i32, %c0_i32_0 : i32, i32, i32, i32
  }
}

</mosaic_0001>

<bundles_post_ra>
// kernel: tpu_custom_call.1
= control target key start
LH: loop header
LB: loop body
LE: loop exit
PB: predicated region body
PF: predicated region fallthrough
CT: control target
= control target key end

     0   :  { %s5191_s12 = smov 0   ;;  %s5193_s13 = smov 0   ;;  %s7071_s0 = inlined_call_operand.vmem [shape: bf16[2,12,12,16], index: 0, kind: input, shape index: {}]   ;;  %s7072_s1 = inlined_call_operand.vmem [shape: bf16[9,16,32], index: 1, kind: input, shape index: {}]   ;;  %s7073_s2 = inlined_call_operand.vmem [shape: f32[1,32], index: 2, kind: input, shape index: {}]   ;;  %s7074_s3 = inlined_call_operand.vmem [shape: bf16[2,10,10,32], index: 3, kind: output, shape index: {}]  }
   0x1   :  { %s5195_s14 = smov 0  }
   0x2 LB: > { %s25_s15 = sadd.s32 1, %s5165_s13  ;;  %p4718_p0 = scmp.ge.s32.totalorder %s5169_s14, 1  ;;  %s5169_s14 = sphi %s5195_s14, %s13_s14   ;;  %s5165_s13 = sphi %s5193_s13, %s7090_s13   ;;  %s5161_s12 = sphi %s5191_s12, %s7089_s12  }
   0x3   : > { %p27_p1 = scmp.ge.s32.totalorder %s25_s15, 2  ;;  %p151_p2 = scmp.lt.s32.totalorder %s5169_s14, 3 }
   0x5   : > { %s7092_s15 = smov (%p27_p1, %s25_s15), 0  ;;  %p152_p3 = pnand %p4718_p0, %p151_p2 }
   0x7   : > { %155 = sbr.rel (%p152_p3) target bundleno = 1323 (0x52b), region = 32 }
   0xc   : > { %v5109_v0 = vld [vmem:[%s7072_s1 + $0x8] sm:$0xff]  ;;  %p180_p4 = scmp.lt.s32.totalorder %s5161_s12, 1  ;;  %vm507_vm0 = vsmask.f32 256  ;;  %vm508_vm1 = vsmask.f32 1284 }
   0xd   : > { %5117 = vmatpush.bf16.msra.mxu1 %v5109_v0  ;;  %vm509_vm2 = vmor %vm507_vm0, %vm508_vm1  ;;  %vm510_vm3 = vsmask.f32 2312  ;;  %5118 = vmatpush.bf16.msra.mxu2 %v5109_v0  ;;  %vm512_vm5 = vsmask.f32 3340  ;;  %vm514_vm7 = vsmask.f32 4368 }
   0xe   : > { %s7094_s12 = smov (!%p180_p4, %s5161_s12), 1  ;;  %5119 = vmatpush.bf16.msra.mxu3 %v5109_v0  ;;  %1057 = vmatpush.bf16.msra.mxu0 %v5109_v0  ;;  %vm511_vm4 = vmor %vm509_vm2, %vm510_vm3  ;;  %vm265_vm8 = vcmask 1041409   ;;  %vm516_vm10 = vsmask.f32 5396  ;;  %vm269_vm11 = vcmask 1042434   ;;  %vm273_vm12 = vcmask 1043459  }
   0xf   : > { %s5120_s18 = smul.u32 96, %s7094_s12  ;;  %vm513_vm6 = vmor %vm511_vm4, %vm512_vm5  ;;  %vm261_vm13 = vcmask 1040384   ;;  %vm518_vm15 = vsmask.f32 6424  ;;  %vm520_vm1 = vsmask.f32 7452 }
  0x10   : > { %vm515_vm9 = vmor %vm513_vm6, %vm514_vm7  ;;  %vm1035_vm3 = vcmask 130048   ;;  %s5121_s17 = smul.u32 80, %s7094_s12  ;;  %vm4595_vm4 = vcmask 257024   ;;  %vm4597_vm5 = vcmask 253952  }
  0x11   : > { %s5218_s21 = scalar_lea.vmem %s7071_s0, %s5120_s18  ;;  %vm517_vm14 = vmor %vm515_vm9, %vm516_vm10 }
  0x12   : > { %v201_v1 = vld [vmem:[%s5218_s21] sm:$0xf]  ;;  %v203_v3 = vld [vmem:[%s5218_s21 + $0x8] sm:$0xf]  ;;  %v417_v6 = vld [vmem:[%s5218_s21 + $0x4] sm:$0x3]  ;;  %s6999_s20 = scalar_lea.vmem %s7074_s3, %s5121_s17 }
  0x13   : > { %v241_v2 = vrot.slane %v201_v1, 3  ;;  %v243_v5 = vrot.slane %v203_v3, 3  ;;  %vm519_vm0 = vmor %vm517_vm14, %vm518_vm15  ;;  %v437_v11 = vrot.slane %v417_v6, 3  ;;  %v205_v12 = vld [vmem:[%s5218_s21 + $0x10] sm:$0xf] }
  0x14   : > { %v418_v18 = vld [vmem:[%s5218_s21 + $0xc] sm:$0x3]  ;;  %vm5241_vm2 = vmor %vm519_vm0, %vm520_vm1  ;;  %v245_v24 = vrot.slane %v205_v12, 3  ;;  %v419_v40 = vld [vmem:[%s5218_s21 + $0x14] sm:$0x3] }
  0x15   : > { %v266_v4 = vsel %vm265_vm8, %v201_v1, %v241_v2  ;;  %v270_v8 = vsel %vm269_vm11, %v201_v1, %v241_v2  ;;  %v274_v9 = vsel %vm273_vm12, %v201_v1, %v241_v2  ;;  %v5229_v10 = vsel %vm261_vm13, %v201_v1, %v241_v2  ;;  %v5272_v45 = vld [vmem:[%s5218_s21 + $0x18] sm:$0xf] }
  0x16   : > { %v5224_v7 = vrot.slane %v266_v4, 1  ;;  %v5232_v13 = vrot.slane %v270_v8, 2  ;;  %v5234_v14 = vrot.slane %v274_v9, 3  ;;  %v283_v15 = vsel %vm265_vm8, %v203_v3, %v243_v5  ;;  %v5075_v20 = vld [vmem:[%s5218_s21 + $0x18] sm:$0xe] }
  0x17   : > { %v286_v16 = vsel %vm269_vm11, %v203_v3, %v243_v5  ;;  %v289_v17 = vsel %vm273_vm12, %v203_v3, %v243_v5  ;;  %v450_v19 = vsel %vm265_vm8, %v417_v6, %v437_v11  ;;  %v522_v21 = vshrl.u32 %v5229_v10, 16 }
  0x18   : > { %v527_v22 = vshll.u32 %v5224_v7, 16  ;;  %v452_v23 = vrot.slane %v450_v19, 1  ;;  %v5248_v25 = vsel %vm261_vm13, %v203_v3, %v243_v5  ;;  %v5250_v26 = vrot.slane %v283_v15, 1 }
  0x19   : > { %v449_v27 = vsel %vm261_vm13, %v417_v6, %v437_v11  ;;  %v5253_v28 = vrot.slane %v286_v16, 2  ;;  %v5255_v29 = vrot.slane %v289_v17, 3  ;;  %v438_v30 = vrot.slane %v418_v18, 3 }
  0x1a   : > { %v529_v31 = vsel %vm5241_vm2, %v522_v21, %v527_v22  ;;  %v530_v32 = vshrl.u32 %v5224_v7, 16  ;;  %v535_v33 = vshll.u32 %v5232_v13, 16  ;;  %v538_v34 = vshrl.u32 %v5232_v13, 16  ;;  %v420_v22 = vld [vmem:[%s5218_s21 + $0x1c] sm:$0x3] }
  0x1b   : > { %v543_v35 = vshll.u32 %v5234_v14, 16  ;;  %916 = vst [vmem:[#allocation1] ss:$9 sm:$0xff] %v529_v31  ;;  %v546_v36 = vshrl.u32 %v5234_v14, 16  ;;  %v550_v37 = vshll.u32 %v449_v27, 16  ;;  %v553_v38 = vshrl.u32 %v449_v27, 16 }
  0x1c   : > { %v558_v39 = vshll.u32 %v452_v23, 16  ;;  %v537_v41 = vsel %vm5241_vm2, %v530_v32, %v535_v33  ;;  %v561_v43 = vshrl.u32 %v5248_v25, 16  ;;  %v566_v44 = vshll.u32 %v5250_v26, 16 }
  0x1d   : > { %v545_v42 = vsel %vm5241_vm2, %v538_v34, %v543_v35  ;;  %v552_v46 = vsel %vm5241_vm2, %v546_v36, %v550_v37  ;;  %v569_v48 = vshrl.u32 %v5250_v26, 16  ;;  %v574_v49 = vshll.u32 %v5253_v28, 16  ;;  %919 = vst [vmem:[#allocation1 + $0x1] ss:$9 sm:$0xff] %v537_v41 }
  0x1e   : > { %v560_v47 = vsel %vm5241_vm2, %v553_v38, %v558_v39  ;;  %v456_v50 = vsel %vm265_vm8, %v418_v18, %v438_v30  ;;  %v568_v51 = vsel %vm5241_vm2, %v561_v43, %v566_v44  ;;  %v577_v52 = vshrl.u32 %v5253_v28, 16  ;;  %922 = vst [vmem:[#allocation1 + $0x2] ss:$9 sm:$0xff] %v545_v42 }
  0x1f   : > { %v582_v53 = vshll.u32 %v5255_v29, 16  ;;  %v298_v54 = vsel %vm265_vm8, %v205_v12, %v245_v24  ;;  %v439_v55 = vrot.slane %v419_v40, 3  ;;  %v576_v56 = vsel %vm5241_vm2, %v569_v48, %v574_v49  ;;  %925 = vst [vmem:[#allocation1 + $0x3] ss:$9 sm:$0xff] %v552_v46 }
  0x20   : > { %v247_v57 = vrot.slane %v5272_v45, 3  ;;  %v301_v58 = vsel %vm269_vm11, %v205_v12, %v245_v24  ;;  %928 = vst [vmem:[#allocation1 + $0x4] ss:$9 sm:$0xff] %v560_v47  ;;  %v304_v60 = vsel %vm273_vm12, %v205_v12, %v245_v24  ;;  %v455_v61 = vsel %vm261_vm13, %v418_v18, %v438_v30  ;;  %v209_v30 = vld [vmem:[%s5218_s21 + $0x20] sm:$0xf] }
  0x21   : > { %v584_v59 = vsel %vm5241_vm2, %v577_v52, %v582_v53  ;;  %v458_v62 = vrot.slane %v456_v50, 1  ;;  %931 = vst [vmem:[#allocation1 + $0x5] ss:$9 sm:$0xff] %v568_v51  ;;  %v5294_v63 = vrot.slane %v298_v54, 1  ;;  %v5297_v0 = vsel %vm261_vm13, %v205_v12, %v245_v24  ;;  %v421_v53 = vld [vmem:[%s5218_s21 + $0x24] sm:$0x3] }
  0x22   : > { %934 = vst [vmem:[#allocation1 + $0x6] ss:$9 sm:$0xff] %v576_v56  ;;  %v5299_v1 = vrot.slane %v301_v58, 2  ;;  %v462_v2 = vsel %vm265_vm8, %v419_v40, %v439_v55  ;;  %v5302_v3 = vrot.slane %v304_v60, 3  ;;  %v313_v4 = vsel %vm265_vm8, %v5272_v45, %v247_v57 }
  0x23   : > { %937 = vst [vmem:[#allocation1 + $0x7] ss:$9 sm:$0xff] %v584_v59  ;;  %v585_v5 = vshrl.u32 %v5255_v29, 16  ;;  %v589_v6 = vshll.u32 %v455_v61, 16  ;;  %v592_v8 = vshrl.u32 %v455_v61, 16  ;;  %v597_v9 = vshll.u32 %v458_v62, 16 }
  0x24   : > { %v461_v11 = vsel %vm261_vm13, %v419_v40, %v439_v55  ;;  %v464_v12 = vrot.slane %v462_v2, 1  ;;  %v600_v15 = vshrl.u32 %v5297_v0, 16  ;;  %v605_v16 = vshll.u32 %v5294_v63, 16 }
  0x25   : > { %v5310_v17 = vrot.slane %v313_v4, 1  ;;  %v608_v18 = vshrl.u32 %v5294_v63, 16  ;;  %v613_v19 = vshll.u32 %v5299_v1, 16  ;;  %v5316_v21 = vsel %vm261_vm13, %v5272_v45, %v247_v57 }
  0x26   : > { %v591_v23 = vsel %vm5241_vm2, %v585_v5, %v589_v6  ;;  %v616_v24 = vshrl.u32 %v5299_v1, 16  ;;  %v621_v27 = vshll.u32 %v5302_v3, 16  ;;  %v599_v31 = vsel %vm5241_vm2, %v592_v8, %v597_v9 }
  0x27   : > { %v624_v32 = vshrl.u32 %v5302_v3, 16  ;;  %v628_v33 = vshll.u32 %v461_v11, 16  ;;  %v607_v34 = vsel %vm5241_vm2, %v600_v15, %v605_v16  ;;  %v631_v35 = vshrl.u32 %v461_v11, 16  ;;  %v211_v11 = vld [vmem:[%s5218_s21 + $0x28] sm:$0xf] }
  0x28   : > { %v636_v36 = vshll.u32 %v464_v12, 16  ;;  %v440_v38 = vrot.slane %v420_v22, 3  ;;  %v615_v39 = vsel %vm5241_vm2, %v608_v18, %v613_v19  ;;  %v639_v40 = vshrl.u32 %v5316_v21, 16 }
  0x29   : > { %v644_v41 = vshll.u32 %v5310_v17, 16  ;;  %v249_v42 = vrot.slane %v209_v30, 3  ;;  %v316_v43 = vsel %vm269_vm11, %v5272_v45, %v247_v57  ;;  %v623_v44 = vsel %vm5241_vm2, %v616_v24, %v621_v27 }
  0x2a   : > { %v938_v37 = vld [vmem:[#allocation1] sm:$0xff]  ;;  %v319_v46 = vsel %vm273_vm12, %v5272_v45, %v247_v57  ;;  %v630_v47 = vsel %vm5241_vm2, %v624_v32, %v628_v33  ;;  %v638_v48 = vsel %vm5241_vm2, %v631_v35, %v636_v36  ;;  %v5344_v49 = vrot.slane %v316_v43, 2  ;;  %v422_v35 = vld [vmem:[%s5218_s21 + $0x2c] sm:$0x3] }
  0x2b   : > { %940 = vst [vmem:[#allocation1] ss:$9 sm:$0xff] %v591_v23  ;;  %4777 = vmatmul.msk.bf16.vlgmr.msra.gmra.mxu0 %vm1035_vm3, %v938_v37  ;;  %v468_v50 = vsel %vm265_vm8, %v420_v22, %v440_v38  ;;  %v646_v51 = vsel %vm5241_vm2, %v639_v40, %v644_v41  ;;  %v5349_v52 = vrot.slane %v319_v46, 3  ;;  %v328_v45 = vsel %vm265_vm8, %v209_v30, %v249_v42  ;;  %v5108_v36 = vld [vmem:[%s7072_s1] sm:$0xff]  ;;  %v5392_v40 = vld [vmem:[%s5218_s21 + $0x30] sm:$0xf] }
  0x2c   : > { %942 = vst [vmem:[#allocation1 + $0x1] ss:$9 sm:$0xff] %v599_v31  ;;  %v331_v54 = vsel %vm269_vm11, %v209_v30, %v249_v42  ;;  %v334_v55 = vsel %vm273_vm12, %v209_v30, %v249_v42  ;;  %v467_v56 = vsel %vm261_vm13, %v420_v22, %v440_v38  ;;  %v470_v57 = vrot.slane %v468_v50, 1  ;;  %1184 = vmatpush.bf16.msrb.mxu1 %v5108_v36 }
  0x2d   : > { %944 = vst [vmem:[#allocation1 + $0x2] ss:$9 sm:$0xff] %v607_v34  ;;  %v5356_v58 = vrot.slane %v328_v45, 1  ;;  %v441_v59 = vrot.slane %v421_v53, 3  ;;  %v647_v60 = vshrl.u32 %v5310_v17, 16  ;;  %v652_v61 = vshll.u32 %v5344_v49, 16 }
  0x2e   : > { %946 = vst [vmem:[#allocation1 + $0x3] ss:$9 sm:$0xff] %v615_v39  ;;  %v5361_v62 = vsel %vm261_vm13, %v209_v30, %v249_v42  ;;  %v5363_v2 = vrot.slane %v331_v54, 2  ;;  %v655_v4 = vshrl.u32 %v5344_v49, 16  ;;  %v660_v5 = vshll.u32 %v5349_v52, 16 }
  0x2f   : > { %948 = vst [vmem:[#allocation1 + $0x4] ss:$9 sm:$0xff] %v623_v44  ;;  %v5367_v6 = vrot.slane %v334_v55, 3  ;;  %v663_v8 = vshrl.u32 %v5349_v52, 16  ;;  %v667_v9 = vshll.u32 %v467_v56, 16  ;;  %v670_v12 = vshrl.u32 %v467_v56, 16 }
  0x30   : > { %950 = vst [vmem:[#allocation1 + $0x5] ss:$9 sm:$0xff] %v630_v47  ;;  %v675_v15 = vshll.u32 %v470_v57, 16  ;;  %v473_v16 = vsel %vm261_vm13, %v421_v53, %v441_v59  ;;  %v654_v18 = vsel %vm5241_vm2, %v647_v60, %v652_v61  ;;  %v678_v19 = vshrl.u32 %v5361_v62, 16 }
  0x31   : > { %952 = vst [vmem:[#allocation1 + $0x6] ss:$9 sm:$0xff] %v638_v48  ;;  %v683_v22 = vshll.u32 %v5356_v58, 16  ;;  %v662_v23 = vsel %vm5241_vm2, %v655_v4, %v660_v5  ;;  %v686_v24 = vshrl.u32 %v5356_v58, 16  ;;  %v691_v27 = vshll.u32 %v5363_v2, 16 }
  0x32   : > { %954 = vst [vmem:[#allocation1 + $0x7] ss:$9 sm:$0xff] %v646_v51  ;;  %v251_v30 = vrot.slane %v211_v11, 3  ;;  %v669_v31 = vsel %vm5241_vm2, %v663_v8, %v667_v9  ;;  %v694_v32 = vshrl.u32 %v5363_v2, 16  ;;  %v699_v33 = vshll.u32 %v5367_v6, 16 }
  0x33   : > { %v677_v37 = vsel %vm5241_vm2, %v670_v12, %v675_v15  ;;  %v702_v38 = vshrl.u32 %v5367_v6, 16  ;;  %v706_v39 = vshll.u32 %v473_v16, 16  ;;  %v685_v41 = vsel %vm5241_vm2, %v678_v19, %v683_v22 }
  0x34   : > { %v474_v42 = vsel %vm265_vm8, %v421_v53, %v441_v59  ;;  %v693_v43 = vsel %vm5241_vm2, %v686_v24, %v691_v27  ;;  %v343_v44 = vsel %vm265_vm8, %v211_v11, %v251_v30  ;;  %v442_v46 = vrot.slane %v422_v35, 3  ;;  %v423_v27 = vld [vmem:[%s5218_s21 + $0x34] sm:$0x3] }
  0x35   : > { %v701_v47 = vsel %vm5241_vm2, %v694_v32, %v699_v33  ;;  %v253_v48 = vrot.slane %v5392_v40, 3  ;;  %v346_v50 = vsel %vm269_vm11, %v211_v11, %v251_v30  ;;  %v708_v51 = vsel %vm5241_vm2, %v702_v38, %v706_v39  ;;  %v215_v33 = vld [vmem:[%s5218_s21 + $0x38] sm:$0xf] }
  0x36   : > { %v349_v45 = vsel %vm273_vm12, %v211_v11, %v251_v30  ;;  %v476_v53 = vrot.slane %v474_v42, 1  ;;  %v5408_v54 = vrot.slane %v343_v44, 1  ;;  %v5411_v55 = vsel %vm261_vm13, %v211_v11, %v251_v30 }
  0x37   : > { %v5413_v56 = vrot.slane %v346_v50, 2  ;;  %v480_v57 = vsel %vm265_vm8, %v422_v35, %v442_v46  ;;  %v5416_v59 = vrot.slane %v349_v45, 3  ;;  %v358_v60 = vsel %vm265_vm8, %v5392_v40, %v253_v48  ;;  %v424_v45 = vld [vmem:[%s5218_s21 + $0x3c] sm:$0x3] }
  0x38   : > { %v361_v61 = vsel %vm269_vm11, %v5392_v40, %v253_v48  ;;  %v709_v4 = vshrl.u32 %v473_v16, 16  ;;  %v714_v5 = vshll.u32 %v476_v53, 16  ;;  %v479_v8 = vsel %vm261_vm13, %v422_v35, %v442_v46 }
  0x39   : > { %v955_v34 = vld [vmem:[#allocation1] sm:$0xff]  ;;  %v482_v9 = vrot.slane %v480_v57, 1  ;;  %v717_v11 = vshrl.u32 %v5411_v55, 16  ;;  %v722_v12 = vshll.u32 %v5408_v54, 16  ;;  %v5425_v15 = vrot.slane %v358_v60, 1 }
  0x3a   : > { %957 = vst [vmem:[#allocation1] ss:$9 sm:$0xff] %v654_v18  ;;  %v725_v18 = vshrl.u32 %v5408_v54, 16  ;;  %v730_v19 = vshll.u32 %v5413_v56, 16  ;;  %v5431_v22 = vsel %vm261_vm13, %v5392_v40, %v253_v48  ;;  %v5433_v16 = vrot.slane %v361_v61, 2 }
  0x3b   : > { %959 = vst [vmem:[#allocation1 + $0x1] ss:$9 sm:$0xff] %v662_v23  ;;  %4778 = vmatmul.msk.bf16.gmra.mxu0 %vm1035_vm3, %v955_v34  ;;  %v733_v23 = vshrl.u32 %v5413_v56, 16  ;;  %v738_v24 = vshll.u32 %v5416_v59, 16  ;;  %v716_v30 = vsel %vm5241_vm2, %v709_v4, %v714_v5  ;;  %v745_v32 = vshll.u32 %v479_v8, 16 }
  0x3c   : > { %961 = vst [vmem:[#allocation1 + $0x2] ss:$9 sm:$0xff] %v669_v31  ;;  %v741_v31 = vshrl.u32 %v5416_v59, 16  ;;  %v724_v34 = vsel %vm5241_vm2, %v717_v11, %v722_v12  ;;  %v748_v35 = vshrl.u32 %v479_v8, 16  ;;  %v753_v36 = vshll.u32 %v482_v9, 16 }
  0x3d   : > { %963 = vst [vmem:[#allocation1 + $0x3] ss:$9 sm:$0xff] %v677_v37  ;;  %v732_v38 = vsel %vm5241_vm2, %v725_v18, %v730_v19  ;;  %v756_v39 = vshrl.u32 %v5431_v22, 16  ;;  %v443_v42 = vrot.slane %v423_v27, 3  ;;  %v764_v44 = vshrl.u32 %v5425_v15, 16 }
  0x3e   : > { %965 = vst [vmem:[#allocation1 + $0x4] ss:$9 sm:$0xff] %v685_v41  ;;  %v761_v41 = vshll.u32 %v5425_v15, 16  ;;  %v769_v46 = vshll.u32 %v5433_v16, 16  ;;  %v747_v50 = vsel %vm5241_vm2, %v741_v31, %v745_v32  ;;  %v755_v53 = vsel %vm5241_vm2, %v748_v35, %v753_v36  ;;  %v217_v31 = vld [vmem:[%s5218_s21 + $0x40] sm:$0xf] }
  0x3f   : > { %967 = vst [vmem:[#allocation1 + $0x5] ss:$9 sm:$0xff] %v693_v43  ;;  %v740_v43 = vsel %vm5241_vm2, %v733_v23, %v738_v24  ;;  %v486_v60 = vsel %vm265_vm8, %v423_v27, %v443_v42  ;;  %v485_v9 = vsel %vm261_vm13, %v423_v27, %v443_v42  ;;  %v772_v24 = vshrl.u32 %v5433_v16, 16 }
  0x40   : > { %969 = vst [vmem:[#allocation1 + $0x6] ss:$9 sm:$0xff] %v701_v47  ;;  %v255_v47 = vrot.slane %v215_v33, 3  ;;  %v763_v57 = vsel %vm5241_vm2, %v756_v39, %v761_v41  ;;  %v771_v61 = vsel %vm5241_vm2, %v764_v44, %v769_v46  ;;  %v488_v11 = vrot.slane %v486_v60, 1  ;;  %v425_v46 = vld [vmem:[%s5218_s21 + $0x44] sm:$0x3] }
  0x41   : > { %971 = vst [vmem:[#allocation1 + $0x7] ss:$9 sm:$0xff] %v708_v51  ;;  %v364_v51 = vsel %vm273_vm12, %v5392_v40, %v253_v48  ;;  %v444_v48 = vrot.slane %v424_v45, 3  ;;  %v257_v41 = vrot.slane %v217_v31, 3 }
  0x42   : > { %v5465_v4 = vrot.slane %v364_v51, 3  ;;  %v373_v40 = vsel %vm265_vm8, %v215_v33, %v255_v47  ;;  %v376_v5 = vsel %vm269_vm11, %v215_v33, %v255_v47  ;;  %v379_v8 = vsel %vm273_vm12, %v215_v33, %v255_v47 }
  0x43   : > { %v5472_v12 = vsel %vm261_vm13, %v215_v33, %v255_v47  ;;  %v5474_v18 = vrot.slane %v373_v40, 1  ;;  %v5476_v19 = vrot.slane %v376_v5, 2  ;;  %v492_v23 = vsel %vm265_vm8, %v424_v45, %v444_v48 }
  0x44   : > { %v5482_v32 = vrot.slane %v379_v8, 3  ;;  %v780_v27 = vshrl.u32 %v5465_v4, 16  ;;  %v787_v33 = vshrl.u32 %v485_v9, 16  ;;  %v792_v35 = vshll.u32 %v488_v11, 16 }
  0x45   : > { %v491_v36 = vsel %vm261_vm13, %v424_v45, %v444_v48  ;;  %v800_v39 = vshll.u32 %v5474_v18, 16  ;;  %v808_v44 = vshll.u32 %v5476_v19, 16  ;;  %v388_v8 = vsel %vm265_vm8, %v217_v31, %v257_v41 }
  0x46   : > { %v816_v51 = vshll.u32 %v5482_v32, 16  ;;  %v819_v60 = vshrl.u32 %v5482_v32, 16  ;;  %v826_v48 = vshrl.u32 %v491_v36, 16 }
  0x48   : > { %v972_v37 = vld [vmem:[#allocation1] sm:$0xff] }
  0x49   : > { %4779 = vmatmul.msk.bf16.vlgmr.msra.gmra.mxu1 %vm1035_vm3, %v972_v37  ;;  %974 = vst [vmem:[#allocation1] ss:$9 sm:$0xff] %v716_v30  ;;  %v777_v30 = vshll.u32 %v5465_v4, 16  ;;  %v494_v37 = vrot.slane %v492_v23, 1 }
  0x4a   : > { %976 = vst [vmem:[#allocation1 + $0x1] ss:$9 sm:$0xff] %v724_v34  ;;  %v784_v34 = vshll.u32 %v485_v9, 16  ;;  %v445_v9 = vrot.slane %v425_v46, 3 }
  0x4b   : > { %978 = vst [vmem:[#allocation1 + $0x2] ss:$9 sm:$0xff] %v732_v38  ;;  %v795_v38 = vshrl.u32 %v5472_v12, 16  ;;  %v779_v42 = vsel %vm5241_vm2, %v772_v24, %v777_v30  ;;  %v831_v5 = vshll.u32 %v494_v37, 16  ;;  %v391_v24 = vsel %vm269_vm11, %v217_v31, %v257_v41 }
  0x4c   : > { %980 = vst [vmem:[#allocation1 + $0x3] ss:$9 sm:$0xff] %v740_v43  ;;  %v803_v43 = vshrl.u32 %v5474_v18, 16  ;;  %v786_v47 = vsel %vm5241_vm2, %v780_v27, %v784_v34  ;;  %v394_v27 = vsel %vm273_vm12, %v217_v31, %v257_v41  ;;  %v5520_v37 = vrot.slane %v391_v24, 2 }
  0x4d   : > { %982 = vst [vmem:[#allocation1 + $0x4] ss:$9 sm:$0xff] %v747_v50  ;;  %v811_v50 = vshrl.u32 %v5476_v19, 16  ;;  %v802_v40 = vsel %vm5241_vm2, %v795_v38, %v800_v39  ;;  %v498_v38 = vsel %vm265_vm8, %v425_v46, %v445_v9  ;;  %v5523_v39 = vrot.slane %v394_v27, 3 }
  0x4e   : > { %984 = vst [vmem:[#allocation1 + $0x5] ss:$9 sm:$0xff] %v755_v53  ;;  %v219_v53 = vld [vmem:[%s5218_s21 + $0x48] sm:$0xf]  ;;  %v810_v11 = vsel %vm5241_vm2, %v803_v43, %v808_v44 }
  0x4f   : > { %986 = vst [vmem:[#allocation1 + $0x6] ss:$9 sm:$0xff] %v763_v57  ;;  %v794_v57 = vsel %vm5241_vm2, %v787_v33, %v792_v35  ;;  %v259_v23 = vrot.slane %v219_v53, 3  ;;  %v818_v30 = vsel %vm5241_vm2, %v811_v50, %v816_v51  ;;  %v5513_v33 = vrot.slane %v388_v8, 1 }
  0x50   : > { %988 = vst [vmem:[#allocation1 + $0x7] ss:$9 sm:$0xff] %v771_v61  ;;  %v823_v61 = vshll.u32 %v491_v36, 16  ;;  %v833_v35 = vsel %vm5241_vm2, %v826_v48, %v831_v5  ;;  %v5518_v36 = vsel %vm261_vm13, %v217_v31, %v257_v41  ;;  %v500_v31 = vrot.slane %v498_v38, 1 }
  0x51   : > { %v406_v43 = vsel %vm269_vm11, %v219_v53, %v259_v23  ;;  %v409_v44 = vsel %vm273_vm12, %v219_v53, %v259_v23  ;;  %v834_v41 = vshrl.u32 %v5518_v36, 16  ;;  %v839_v50 = vshll.u32 %v5513_v33, 16 }
  0x52   : > { %v825_v34 = vsel %vm5241_vm2, %v819_v60, %v823_v61  ;;  %v5536_v60 = vsel %vm261_vm13, %v219_v53, %v259_v23  ;;  %v5538_v61 = vrot.slane %v406_v43, 2  ;;  %v850_v48 = vshrl.u32 %v5520_v37, 16 }
  0x53   : > { %v5543_v5 = vrot.slane %v409_v44, 3  ;;  %v858_v8 = vshrl.u32 %v5523_v39, 16 }
  0x57   : > { %v989_v45 = vld [vmem:[#allocation1] sm:$0xff] }
  0x58   : > { %991 = vst [vmem:[#allocation1] ss:$9 sm:$0xff] %v779_v42  ;;  %v403_v42 = vsel %vm265_vm8, %v219_v53, %v259_v23  ;;  %v873_v23 = vshrl.u32 %v5536_v60, 16 }
  0x59   : > { %4780 = vmatmul.msk.bf16.gmra.mxu1 %vm1035_vm3, %v989_v45  ;;  %993 = vst [vmem:[#allocation1 + $0x1] ss:$9 sm:$0xff] %v786_v47  ;;  %v497_v47 = vsel %vm261_vm13, %v425_v46, %v445_v9  ;;  %v5531_v51 = vrot.slane %v403_v42, 1  ;;  %v842_v45 = vshrl.u32 %v5513_v33, 16  ;;  %v855_v46 = vshll.u32 %v5523_v39, 16 }
  0x5a   : > { %995 = vst [vmem:[#allocation1 + $0x2] ss:$9 sm:$0xff] %v794_v57  ;;  %v847_v57 = vshll.u32 %v5520_v37, 16  ;;  %v862_v9 = vshll.u32 %v497_v47, 16  ;;  %v865_v24 = vshrl.u32 %v497_v47, 16  ;;  %v886_v42 = vshll.u32 %v5538_v61, 16 }
  0x5b   : > { %997 = vst [vmem:[#allocation1 + $0x3] ss:$9 sm:$0xff] %v802_v40  ;;  %v426_v40 = vld [vmem:[%s5218_s21 + $0x4c] sm:$0x3]  ;;  %v881_v38 = vshrl.u32 %v5531_v51, 16  ;;  %v889_v47 = vshrl.u32 %v5538_v61, 16 }
  0x5c   : > { %999 = vst [vmem:[#allocation1 + $0x4] ss:$9 sm:$0xff] %v810_v11  ;;  %v841_v11 = vsel %vm5241_vm2, %v834_v41, %v839_v50  ;;  %v446_v27 = vrot.slane %v426_v40, 3  ;;  %v849_v53 = vsel %vm5241_vm2, %v842_v45, %v847_v57  ;;  %v864_v44 = vsel %vm5241_vm2, %v858_v8, %v862_v9 }
  0x5d   : > { %1001 = vst [vmem:[#allocation1 + $0x5] ss:$9 sm:$0xff] %v818_v30  ;;  %v870_v30 = vshll.u32 %v500_v31, 16  ;;  %v894_v31 = vshll.u32 %v5543_v5, 16  ;;  %v888_v57 = vsel %vm5241_vm2, %v881_v38, %v886_v42  ;;  %v897_v9 = vshrl.u32 %v5543_v5, 16  ;;  %v5110_v42 = vld [vmem:[%s7072_s1 + $0x10] sm:$0xff] }
  0x5e   : > { %1003 = vst [vmem:[#allocation1 + $0x6] ss:$9 sm:$0xff] %v825_v34  ;;  %v878_v34 = vshll.u32 %v5531_v51, 16  ;;  %v504_v50 = vsel %vm265_vm8, %v426_v40, %v446_v27  ;;  %1429 = vmatpush.bf16.msrb.mxu2 %v5110_v42 }
  0x5f   : > { %1005 = vst [vmem:[#allocation1 + $0x7] ss:$9 sm:$0xff] %v833_v35  ;;  %v857_v35 = vsel %vm5241_vm2, %v850_v48, %v855_v46  ;;  %v872_v41 = vsel %vm5241_vm2, %v865_v24, %v870_v30  ;;  %v896_v48 = vsel %vm5241_vm2, %v889_v47, %v894_v31  ;;  %v503_v46 = vsel %vm261_vm13, %v426_v40, %v446_v27  ;;  %v202_v40 = vld [vmem:[%s5218_s21 + $0x4] sm:$0x1] }
  0x60   : > { %v880_v45 = vsel %vm5241_vm2, %v873_v23, %v878_v34  ;;  %v506_v8 = vrot.slane %v504_v50, 1  ;;  %v904_v24 = vshrl.u32 %v503_v46, 16  ;;  %v242_v27 = vrot.slane %v202_v40, 3 }
  0x62   : > { %v909_v30 = vshll.u32 %v506_v8, 16  ;;  %v279_v38 = vsel %vm261_vm13, %v202_v40, %v242_v27 }
  0x64   : > { %v911_v23 = vsel %vm5241_vm2, %v904_v24, %v909_v30  ;;  %v1226_v24 = vld [vmem:[%s5218_s21 + $0x18] sm:$0xe]  ;;  %v1229_v30 = vld [vmem:[%s5218_s21 + $0x24] sm:$0x3] }
  0x66   : > { %v1006_v43 = vld [vmem:[#allocation1] sm:$0xff] }
  0x67   : > { %1008 = vst [vmem:[#allocation1] ss:$9 sm:$0xff] %v841_v11  ;;  %4781 = vmatmul.msk.bf16.vlgmr.msra.gmra.mxu2 %vm1035_vm3, %v1006_v43  ;;  %v901_v11 = vshll.u32 %v503_v46, 16 }
  0x68   : > { %1010 = vst [vmem:[#allocation1 + $0x1] ss:$9 sm:$0xff] %v849_v53 }
  0x69   : > { %1012 = vst [vmem:[#allocation1 + $0x2] ss:$9 sm:$0xff] %v857_v35  ;;  %v903_v53 = vsel %vm5241_vm2, %v897_v9, %v901_v11 }
  0x6a   : > { %1014 = vst [vmem:[#allocation1 + $0x3] ss:$9 sm:$0xff] %v864_v44 }
  0x6b   : > { %1016 = vst [vmem:[#allocation1 + $0x4] ss:$9 sm:$0xff] %v872_v41 }
  0x6c   : > { %1018 = vst [vmem:[#allocation1 + $0x5] ss:$9 sm:$0xff] %v880_v45  ;;  %v1224_v45 = vld [vmem:[%s5218_s21 + $0x10] sm:$0xe] }
  0x6d   : > { %1020 = vst [vmem:[#allocation1 + $0x6] ss:$9 sm:$0xff] %v888_v57  ;;  %v1227_v57 = vld [vmem:[%s5218_s21 + $0x1c] sm:$0x3] }
  0x6e   : > { %1022 = vst [vmem:[#allocation1 + $0x7] ss:$9 sm:$0xff] %v896_v48 }
  0x75   : > { %v1023_v34 = vld [vmem:[#allocation1] sm:$0xff] }
  0x76   : > { %1025 = vst [vmem:[#allocation1] ss:$9 sm:$0xff] %v903_v53  ;;  %4782 = vmatmul.msk.bf16.vlgmr.msra.gmra.mxu3 %vm1035_vm3, %v1023_v34 }
  0x77   : > { %1027 = vst [vmem:[#allocation1 + $0x1] ss:$9 sm:$0xff] %v911_v23 }
  0x7e   : > { %v1028_v35 = vld [vmem:[#allocation1] sm:$0xff] }
  0x7f   : > { %1093 = vst [vmem:[#allocation1] ss:$9 sm:$0xff] %v5229_v10  ;;  %v204_v10 = vld [vmem:[%s5218_s21 + $0xc] sm:$0x1] }
  0x80   : > { %1095 = vst [vmem:[#allocation1 + $0x1] ss:$9 sm:$0xff] %v5224_v7  ;;  %v206_v7 = vld [vmem:[%s5218_s21 + $0x14] sm:$0x1]  ;;  %v244_v43 = vrot.slane %v204_v10, 3 }
  0x81   : > { %1097 = vst [vmem:[#allocation1 + $0x2] ss:$9 sm:$0xff] %v5232_v13 }
  0x82   : > { %1099 = vst [vmem:[#allocation1 + $0x3] ss:$9 sm:$0xff] %v5234_v14  ;;  %v246_v14 = vrot.slane %v206_v7, 3 }
  0x83   : > { %1101 = vst [vmem:[#allocation1 + $0x4] ss:$9 sm:$0xff] %v279_v38  ;;  %v1231_v38 = vld [vmem:[%s5218_s21 + $0x2c] sm:$0x3] }
  0x84   : > { %1103 = vst [vmem:[#allocation1 + $0x5] ss:$9 sm:$0xff] %v5248_v25  ;;  %v294_v25 = vsel %vm261_vm13, %v204_v10, %v244_v43 }
  0x85   : > { %1105 = vst [vmem:[#allocation1 + $0x6] ss:$9 sm:$0xff] %v5250_v26  ;;  %v309_v26 = vsel %vm261_vm13, %v206_v7, %v246_v14  ;;  %v1230_v14 = vld [vmem:[%s5218_s21 + $0x28] sm:$0xe] }
  0x86   : > { %1107 = vst [vmem:[#allocation1 + $0x7] ss:$9 sm:$0xff] %v5253_v28  ;;  %4783 = vmatmul.msk.bf16.gmra.mxu3 %vm1035_vm3, %v1028_v35  ;;  %v208_v28 = vld [vmem:[%s5218_s21 + $0x1c] sm:$0x1]  ;;  %v1228_v35 = vld [vmem:[%s5218_s21 + $0x20] sm:$0xe] }
  0x8d   : > { %v1108_v13 = vld [vmem:[#allocation1] sm:$0xff] }
  0x8e   : > { %4788 = vmatmul.msk.bf16.vlgmr.msrb.gmra.mxu1 %vm1035_vm3, %v1108_v13  ;;  %1109 = vst [vmem:[#allocation1] ss:$9 sm:$0xff] %v5255_v29 }
  0x8f   : > { %1111 = vst [vmem:[#allocation1 + $0x2] ss:$9 sm:$0xff] %v5297_v0  ;;  %v248_v0 = vrot.slane %v208_v28, 3 }
  0x90   : > { %1112 = vst [vmem:[#allocation1 + $0x3] ss:$9 sm:$0xff] %v5294_v63 }
  0x91   : > { %1113 = vst [vmem:[#allocation1 + $0x4] ss:$9 sm:$0xff] %v5299_v1  ;;  %v324_v63 = vsel %vm261_vm13, %v208_v28, %v248_v0  ;;  %v210_v1 = vld [vmem:[%s5218_s21 + $0x24] sm:$0x1] }
  0x92   : > { %1114 = vst [vmem:[#allocation1 + $0x5] ss:$9 sm:$0xff] %v5302_v3  ;;  %v250_v3 = vrot.slane %v210_v1, 3 }
  0x93   : > { %1116 = vst [vmem:[#allocation1 + $0x7] ss:$9 sm:$0xff] %v5316_v21 }
  0x94   : > { %1110 = vst [vmem:[#allocation1 + $0x1] ss:$9 sm:$0xff] %v294_v25  ;;  %v339_v21 = vsel %vm261_vm13, %v210_v1, %v250_v3  ;;  %v1233_v25 = vld [vmem:[%s5218_s21 + $0x34] sm:$0x3]  ;;  %v1232_v1 = vld [vmem:[%s5218_s21 + $0x30] sm:$0xe] }
  0x95   : > { %1115 = vst [vmem:[#allocation1 + $0x6] ss:$9 sm:$0xff] %v309_v26  ;;  %v1235_v3 = vld [vmem:[%s5218_s21 + $0x3c] sm:$0x3] }
  0x9c   : > { %v1117_v29 = vld [vmem:[#allocation1] sm:$0xff] }
  0x9d   : > { %1118 = vst [vmem:[#allocation1] ss:$9 sm:$0xff] %v5310_v17  ;;  %v212_v17 = vld [vmem:[%s5218_s21 + $0x2c] sm:$0x1] }
  0x9e   : > { %4789 = vmatmul.msk.bf16.gmra.mxu1 %vm1035_vm3, %v1117_v29  ;;  %1119 = vst [vmem:[#allocation1 + $0x1] ss:$9 sm:$0xff] %v5344_v49  ;;  %v252_v49 = vrot.slane %v212_v17, 3 }
  0x9f   : > { %1120 = vst [vmem:[#allocation1 + $0x2] ss:$9 sm:$0xff] %v5349_v52 }
  0xa0   : > { %1122 = vst [vmem:[#allocation1 + $0x4] ss:$9 sm:$0xff] %v5361_v62  ;;  %v214_v62 = vld [vmem:[%s5218_s21 + $0x34] sm:$0x1] }
  0xa1   : > { %1123 = vst [vmem:[#allocation1 + $0x5] ss:$9 sm:$0xff] %v5356_v58  ;;  %v354_v58 = vsel %vm261_vm13, %v212_v17, %v252_v49 }
  0xa2   : > { %1124 = vst [vmem:[#allocation1 + $0x6] ss:$9 sm:$0xff] %v5363_v2  ;;  %v254_v2 = vrot.slane %v214_v62, 3 }
  0xa3   : > { %1125 = vst [vmem:[#allocation1 + $0x7] ss:$9 sm:$0xff] %v5367_v6  ;;  %v216_v6 = vld [vmem:[%s5218_s21 + $0x3c] sm:$0x1] }
  0xa4   : > { %1121 = vst [vmem:[#allocation1 + $0x3] ss:$9 sm:$0xff] %v324_v63  ;;  %v256_v47 = vrot.slane %v216_v6, 3 }
  0xab   : > { %v1126_v52 = vld [vmem:[#allocation1] sm:$0xff] }
  0xac   : > { %1127 = vst [vmem:[#allocation1] ss:$9 sm:$0xff] %v339_v21 }
  0xad   : > { %1128 = vst [vmem:[#allocation1 + $0x1] ss:$9 sm:$0xff] %v5411_v55  ;;  %v369_v55 = vsel %vm261_vm13, %v214_v62, %v254_v2  ;;  %v1234_v62 = vld [vmem:[%s5218_s21 + $0x38] sm:$0xe]  ;;  %v1237_v2 = vld [vmem:[%s5218_s21 + $0x44] sm:$0x3] }
  0xae   : > { %1129 = vst [vmem:[#allocation1 + $0x2] ss:$9 sm:$0xff] %v5408_v54  ;;  %4790 = vmatmul.msk.bf16.gmra.mxu1 %vm1035_vm3, %v1126_v52  ;;  %v384_v54 = vsel %vm261_vm13, %v216_v6, %v256_v47 }
  0xaf   : > { %1130 = vst [vmem:[#allocation1 + $0x3] ss:$9 sm:$0xff] %v5413_v56  ;;  %v218_v56 = vld [vmem:[%s5218_s21 + $0x44] sm:$0x1] }
  0xb0   : > { %1131 = vst [vmem:[#allocation1 + $0x4] ss:$9 sm:$0xff] %v5416_v59  ;;  %v258_v59 = vrot.slane %v218_v56, 3 }
  0xb1   : > { %1132 = vst [vmem:[#allocation1 + $0x5] ss:$9 sm:$0xff] %v354_v58 }
  0xb2   : > { %1133 = vst [vmem:[#allocation1 + $0x6] ss:$9 sm:$0xff] %v5431_v22  ;;  %v399_v22 = vsel %vm261_vm13, %v218_v56, %v258_v59  ;;  %v1236_v56 = vld [vmem:[%s5218_s21 + $0x40] sm:$0xe]  ;;  %v1239_v59 = vld [vmem:[%s5218_s21 + $0x4c] sm:$0x3] }
  0xb3   : > { %1134 = vst [vmem:[#allocation1 + $0x7] ss:$9 sm:$0xff] %v5425_v15 }
  0xba   : > { %v1135_v44 = vld [vmem:[#allocation1] sm:$0xff] }
  0xbb   : > { %1136 = vst [vmem:[#allocation1] ss:$9 sm:$0xff] %v5433_v16  ;;  %v220_v16 = vld [vmem:[%s5218_s21 + $0x4c] sm:$0x1] }
  0xbc   : > { %1137 = vst [vmem:[#allocation1 + $0x1] ss:$9 sm:$0xff] %v5465_v4  ;;  %v260_v4 = vrot.slane %v220_v16, 3 }
  0xbd   : > { %1138 = vst [vmem:[#allocation1 + $0x2] ss:$9 sm:$0xff] %v369_v55 }
  0xbe   : > { %1139 = vst [vmem:[#allocation1 + $0x3] ss:$9 sm:$0xff] %v5472_v12  ;;  %4791 = vmatmul.msk.bf16.gmra.mxu1 %vm1035_vm3, %v1135_v44  ;;  %v414_v12 = vsel %vm261_vm13, %v220_v16, %v260_v4 }
  0xbf   : > { %1140 = vst [vmem:[#allocation1 + $0x4] ss:$9 sm:$0xff] %v5474_v18 }
  0xc0   : > { %1141 = vst [vmem:[#allocation1 + $0x5] ss:$9 sm:$0xff] %v5476_v19  ;;  %v1221_v19 = vld [vmem:[%s5218_s21 + $0x4] sm:$0x3] }
  0xc1   : > { %1142 = vst [vmem:[#allocation1 + $0x6] ss:$9 sm:$0xff] %v5482_v32  ;;  %v1220_v32 = vld [vmem:[%s5218_s21] sm:$0xe] }
  0xc2   : > { %1143 = vst [vmem:[#allocation1 + $0x7] ss:$9 sm:$0xff] %v384_v54 }
  0xc9   : > { %v1144_v15 = vld [vmem:[#allocation1] sm:$0xff] }
  0xca   : > { %1145 = vst [vmem:[#allocation1] ss:$9 sm:$0xff] %v5518_v36 }
  0xcb   : > { %1146 = vst [vmem:[#allocation1 + $0x1] ss:$9 sm:$0xff] %v5513_v33  ;;  %v1223_v33 = vld [vmem:[%s5218_s21 + $0xc] sm:$0x3] }
  0xcc   : > { %1147 = vst [vmem:[#allocation1 + $0x2] ss:$9 sm:$0xff] %v5520_v37 }
  0xcd   : > { %1148 = vst [vmem:[#allocation1 + $0x3] ss:$9 sm:$0xff] %v5523_v39 }
  0xce   : > { %1149 = vst [vmem:[#allocation1 + $0x4] ss:$9 sm:$0xff] %v399_v22  ;;  %4792 = vmatmul.msk.bf16.gmra.mxu1 %vm1035_vm3, %v1144_v15 }
  0xcf   : > { %1150 = vst [vmem:[#allocation1 + $0x5] ss:$9 sm:$0xff] %v5536_v60  ;;  %v1225_v60 = vld [vmem:[%s5218_s21 + $0x14] sm:$0x3] }
  0xd0   : > { %1151 = vst [vmem:[#allocation1 + $0x6] ss:$9 sm:$0xff] %v5531_v51  ;;  %v1222_v51 = vld [vmem:[%s5218_s21 + $0x8] sm:$0xe] }
  0xd1   : > { %1152 = vst [vmem:[#allocation1 + $0x7] ss:$9 sm:$0xff] %v5538_v61 }
  0xd8   : > { %v1153_v18 = vld [vmem:[#allocation1] sm:$0xff] }
  0xd9   : > { %1154 = vst [vmem:[#allocation1] ss:$9 sm:$0xff] %v5543_v5 }
  0xda   : > { %1155 = vst [vmem:[#allocation1 + $0x1] ss:$9 sm:$0xff] %v414_v12 }
  0xdb   : > { %1243 = vst [vmem:[#allocation1 + $0x20] sm:$0xff] %v1221_v19 }
  0xde   : > { %4793 = vmatmul.msk.bf16.gmra.mxu1 %vm1035_vm3, %v1153_v18  ;;  %v1238_v18 = vld [vmem:[%s5218_s21 + $0x48] sm:$0xe] }
  0xe1   : > { %v1156_v36 = vld [vmem:[#allocation1] sm:$0xff] }
  0xe2   : > { %1241 = vst [vmem:[#allocation1] sm:$0xff] %v1220_v32  ;;  %v5650_v37 = vld [vmem:[#allocation1 + $0x20] ss:$4 sm:$0xff]  ;;  %v5652_v39 = vld [vmem:[#allocation1 + $0x21] ss:$4 sm:$0xff] }
  0xe3   : > { %1257 = vst [vmem:[#allocation1 + $0x20] sm:$0xff] %v1223_v33 }
  0xe9   : > { %v5656_v61 = vld [vmem:[#allocation1 + $0x1] ss:$4 sm:$0xff]  ;;  %v5658_v5 = vld [vmem:[#allocation1 + $0x2] ss:$4 sm:$0xff]  ;;  %v5660_v31 = vld [vmem:[#allocation1 + $0x3] ss:$4 sm:$0xff] }
  0xea   : > { %1255 = vst [vmem:[#allocation1] sm:$0xff] %v1222_v51  ;;  %v5662_v41 = vld [vmem:[#allocation1 + $0x20] ss:$4 sm:$0xff]  ;;  %v5664_v50 = vld [vmem:[#allocation1 + $0x21] ss:$4 sm:$0xff] }
  0xeb   : > { %1266 = vst [vmem:[#allocation1 + $0x20] sm:$0xff] %v1225_v60 }
  0xee   : > { %4794 = vmatmul.msk.bf16.gmra.mxu1 %vm1035_vm3, %v1156_v36 }
  0xf1   : > { %v5669_v48 = vld [vmem:[#allocation1 + $0x1] ss:$4 sm:$0xff]  ;;  %v5671_v46 = vld [vmem:[#allocation1 + $0x2] ss:$4 sm:$0xff]  ;;  %v5673_v8 = vld [vmem:[#allocation1 + $0x3] ss:$4 sm:$0xff] }
  0xf2   : > { %1264 = vst [vmem:[#allocation1] sm:$0xff] %v1224_v45  ;;  %v5675_v9 = vld [vmem:[#allocation1 + $0x20] ss:$4 sm:$0xff]  ;;  %v5677_v11 = vld [vmem:[#allocation1 + $0x21] ss:$4 sm:$0xff] }
  0xf3   : > { %1275 = vst [vmem:[#allocation1 + $0x20] sm:$0xff] %v1227_v57 }
  0xf9   : > { %v5681_v53 = vld [vmem:[#allocation1 + $0x1] ss:$4 sm:$0xff]  ;;  %v5683_v23 = vld [vmem:[#allocation1 + $0x2] ss:$4 sm:$0xff]  ;;  %v5685_v34 = vld [vmem:[#allocation1 + $0x3] ss:$4 sm:$0xff] }
  0xfa   : > { %1273 = vst [vmem:[#allocation1] sm:$0xff] %v1226_v24  ;;  %v5687_v40 = vld [vmem:[#allocation1 + $0x20] ss:$4 sm:$0xff]  ;;  %v5689_v27 = vld [vmem:[#allocation1 + $0x21] ss:$4 sm:$0xff] }
  0xfb   : > { %1284 = vst [vmem:[#allocation1 + $0x20] sm:$0xff] %v1229_v30 }
 0x101   : > { %v5693_v42 = vld [vmem:[#allocation1 + $0x1] ss:$4 sm:$0xff]  ;;  %v5695_v10 = vld [vmem:[#allocation1 + $0x2] ss:$4 sm:$0xff]  ;;  %v5697_v7 = vld [vmem:[#allocation1 + $0x3] ss:$4 sm:$0xff] }
 0x102   : > { %1282 = vst [vmem:[#allocation1] sm:$0xff] %v1228_v35  ;;  %v5699_v13 = vld [vmem:[#allocation1 + $0x20] ss:$4 sm:$0xff]  ;;  %v5701_v43 = vld [vmem:[#allocation1 + $0x21] ss:$4 sm:$0xff] }
 0x103   : > { %1293 = vst [vmem:[#allocation1 + $0x20] sm:$0xff] %v1231_v38 }
 0x109   : > { %v5705_v26 = vld [vmem:[#allocation1 + $0x1] ss:$4 sm:$0xff]  ;;  %v5707_v28 = vld [vmem:[#allocation1 + $0x2] ss:$4 sm:$0xff]  ;;  %v5709_v29 = vld [vmem:[#allocation1 + $0x3] ss:$4 sm:$0xff] }
 0x10a   : > { %1291 = vst [vmem:[#allocation1] sm:$0xff] %v1230_v14  ;;  %v5711_v0 = vld [vmem:[#allocation1 + $0x20] ss:$4 sm:$0xff]  ;;  %v5713_v63 = vld [vmem:[#allocation1 + $0x21] ss:$4 sm:$0xff] }
 0x10b   : > { %1302 = vst [vmem:[#allocation1 + $0x20] sm:$0xff] %v1233_v25 }
 0x111   : > { %v5717_v17 = vld [vmem:[#allocation1 + $0x1] ss:$4 sm:$0xff]  ;;  %v5719_v21 = vld [vmem:[#allocation1 + $0x2] ss:$4 sm:$0xff]  ;;  %v5721_v49 = vld [vmem:[#allocation1 + $0x3] ss:$4 sm:$0xff] }
 0x112   : > { %1300 = vst [vmem:[#allocation1] sm:$0xff] %v1232_v1  ;;  %v5723_v52 = vld [vmem:[#allocation1 + $0x20] ss:$4 sm:$0xff]  ;;  %v5725_v58 = vld [vmem:[#allocation1 + $0x21] ss:$4 sm:$0xff] }
 0x113   : > { %1311 = vst [vmem:[#allocation1 + $0x20] sm:$0xff] %v1235_v3 }
 0x119   : > { %v1303_v6 = vld [vmem:[#allocation1 + $0x1] ss:$4 sm:$0xff]  ;;  %v1304_v55 = vld [vmem:[#allocation1 + $0x2] ss:$4 sm:$0xff]  ;;  %v5729_v44 = vld [vmem:[#allocation1 + $0x3] ss:$4 sm:$0xff] }
 0x11a   : > { %1309 = vst [vmem:[#allocation1] sm:$0xff] %v1234_v62  ;;  %v5731_v47 = vld [vmem:[#allocation1 + $0x20] ss:$4 sm:$0xff]  ;;  %v5733_v54 = vld [vmem:[#allocation1 + $0x21] ss:$4 sm:$0xff] }
 0x11b   : > { %1320 = vst [vmem:[#allocation1 + $0x20] sm:$0xff] %v1237_v2 }
 0x121   : > { %v1312_v15 = vld [vmem:[#allocation1 + $0x1] ss:$4 sm:$0xff]  ;;  %v1313_v22 = vld [vmem:[#allocation1 + $0x2] ss:$4 sm:$0xff]  ;;  %v1314_v16 = vld [vmem:[#allocation1 + $0x3] ss:$4 sm:$0xff] }
 0x122   : > { %1318 = vst [vmem:[#allocation1] sm:$0xff] %v1236_v56  ;;  %v5737_v4 = vld [vmem:[#allocation1 + $0x20] ss:$4 sm:$0xff]  ;;  %v5739_v12 = vld [vmem:[#allocation1 + $0x21] ss:$4 sm:$0xff] }
 0x123   : > { %1329 = vst [vmem:[#allocation1 + $0x20] sm:$0xff] %v1239_v59 }
 0x129   : > { %v1321_v19 = vld [vmem:[#allocation1 + $0x1] ss:$4 sm:$0xff]  ;;  %v1322_v32 = vld [vmem:[#allocation1 + $0x2] ss:$4 sm:$0xff]  ;;  %v1323_v33 = vld [vmem:[#allocation1 + $0x3] ss:$4 sm:$0xff] }
 0x12a   : > { %1327 = vst [vmem:[#allocation1] sm:$0xff] %v1238_v18  ;;  %v5742_v36 = vld [vmem:[#allocation1 + $0x20] ss:$4 sm:$0xff]  ;;  %v5744_v51 = vld [vmem:[#allocation1 + $0x21] ss:$4 sm:$0xff] }
 0x131   : > { %v1330_v60 = vld [vmem:[#allocation1 + $0x1] ss:$4 sm:$0xff]  ;;  %v1331_v45 = vld [vmem:[#allocation1 + $0x2] ss:$4 sm:$0xff]  ;;  %v1332_v57 = vld [vmem:[#allocation1 + $0x3] ss:$4 sm:$0xff] }
 0x132   : > { %1338 = vst [vmem:[#allocation1] ss:$9 sm:$0xff] %v5656_v61  ;;  %v5111_v61 = vld [vmem:[%s7072_s1 + $0x18] sm:$0xff] }
 0x133   : > { %1340 = vst [vmem:[#allocation1 + $0x1] ss:$9 sm:$0xff] %v5658_v5  ;;  %1816 = vmatpush.bf16.msrb.mxu3 %v5111_v61 }
 0x134   : > { %1342 = vst [vmem:[#allocation1 + $0x2] ss:$9 sm:$0xff] %v5660_v31 }
 0x135   : > { %1344 = vst [vmem:[#allocation1 + $0x3] ss:$9 sm:$0xff] %v5650_v37 }
 0x136   : > { %1346 = vst [vmem:[#allocation1 + $0x4] ss:$9 sm:$0xff] %v5652_v39 }
 0x137   : > { %1348 = vst [vmem:[#allocation1 + $0x5] ss:$9 sm:$0xff] %v5669_v48 }
 0x138   : > { %1350 = vst [vmem:[#allocation1 + $0x6] ss:$9 sm:$0xff] %v5671_v46  ;;  %v4810_v46 = vld [vmem:[%s5218_s21 + $0x10] sm:$0xf] }
 0x139   : > { %1352 = vst [vmem:[#allocation1 + $0x7] ss:$9 sm:$0xff] %v5673_v8  ;;  %v4809_v8 = vld [vmem:[%s5218_s21 + $0xc] sm:$0x1] }
 0x140   : > { %v1353_v24 = vld [vmem:[#allocation1] sm:$0xff] }
 0x141   : > { %1354 = vst [vmem:[#allocation1] ss:$9 sm:$0xff] %v5662_v41  ;;  %4801 = vmatmul.msk.bf16.vlgmr.msrb.gmra.mxu2 %vm1035_vm3, %v1353_v24  ;;  %v4808_v41 = vld [vmem:[%s5218_s21 + $0x8] sm:$0xf] }
 0x142   : > { %1355 = vst [vmem:[#allocation1 + $0x1] ss:$9 sm:$0xff] %v5664_v50  ;;  %v1522_v48 = vrot.slane %v4808_v41, 3 }
 0x143   : > { %1356 = vst [vmem:[#allocation1 + $0x2] ss:$9 sm:$0xff] %v5681_v53 }
 0x144   : > { %1357 = vst [vmem:[#allocation1 + $0x3] ss:$9 sm:$0xff] %v5683_v23  ;;  %v1548_v30 = vsel %vm269_vm11, %v4808_v41, %v1522_v48  ;;  %v1551_v53 = vsel %vm273_vm12, %v4808_v41, %v1522_v48  ;;  %v1523_v23 = vrot.slane %v4809_v8, 3 }
 0x145   : > { %1358 = vst [vmem:[#allocation1 + $0x4] ss:$9 sm:$0xff] %v5685_v34  ;;  %v1544_v34 = vsel %vm261_vm13, %v4808_v41, %v1522_v48  ;;  %v1553_v38 = vrot.slane %v1551_v53, 3 }
 0x146   : > { %1359 = vst [vmem:[#allocation1 + $0x5] ss:$9 sm:$0xff] %v5675_v9  ;;  %v1545_v9 = vsel %vm265_vm8, %v4808_v41, %v1522_v48 }
 0x147   : > { %1360 = vst [vmem:[#allocation1 + $0x6] ss:$9 sm:$0xff] %v5677_v11  ;;  %v1524_v11 = vrot.slane %v4810_v46, 3 }
 0x148   : > { %1361 = vst [vmem:[#allocation1 + $0x7] ss:$9 sm:$0xff] %v5693_v42 }
 0x149   : > { %v1560_v42 = vsel %vm265_vm8, %v4810_v46, %v1524_v11  ;;  %v1559_v14 = vsel %vm261_vm13, %v4810_v46, %v1524_v11 }
 0x14a   : > { %v1562_v25 = vrot.slane %v1560_v42, 1 }
 0x14f   : > { %v1362_v37 = vld [vmem:[#allocation1] sm:$0xff] }
 0x150   : > { %1363 = vst [vmem:[#allocation1] ss:$9 sm:$0xff] %v5695_v10  ;;  %v1563_v10 = vsel %vm269_vm11, %v4810_v46, %v1524_v11 }
 0x151   : > { %1364 = vst [vmem:[#allocation1 + $0x1] ss:$9 sm:$0xff] %v5697_v7  ;;  %4802 = vmatmul.msk.bf16.gmra.mxu2 %vm1035_vm3, %v1362_v37  ;;  %v5112_v7 = vld [vmem:[%s7072_s1 + $0x20] sm:$0xff] }
 0x152   : > { %1365 = vst [vmem:[#allocation1 + $0x2] ss:$9 sm:$0xff] %v5687_v40  ;;  %v1547_v40 = vrot.slane %v1545_v9, 1  ;;  %2639 = vmatpush.bf16.msrb.mxu0 %v5112_v7  ;;  %v4819_v9 = vld [vmem:[%s5218_s21 + $0x34] sm:$0x1] }
 0x153   : > { %1366 = vst [vmem:[#allocation1 + $0x3] ss:$9 sm:$0xff] %v5689_v27  ;;  %v1550_v27 = vrot.slane %v1548_v30, 2 }
 0x154   : > { %1367 = vst [vmem:[#allocation1 + $0x4] ss:$9 sm:$0xff] %v5705_v26  ;;  %v1565_v26 = vrot.slane %v1563_v10, 2 }
 0x155   : > { %1368 = vst [vmem:[#allocation1 + $0x5] ss:$9 sm:$0xff] %v5707_v28  ;;  %v4812_v28 = vld [vmem:[%s5218_s21 + $0x18] sm:$0xf] }
 0x156   : > { %1369 = vst [vmem:[#allocation1 + $0x6] ss:$9 sm:$0xff] %v5709_v29  ;;  %v4811_v29 = vld [vmem:[%s5218_s21 + $0x14] sm:$0x1] }
 0x157   : > { %1370 = vst [vmem:[#allocation1 + $0x7] ss:$9 sm:$0xff] %v5699_v13  ;;  %v5113_v13 = vld [vmem:[%s7072_s1 + $0x28] sm:$0xff]  ;;  %v1525_v1 = vrot.slane %v4811_v29, 3 }
 0x158   : > { %2897 = vmatpush.bf16.msra.mxu1 %v5113_v13 }
 0x15e   : > { %v1371_v39 = vld [vmem:[#allocation1] sm:$0xff] }
 0x15f   : > { %1372 = vst [vmem:[#allocation1] ss:$9 sm:$0xff] %v5701_v43  ;;  %v1556_v43 = vsel %vm261_vm13, %v4809_v8, %v1523_v23 }
 0x160   : > { %1373 = vst [vmem:[#allocation1 + $0x1] ss:$9 sm:$0xff] %v5717_v17  ;;  %v4813_v17 = vld [vmem:[%s5218_s21 + $0x1c] sm:$0x1] }
 0x161   : > { %1374 = vst [vmem:[#allocation1 + $0x2] ss:$9 sm:$0xff] %v5719_v21  ;;  %4803 = vmatmul.msk.bf16.gmra.mxu2 %vm1035_vm3, %v1371_v39 }
 0x162   : > { %1375 = vst [vmem:[#allocation1 + $0x3] ss:$9 sm:$0xff] %v5721_v49  ;;  %v4814_v49 = vld [vmem:[%s5218_s21 + $0x20] sm:$0xf] }
 0x163   : > { %1376 = vst [vmem:[#allocation1 + $0x4] ss:$9 sm:$0xff] %v5711_v0  ;;  %v1526_v0 = vrot.slane %v4812_v28, 3 }
 0x164   : > { %1377 = vst [vmem:[#allocation1 + $0x5] ss:$9 sm:$0xff] %v5713_v63  ;;  %v1566_v63 = vsel %vm273_vm12, %v4810_v46, %v1524_v11  ;;  %v4820_v46 = vld [vmem:[%s5218_s21 + $0x38] sm:$0xf] }
 0x165   : > { %1378 = vst [vmem:[#allocation1 + $0x6] ss:$9 sm:$0xff] %v1303_v6  ;;  %v1568_v3 = vrot.slane %v1566_v63, 3  ;;  %v1575_v21 = vsel %vm265_vm8, %v4812_v28, %v1526_v0  ;;  %v1581_v62 = vsel %vm273_vm12, %v4812_v28, %v1526_v0  ;;  %v1527_v6 = vrot.slane %v4813_v17, 3 }
 0x166   : > { %1379 = vst [vmem:[#allocation1 + $0x7] ss:$9 sm:$0xff] %v1304_v55  ;;  %v1574_v55 = vsel %vm261_vm13, %v4812_v28, %v1526_v0  ;;  %v1583_v56 = vrot.slane %v1581_v62, 3  ;;  %v1534_v30 = vrot.slane %v4820_v46, 3 }
 0x167   : > { %v1586_v59 = vsel %vm261_vm13, %v4813_v17, %v1527_v6 }
 0x168   : > { %v1635_v7 = vsel %vm265_vm8, %v4820_v46, %v1534_v30 }
 0x16d   : > { %v1380_v5 = vld [vmem:[#allocation1] sm:$0xff] }
 0x16e   : > { %1381 = vst [vmem:[#allocation1] ss:$9 sm:$0xff] %v5729_v44  ;;  %v1577_v44 = vrot.slane %v1575_v21, 1 }
 0x16f   : > { %1382 = vst [vmem:[#allocation1 + $0x1] ss:$9 sm:$0xff] %v5723_v52  ;;  %v1578_v52 = vsel %vm269_vm11, %v4812_v28, %v1526_v0  ;;  %v1641_v0 = vsel %vm273_vm12, %v4820_v46, %v1534_v30 }
 0x170   : > { %1383 = vst [vmem:[#allocation1 + $0x2] ss:$9 sm:$0xff] %v5725_v58  ;;  %v1571_v58 = vsel %vm261_vm13, %v4811_v29, %v1525_v1  ;;  %v1638_v29 = vsel %vm269_vm11, %v4820_v46, %v1534_v30  ;;  %v1643_v17 = vrot.slane %v1641_v0, 3 }
 0x171   : > { %1384 = vst [vmem:[#allocation1 + $0x3] ss:$9 sm:$0xff] %v1312_v15  ;;  %4804 = vmatmul.msk.bf16.gmra.mxu2 %vm1035_vm3, %v1380_v5  ;;  %v1640_v1 = vrot.slane %v1638_v29, 2  ;;  %v4845_v29 = vld [vmem:[%s5218_s21 + $0x18] sm:$0xf] }
 0x172   : > { %1385 = vst [vmem:[#allocation1 + $0x4] ss:$9 sm:$0xff] %v1313_v22  ;;  %v4816_v22 = vld [vmem:[%s5218_s21 + $0x28] sm:$0xf] }
 0x173   : > { %1386 = vst [vmem:[#allocation1 + $0x5] ss:$9 sm:$0xff] %v1314_v16  ;;  %v1530_v18 = vrot.slane %v4816_v22, 3 }
 0x174   : > { %1387 = vst [vmem:[#allocation1 + $0x6] ss:$9 sm:$0xff] %v5731_v47  ;;  %v1528_v47 = vrot.slane %v4814_v49, 3 }
 0x175   : > { %1388 = vst [vmem:[#allocation1 + $0x7] ss:$9 sm:$0xff] %v5733_v54  ;;  %v1580_v54 = vrot.slane %v1578_v52, 2  ;;  %v1611_v37 = vsel %vm273_vm12, %v4816_v22, %v1530_v18  ;;  %v1604_v39 = vsel %vm261_vm13, %v4816_v22, %v1530_v18 }
 0x176   : > { %v1589_v15 = vsel %vm261_vm13, %v4814_v49, %v1528_v47  ;;  %v1590_v16 = vsel %vm265_vm8, %v4814_v49, %v1528_v47  ;;  %v1613_v41 = vrot.slane %v1611_v37, 3 }
 0x17c   : > { %v1389_v31 = vld [vmem:[#allocation1] sm:$0xff] }
 0x17d   : > { %1391 = vst [vmem:[#allocation1 + $0x1] ss:$9 sm:$0xff] %v1322_v32  ;;  %v1592_v32 = vrot.slane %v1590_v16, 1 }
 0x17e   : > { %1390 = vst [vmem:[#allocation1] ss:$9 sm:$0xff] %v1321_v19  ;;  %v1596_v19 = vsel %vm273_vm12, %v4814_v49, %v1528_v47 }
 0x17f   : > { %1392 = vst [vmem:[#allocation1 + $0x2] ss:$9 sm:$0xff] %v1323_v33 }
 0x180   : > { %1393 = vst [vmem:[#allocation1 + $0x3] ss:$9 sm:$0xff] %v5737_v4  ;;  %v4815_v4 = vld [vmem:[%s5218_s21 + $0x24] sm:$0x1] }
 0x181   : > { %1394 = vst [vmem:[#allocation1 + $0x4] ss:$9 sm:$0xff] %v5739_v12  ;;  %4805 = vmatmul.msk.bf16.gmra.mxu2 %vm1035_vm3, %v1389_v31  ;;  %v1593_v12 = vsel %vm269_vm11, %v4814_v49, %v1528_v47  ;;  %v1529_v33 = vrot.slane %v4815_v4, 3  ;;  %v4818_v31 = vld [vmem:[%s5218_s21 + $0x30] sm:$0xf] }
 0x182   : > { %1395 = vst [vmem:[#allocation1 + $0x5] ss:$9 sm:$0xff] %v1330_v60  ;;  %v1605_v60 = vsel %vm265_vm8, %v4816_v22, %v1530_v18  ;;  %v1532_v48 = vrot.slane %v4818_v31, 3  ;;  %v4824_v47 = vld [vmem:[%s5218_s21 + $0x48] sm:$0xf] }
 0x183   : > { %1396 = vst [vmem:[#allocation1 + $0x6] ss:$9 sm:$0xff] %v1331_v45  ;;  %v1601_v24 = vsel %vm261_vm13, %v4815_v4, %v1529_v33  ;;  %v1607_v61 = vrot.slane %v1605_v60, 1 }
 0x184   : > { %1397 = vst [vmem:[#allocation1 + $0x7] ss:$9 sm:$0xff] %v1332_v57  ;;  %v1608_v57 = vsel %vm269_vm11, %v4816_v22, %v1530_v18  ;;  %v1620_v11 = vsel %vm265_vm8, %v4818_v31, %v1532_v48  ;;  %v1623_v53 = vsel %vm269_vm11, %v4818_v31, %v1532_v48  ;;  %v4825_v22 = vld [vmem:[%s5218_s21 + $0x4c] sm:$0x1] }
 0x185   : > { %v1610_v5 = vrot.slane %v1608_v57, 2 }
 0x18b   : > { %v1398_v50 = vld [vmem:[#allocation1] sm:$0xff] }
 0x18c   : > { %1399 = vst [vmem:[#allocation1] ss:$9 sm:$0xff] %v5742_v36  ;;  %v1595_v36 = vrot.slane %v1593_v12, 2 }
 0x18d   : > { %1400 = vst [vmem:[#allocation1 + $0x1] ss:$9 sm:$0xff] %v5744_v51  ;;  %v1598_v51 = vrot.slane %v1596_v19, 3  ;;  %v1539_v19 = vrot.slane %v4825_v22, 3 }
 0x191   : > { %4806 = vmatmul.msk.bf16.gmra.mxu2 %vm1035_vm3, %v1398_v50  ;;  %v4817_v50 = vld [vmem:[%s5218_s21 + $0x2c] sm:$0x1] }
 0x192   : > { %v1531_v8 = vrot.slane %v4817_v50, 3 }
 0x194   : > { %v1401_v35 = vld [vmem:[#allocation1] sm:$0xff]  ;;  %v1616_v23 = vsel %vm261_vm13, %v4817_v50, %v1531_v8  ;;  %v4843_v8 = vld [vmem:[%s5218_s21 + $0x10] sm:$0xf] }
 0x195   : > { %1695 = vst [vmem:[#allocation1] ss:$9 sm:$0xff] %v1544_v34  ;;  %v1626_v34 = vsel %vm273_vm12, %v4818_v31, %v1532_v48 }
 0x196   : > { %1698 = vst [vmem:[#allocation1 + $0x1] ss:$9 sm:$0xff] %v1547_v40  ;;  %v1533_v40 = vrot.slane %v4819_v9, 3  ;;  %v1628_v10 = vrot.slane %v1626_v34, 3 }
 0x197   : > { %1701 = vst [vmem:[#allocation1 + $0x2] ss:$9 sm:$0xff] %v1550_v27  ;;  %v1619_v27 = vsel %vm261_vm13, %v4818_v31, %v1532_v48  ;;  %v4827_v31 = vld [vmem:[%s5218_s21 + $0x54] sm:$0x1] }
 0x198   : > { %1704 = vst [vmem:[#allocation1 + $0x3] ss:$9 sm:$0xff] %v1553_v38  ;;  %v1625_v38 = vrot.slane %v1623_v53, 2  ;;  %v1631_v13 = vsel %vm261_vm13, %v4819_v9, %v1533_v40  ;;  %v1541_v48 = vrot.slane %v4827_v31, 3 }
 0x199   : > { %1706 = vst [vmem:[#allocation1 + $0x4] ss:$9 sm:$0xff] %v1556_v43  ;;  %v1634_v43 = vsel %vm261_vm13, %v4820_v46, %v1534_v30  ;;  %v4842_v46 = vld [vmem:[%s5218_s21 + $0xc] sm:$0x3] }
 0x19a   : > { %1708 = vst [vmem:[#allocation1 + $0x5] ss:$9 sm:$0xff] %v1559_v14  ;;  %v1637_v14 = vrot.slane %v1635_v7, 1  ;;  %v1906_v30 = vrot.slane %v4842_v46, 3  ;;  %v1691_v53 = vsel %vm261_vm13, %v4827_v31, %v1541_v48 }
 0x19b   : > { %1711 = vst [vmem:[#allocation1 + $0x6] ss:$9 sm:$0xff] %v1562_v25  ;;  %v4822_v25 = vld [vmem:[%s5218_s21 + $0x40] sm:$0xf] }
 0x19c   : > { %1714 = vst [vmem:[#allocation1 + $0x7] ss:$9 sm:$0xff] %v1565_v26  ;;  %v4821_v26 = vld [vmem:[%s5218_s21 + $0x3c] sm:$0x1]  ;;  %v1536_v28 = vrot.slane %v4822_v25, 3 }
 0x19d   : > { %v1535_v63 = vrot.slane %v4821_v26, 3 }
 0x19e   : > { %v1650_v21 = vsel %vm265_vm8, %v4822_v25, %v1536_v28  ;;  %v1653_v49 = vsel %vm269_vm11, %v4822_v25, %v1536_v28  ;;  %v1649_v6 = vsel %vm261_vm13, %v4822_v25, %v1536_v28 }
 0x19f   : > { %v1646_v52 = vsel %vm261_vm13, %v4821_v26, %v1535_v63 }
 0x1a1   : > { %4807 = vmatmul.msk.bf16.gmra.mxu2 %vm1035_vm3, %v1401_v35  ;;  %v1622_v35 = vrot.slane %v1620_v11, 1 }
 0x1a3   : > { %v1715_v2 = vld [vmem:[#allocation1] sm:$0xff] }
 0x1a4   : > { %4834 = vmatmul.msk.bf16.vlgmr.msrb.gmra.mxu3 %vm1035_vm3, %v1715_v2  ;;  %1717 = vst [vmem:[#allocation1] ss:$9 sm:$0xff] %v1568_v3  ;;  %v4823_v3 = vld [vmem:[%s5218_s21 + $0x44] sm:$0x1] }
 0x1a5   : > { %1718 = vst [vmem:[#allocation1 + $0x1] ss:$9 sm:$0xff] %v1571_v58  ;;  %v1656_v58 = vsel %vm273_vm12, %v4822_v25, %v1536_v28  ;;  %v1537_v2 = vrot.slane %v4823_v3, 3  ;;  %v4844_v25 = vld [vmem:[%s5218_s21 + $0x14] sm:$0x3] }
 0x1a6   : > { %1719 = vst [vmem:[#allocation1 + $0x2] ss:$9 sm:$0xff] %v1574_v55  ;;  %v1652_v55 = vrot.slane %v1650_v21, 1 }
 0x1a7   : > { %1721 = vst [vmem:[#allocation1 + $0x3] ss:$9 sm:$0xff] %v1577_v44  ;;  %v1655_v44 = vrot.slane %v1653_v49, 2  ;;  %v1908_v49 = vrot.slane %v4844_v25, 3 }
 0x1a8   : > { %1723 = vst [vmem:[#allocation1 + $0x4] ss:$9 sm:$0xff] %v1580_v54  ;;  %v1658_v54 = vrot.slane %v1656_v58, 3 }
 0x1a9   : > { %1725 = vst [vmem:[#allocation1 + $0x5] ss:$9 sm:$0xff] %v1583_v56  ;;  %v1661_v56 = vsel %vm261_vm13, %v4823_v3, %v1537_v2  ;;  %v1909_v2 = vrot.slane %v4845_v29, 3 }
 0x1aa   : > { %1726 = vst [vmem:[#allocation1 + $0x6] ss:$9 sm:$0xff] %v1586_v59  ;;  %v1538_v59 = vrot.slane %v4824_v47, 3 }
 0x1ab   : > { %1727 = vst [vmem:[#allocation1 + $0x7] ss:$9 sm:$0xff] %v1589_v15  ;;  %v4826_v15 = vld [vmem:[%s5218_s21 + $0x50] sm:$0xf]  ;;  %v1970_v48 = vsel %vm273_vm12, %v4845_v29, %v1909_v2 }
 0x1ac   : > { %v1665_v16 = vsel %vm265_vm8, %v4824_v47, %v1538_v59  ;;  %v1540_v4 = vrot.slane %v4826_v15, 3  ;;  %v1668_v12 = vsel %vm269_vm11, %v4824_v47, %v1538_v59  ;;  %v1671_v18 = vsel %vm273_vm12, %v4824_v47, %v1538_v59 }
 0x1ad   : > { %v1667_v33 = vrot.slane %v1665_v16, 1 }
 0x1ae   : > { %v1680_v60 = vsel %vm265_vm8, %v4826_v15, %v1540_v4  ;;  %v1683_v57 = vsel %vm269_vm11, %v4826_v15, %v1540_v4  ;;  %v1679_v37 = vsel %vm261_vm13, %v4826_v15, %v1540_v4  ;;  %v1686_v50 = vsel %vm273_vm12, %v4826_v15, %v1540_v4 }
 0x1af   : > { %v1688_v11 = vrot.slane %v1686_v50, 3 }
 0x1b2   : > { %v1728_v45 = vld [vmem:[#allocation1] sm:$0xff] }
 0x1b3   : > { %1730 = vst [vmem:[#allocation1] ss:$9 sm:$0xff] %v1592_v32  ;;  %v1664_v32 = vsel %vm261_vm13, %v4824_v47, %v1538_v59 }
 0x1b4   : > { %4835 = vmatmul.msk.bf16.gmra.mxu3 %vm1035_vm3, %v1728_v45  ;;  %1732 = vst [vmem:[#allocation1 + $0x1] ss:$9 sm:$0xff] %v1595_v36  ;;  %v1670_v36 = vrot.slane %v1668_v12, 2 }
 0x1b5   : > { %1734 = vst [vmem:[#allocation1 + $0x2] ss:$9 sm:$0xff] %v1598_v51  ;;  %v1673_v51 = vrot.slane %v1671_v18, 3 }
 0x1b6   : > { %1735 = vst [vmem:[#allocation1 + $0x3] ss:$9 sm:$0xff] %v1601_v24  ;;  %v1676_v24 = vsel %vm261_vm13, %v4825_v22, %v1539_v19  ;;  %v5900_v19 = vld [vmem:[%s5218_s21 + $0x20] sm:$0xf] }
 0x1b7   : > { %1736 = vst [vmem:[#allocation1 + $0x4] ss:$9 sm:$0xff] %v1604_v39  ;;  %v1682_v39 = vrot.slane %v1680_v60, 1  ;;  %v1958_v60 = vsel %vm265_vm8, %v4844_v25, %v1908_v49 }
 0x1b8   : > { %1738 = vst [vmem:[#allocation1 + $0x5] ss:$9 sm:$0xff] %v1607_v61  ;;  %v1685_v61 = vrot.slane %v1683_v57, 2  ;;  %v1960_v50 = vrot.slane %v1958_v60, 1 }
 0x1b9   : > { %1740 = vst [vmem:[#allocation1 + $0x6] ss:$9 sm:$0xff] %v1610_v5  ;;  %v4841_v5 = vld [vmem:[%s5218_s21 + $0x8] sm:$0xf] }
 0x1ba   : > { %1742 = vst [vmem:[#allocation1 + $0x7] ss:$9 sm:$0xff] %v1613_v41  ;;  %v1905_v41 = vrot.slane %v4841_v5, 3 }
 0x1bc   : > { %v1928_v9 = vsel %vm265_vm8, %v4841_v5, %v1905_v41  ;;  %v1931_v40 = vsel %vm269_vm11, %v4841_v5, %v1905_v41 }
 0x1bd   : > { %v1930_v34 = vrot.slane %v1928_v9, 1 }
 0x1bf   : > { %v2113_v63 = vshrl.u32 %v1930_v34, 16 }
 0x1c1   : > { %v1743_v42 = vld [vmem:[#allocation1] sm:$0xff] }
 0x1c2   : > { %1744 = vst [vmem:[#allocation1] ss:$9 sm:$0xff] %v1616_v23  ;;  %v1907_v23 = vrot.slane %v4843_v8, 3 }
 0x1c3   : > { %1745 = vst [vmem:[#allocation1 + $0x1] ss:$9 sm:$0xff] %v1619_v27 }
 0x1c4   : > { %1747 = vst [vmem:[#allocation1 + $0x2] ss:$9 sm:$0xff] %v1622_v35  ;;  %4836 = vmatmul.msk.bf16.gmra.mxu3 %vm1035_vm3, %v1743_v42  ;;  %v1927_v35 = vsel %vm261_vm13, %v4841_v5, %v1905_v41  ;;  %v1933_v42 = vrot.slane %v1931_v40, 2  ;;  %v1946_v7 = vsel %vm265_vm8, %v4843_v8, %v1907_v23  ;;  %v1952_v28 = vsel %vm273_vm12, %v4843_v8, %v1907_v23 }
 0x1c5   : > { %1749 = vst [vmem:[#allocation1 + $0x3] ss:$9 sm:$0xff] %v1625_v38  ;;  %v1934_v38 = vsel %vm273_vm12, %v4841_v5, %v1905_v41  ;;  %v1945_v3 = vsel %vm261_vm13, %v4843_v8, %v1907_v23  ;;  %v1967_v5 = vsel %vm269_vm11, %v4845_v29, %v1909_v2  ;;  %v1957_v41 = vsel %vm261_vm13, %v4844_v25, %v1908_v49 }
 0x1c6   : > { %1751 = vst [vmem:[#allocation1 + $0x4] ss:$9 sm:$0xff] %v1628_v10  ;;  %v1940_v10 = vsel %vm265_vm8, %v4842_v46, %v1906_v30  ;;  %v1936_v26 = vrot.slane %v1934_v38, 3  ;;  %v2144_v4 = vshrl.u32 %v1945_v3, 16  ;;  %v1969_v9 = vrot.slane %v1967_v5, 2 }
 0x1c7   : > { %1752 = vst [vmem:[#allocation1 + $0x5] ss:$9 sm:$0xff] %v1631_v13  ;;  %v1949_v13 = vsel %vm269_vm11, %v4843_v8, %v1907_v23  ;;  %v1942_v0 = vrot.slane %v1940_v10, 1  ;;  %v1963_v8 = vsel %vm261_vm13, %v4845_v29, %v1909_v2  ;;  %v2175_v40 = vshrl.u32 %v1957_v41, 16  ;;  %v4851_v5 = vld [vmem:[%s5218_s21 + $0x30] sm:$0xf] }
 0x1c8   : > { %1753 = vst [vmem:[#allocation1 + $0x6] ss:$9 sm:$0xff] %v1634_v43  ;;  %v2105_v43 = vshrl.u32 %v1927_v35, 16  ;;  %v1951_v21 = vrot.slane %v1949_v13, 2 }
 0x1c9   : > { %1755 = vst [vmem:[#allocation1 + $0x7] ss:$9 sm:$0xff] %v1637_v14  ;;  %v2110_v14 = vshll.u32 %v1930_v34, 16  ;;  %v2141_v22 = vshll.u32 %v1942_v0, 16  ;;  %v2172_v34 = vshll.u32 %v1957_v41, 16 }
 0x1ca   : > { %v4849_v0 = vld [vmem:[%s5218_s21 + $0x28] sm:$0xf] }
 0x1cb   : > { %v2112_v58 = vsel %vm5241_vm2, %v2105_v43, %v2110_v14  ;;  %v2196_v43 = vshll.u32 %v1969_v9, 16  ;;  %v4848_v14 = vld [vmem:[%s5218_s21 + $0x24] sm:$0x3] }
 0x1d0   : > { %v1756_v62 = vld [vmem:[#allocation1] sm:$0xff] }
 0x1d1   : > { %1758 = vst [vmem:[#allocation1] ss:$9 sm:$0xff] %v1640_v1  ;;  %v1939_v1 = vsel %vm261_vm13, %v4842_v46, %v1906_v30  ;;  %v1972_v30 = vrot.slane %v1970_v48, 3 }
 0x1d2   : > { %1760 = vst [vmem:[#allocation1 + $0x1] ss:$9 sm:$0xff] %v1643_v17  ;;  %v1948_v17 = vrot.slane %v1946_v7, 1  ;;  %v2133_v59 = vshll.u32 %v1939_v1, 16  ;;  %v2136_v15 = vshrl.u32 %v1939_v1, 16 }
 0x1d3   : > { %1761 = vst [vmem:[#allocation1 + $0x2] ss:$9 sm:$0xff] %v1646_v52  ;;  %v1954_v52 = vrot.slane %v1952_v28, 3  ;;  %v2199_v28 = vshrl.u32 %v1969_v9, 16  ;;  %v2207_v1 = vshrl.u32 %v1972_v30, 16 }
 0x1d4   : > { %1762 = vst [vmem:[#allocation1 + $0x3] ss:$9 sm:$0xff] %v1649_v6  ;;  %4837 = vmatmul.msk.bf16.gmra.mxu3 %vm1035_vm3, %v1756_v62  ;;  %v2118_v62 = vshll.u32 %v1933_v42, 16  ;;  %v2121_v6 = vshrl.u32 %v1933_v42, 16  ;;  %v2149_v12 = vshll.u32 %v1948_v17, 16  ;;  %v2152_v18 = vshrl.u32 %v1948_v17, 16 }
 0x1d5   : > { %1764 = vst [vmem:[#allocation1 + $0x4] ss:$9 sm:$0xff] %v1652_v55  ;;  %v2126_v55 = vshll.u32 %v1936_v26, 16  ;;  %v2165_v57 = vshll.u32 %v1954_v52, 16  ;;  %v2168_v23 = vshrl.u32 %v1954_v52, 16  ;;  %v2183_v42 = vshrl.u32 %v1963_v8, 16 }
 0x1d6   : > { %1766 = vst [vmem:[#allocation1 + $0x5] ss:$9 sm:$0xff] %v1655_v44  ;;  %v2129_v44 = vshrl.u32 %v1936_v26, 16 }
 0x1d7   : > { %1768 = vst [vmem:[#allocation1 + $0x6] ss:$9 sm:$0xff] %v1658_v54  ;;  %v4846_v54 = vld [vmem:[%s5218_s21 + $0x1c] sm:$0x3]  ;;  %v2128_v16 = vsel %vm5241_vm2, %v2121_v6, %v2126_v55  ;;  %v2174_v26 = vsel %vm5241_vm2, %v2168_v23, %v2172_v34  ;;  %v1913_v55 = vrot.slane %v4849_v0, 3 }
 0x1d8   : > { %1769 = vst [vmem:[#allocation1 + $0x7] ss:$9 sm:$0xff] %v1661_v56  ;;  %v2120_v56 = vsel %vm5241_vm2, %v2113_v63, %v2118_v62 }
 0x1df   : > { %v1770_v45 = vld [vmem:[#allocation1] sm:$0xff] }
 0x1e0   : > { %1771 = vst [vmem:[#allocation1] ss:$9 sm:$0xff] %v1664_v32  ;;  %v2135_v32 = vsel %vm5241_vm2, %v2129_v44, %v2133_v59 }
 0x1e1   : > { %1773 = vst [vmem:[#allocation1 + $0x1] ss:$9 sm:$0xff] %v1667_v33  ;;  %v2143_v33 = vsel %vm5241_vm2, %v2136_v15, %v2141_v22 }
 0x1e2   : > { %1775 = vst [vmem:[#allocation1 + $0x2] ss:$9 sm:$0xff] %v1670_v36  ;;  %v2157_v36 = vshll.u32 %v1951_v21, 16 }
 0x1e3   : > { %1777 = vst [vmem:[#allocation1 + $0x3] ss:$9 sm:$0xff] %v1673_v51  ;;  %v2160_v51 = vshrl.u32 %v1951_v21, 16 }
 0x1e4   : > { %1778 = vst [vmem:[#allocation1 + $0x4] ss:$9 sm:$0xff] %v1676_v24  ;;  %4838 = vmatmul.msk.bf16.gmra.mxu3 %vm1035_vm3, %v1770_v45  ;;  %v2151_v45 = vsel %vm5241_vm2, %v2144_v4, %v2149_v12  ;;  %v1910_v24 = vrot.slane %v4846_v54, 3  ;;  %v4850_v4 = vld [vmem:[%s5218_s21 + $0x2c] sm:$0x3] }
 0x1e5   : > { %1779 = vst [vmem:[#allocation1 + $0x5] ss:$9 sm:$0xff] %v1679_v37  ;;  %v1964_v37 = vsel %vm265_vm8, %v4845_v29, %v1909_v2  ;;  %v2167_v31 = vsel %vm5241_vm2, %v2160_v51, %v2165_v57  ;;  %v2204_v29 = vshll.u32 %v1972_v30, 16  ;;  %v1914_v51 = vrot.slane %v4850_v4, 3 }
 0x1e6   : > { %1781 = vst [vmem:[#allocation1 + $0x6] ss:$9 sm:$0xff] %v1682_v39  ;;  %v2159_v39 = vsel %vm5241_vm2, %v2152_v18, %v2157_v36  ;;  %v1966_v46 = vrot.slane %v1964_v37, 1  ;;  %v1975_v35 = vsel %vm261_vm13, %v4846_v54, %v1910_v24  ;;  %v2000_v18 = vsel %vm265_vm8, %v4849_v0, %v1913_v55 }
 0x1e7   : > { %1783 = vst [vmem:[#allocation1 + $0x7] ss:$9 sm:$0xff] %v1685_v61  ;;  %v1911_v61 = vrot.slane %v5900_v19, 3  ;;  %v2211_v3 = vshll.u32 %v1975_v35, 16  ;;  %v2214_v21 = vshrl.u32 %v1975_v35, 16  ;;  %v2006_v36 = vsel %vm273_vm12, %v4849_v0, %v1913_v55 }
 0x1e8   : > { %v2188_v10 = vshll.u32 %v1966_v46, 16  ;;  %v2191_v13 = vshrl.u32 %v1966_v46, 16  ;;  %v2002_v60 = vrot.slane %v2000_v18, 1  ;;  %v2011_v8 = vsel %vm261_vm13, %v4850_v4, %v1914_v51  ;;  %v4854_v18 = vld [vmem:[%s5218_s21 + $0x3c] sm:$0x3] }
 0x1e9   : > { %v1981_v25 = vsel %vm261_vm13, %v5900_v19, %v1911_v61  ;;  %v1985_v44 = vsel %vm269_vm11, %v5900_v19, %v1911_v61 }
 0x1ea   : > { %v2190_v17 = vsel %vm5241_vm2, %v2183_v42, %v2188_v10  ;;  %v2198_v62 = vsel %vm5241_vm2, %v2191_v13, %v2196_v43  ;;  %v2222_v2 = vshrl.u32 %v1981_v25, 16  ;;  %v1987_v15 = vrot.slane %v1985_v44, 2 }
 0x1eb   : > { %v2266_v30 = vshll.u32 %v2002_v60, 16  ;;  %v2269_v34 = vshrl.u32 %v2002_v60, 16  ;;  %v2012_v25 = vsel %vm265_vm8, %v4850_v4, %v1914_v51  ;;  %v4855_v51 = vld [vmem:[%s5218_s21 + $0x40] sm:$0xf] }
 0x1ec   : > { %v2235_v57 = vshll.u32 %v1987_v15, 16 }
 0x1ee   : > { %v1784_v27 = vld [vmem:[#allocation1] sm:$0xff] }
 0x1ef   : > { %1786 = vst [vmem:[#allocation1] ss:$9 sm:$0xff] %v1688_v11  ;;  %v1976_v11 = vsel %vm265_vm8, %v4846_v54, %v1910_v24  ;;  %v1988_v54 = vsel %vm273_vm12, %v5900_v19, %v1911_v61  ;;  %v1999_v24 = vsel %vm261_vm13, %v4849_v0, %v1913_v55 }
 0x1f0   : > { %1787 = vst [vmem:[#allocation1 + $0x1] ss:$9 sm:$0xff] %v1691_v53  ;;  %v1982_v53 = vsel %vm265_vm8, %v5900_v19, %v1911_v61  ;;  %v1978_v38 = vrot.slane %v1976_v11, 1  ;;  %v1990_v12 = vrot.slane %v1988_v54, 3  ;;  %v2003_v19 = vsel %vm269_vm11, %v4849_v0, %v1913_v55 }
 0x1f1   : > { %v1984_v7 = vrot.slane %v1982_v53, 1  ;;  %v2005_v37 = vrot.slane %v2003_v19, 2  ;;  %v2261_v11 = vshrl.u32 %v1999_v24, 16  ;;  %v1915_v53 = vrot.slane %v4851_v5, 3 }
 0x1f2   : > { %v2219_v49 = vshll.u32 %v1978_v38, 16  ;;  %v2243_v61 = vshll.u32 %v1990_v12, 16  ;;  %v2246_v41 = vshrl.u32 %v1990_v12, 16 }
 0x1f3   : > { %v2227_v6 = vshll.u32 %v1984_v7, 16  ;;  %v2277_v38 = vshrl.u32 %v2005_v37, 16 }
 0x1f4   : > { %4839 = vmatmul.msk.bf16.gmra.mxu3 %vm1035_vm3, %v1784_v27  ;;  %v2180_v27 = vshll.u32 %v1960_v50, 16  ;;  %v2221_v59 = vsel %vm5241_vm2, %v2214_v21, %v2219_v49  ;;  %v2024_v21 = vsel %vm273_vm12, %v4851_v5, %v1915_v53 }
 0x1f6   : > { %v2182_v63 = vsel %vm5241_vm2, %v2175_v40, %v2180_v27  ;;  %v2274_v40 = vshll.u32 %v2005_v37, 16  ;;  %v4852_v27 = vld [vmem:[%s5218_s21 + $0x34] sm:$0x3] }
 0x1f7   : > { %v1788_v47 = vld [vmem:[#allocation1] sm:$0xff] }
 0x1f8   : > { %2499 = vst [vmem:[#allocation1] ss:$9 sm:$0xff] %v2112_v58  ;;  %v1912_v58 = vrot.slane %v4848_v14, 3  ;;  %v2276_v0 = vsel %vm5241_vm2, %v2269_v34, %v2274_v40 }
 0x1f9   : > { %2502 = vst [vmem:[#allocation1 + $0x1] ss:$9 sm:$0xff] %v2120_v56  ;;  %v2213_v56 = vsel %vm5241_vm2, %v2207_v1, %v2211_v3  ;;  %v2021_v1 = vsel %vm269_vm11, %v4851_v5, %v1915_v53 }
 0x1fa   : > { %2505 = vst [vmem:[#allocation1 + $0x2] ss:$9 sm:$0xff] %v2128_v16  ;;  %v1994_v22 = vsel %vm265_vm8, %v4848_v14, %v1912_v58  ;;  %v2229_v16 = vsel %vm5241_vm2, %v2222_v2, %v2227_v6  ;;  %v2026_v6 = vrot.slane %v2024_v21, 3 }
 0x1fb   : > { %2508 = vst [vmem:[#allocation1 + $0x3] ss:$9 sm:$0xff] %v2135_v32  ;;  %v1993_v32 = vsel %vm261_vm13, %v4848_v14, %v1912_v58  ;;  %v2289_v14 = vshll.u32 %v2011_v8, 16  ;;  %v2017_v58 = vsel %vm261_vm13, %v4851_v5, %v1915_v53 }
 0x1fc   : > { %2511 = vst [vmem:[#allocation1 + $0x4] ss:$9 sm:$0xff] %v2143_v33  ;;  %v1996_v33 = vrot.slane %v1994_v22, 1  ;;  %v2250_v50 = vshll.u32 %v1993_v32, 16  ;;  %v2253_v48 = vshrl.u32 %v1993_v32, 16 }
 0x1fd   : > { %2514 = vst [vmem:[#allocation1 + $0x5] ss:$9 sm:$0xff] %v2151_v45  ;;  %v2230_v45 = vshrl.u32 %v1984_v7, 16  ;;  %v5966_v7 = vld [vmem:[%s5218_s21 + $0x38] sm:$0xf] }
 0x1fe   : > { %2517 = vst [vmem:[#allocation1 + $0x6] ss:$9 sm:$0xff] %v2159_v39  ;;  %v2238_v39 = vshrl.u32 %v1987_v15, 16  ;;  %v2258_v46 = vshll.u32 %v1996_v33, 16  ;;  %v2252_v35 = vsel %vm5241_vm2, %v2246_v41, %v2250_v50  ;;  %v2300_v15 = vshrl.u32 %v2017_v58, 16 }
 0x1ff   : > { %2520 = vst [vmem:[#allocation1 + $0x7] ss:$9 sm:$0xff] %v2167_v31  ;;  %v2008_v31 = vrot.slane %v2006_v36, 3  ;;  %v2237_v9 = vsel %vm5241_vm2, %v2230_v45, %v2235_v57  ;;  %v2321_v36 = vshll.u32 %v2026_v6, 16  ;;  %v2324_v45 = vshrl.u32 %v2026_v6, 16 }
 0x200   : > { %v2245_v23 = vsel %vm5241_vm2, %v2238_v39, %v2243_v61  ;;  %v2260_v13 = vsel %vm5241_vm2, %v2253_v48, %v2258_v46  ;;  %v1918_v61 = vrot.slane %v4854_v18, 3  ;;  %v1919_v48 = vrot.slane %v4855_v51, 3 }
 0x201   : > { %v2282_v42 = vshll.u32 %v2008_v31, 16  ;;  %v2285_v43 = vshrl.u32 %v2008_v31, 16 }
 0x202   : > { %v2048_v34 = vsel %vm265_vm8, %v4854_v18, %v1918_v61 }
 0x203   : > { %v2284_v3 = vsel %vm5241_vm2, %v2277_v38, %v2282_v42  ;;  %v2291_v49 = vsel %vm5241_vm2, %v2285_v43, %v2289_v14  ;;  %v2054_v38 = vsel %vm265_vm8, %v4855_v51, %v1919_v48  ;;  %v2060_v43 = vsel %vm273_vm12, %v4855_v51, %v1919_v48 }
 0x204   : > { %4840 = vmatmul.msk.bf16.gmra.mxu3 %vm1035_vm3, %v1788_v47  ;;  %v2206_v47 = vsel %vm5241_vm2, %v2199_v28, %v2204_v29  ;;  %v1916_v28 = vrot.slane %v4852_v27, 3  ;;  %v2018_v29 = vsel %vm265_vm8, %v4851_v5, %v1915_v53  ;;  %v2053_v14 = vsel %vm261_vm13, %v4855_v51, %v1919_v48 }
 0x206   : > { %v2521_v52 = vld [vmem:[#allocation1] sm:$0xff]  ;;  %v2030_v2 = vsel %vm265_vm8, %v4852_v27, %v1916_v28 }
 0x207   : > { %2523 = vst [vmem:[#allocation1] ss:$9 sm:$0xff] %v2174_v26  ;;  %4917 = vmatmul.msk.bf16.vlgmr.msrb.gmra.mxu0 %vm1035_vm3, %v2521_v52  ;;  %v2268_v26 = vsel %vm5241_vm2, %v2261_v11, %v2266_v30  ;;  %v2020_v52 = vrot.slane %v2018_v29, 1  ;;  %v4856_v11 = vld [vmem:[%s5218_s21 + $0x44] sm:$0x3] }
 0x208   : > { %2525 = vst [vmem:[#allocation1 + $0x1] ss:$9 sm:$0xff] %v2182_v63  ;;  %v1917_v63 = vrot.slane %v5966_v7, 3 }
 0x209   : > { %2527 = vst [vmem:[#allocation1 + $0x2] ss:$9 sm:$0xff] %v2190_v17  ;;  %v2014_v17 = vrot.slane %v2012_v25, 1  ;;  %v2305_v22 = vshll.u32 %v2020_v52, 16  ;;  %v2308_v4 = vshrl.u32 %v2020_v52, 16  ;;  %v2056_v25 = vrot.slane %v2054_v38, 1 }
 0x20a   : > { %2529 = vst [vmem:[#allocation1 + $0x3] ss:$9 sm:$0xff] %v2198_v62  ;;  %v2023_v62 = vrot.slane %v2021_v1, 2  ;;  %v2036_v55 = vsel %vm265_vm8, %v5966_v7, %v1917_v63  ;;  %v2039_v44 = vsel %vm269_vm11, %v5966_v7, %v1917_v63  ;;  %v2035_v19 = vsel %vm261_vm13, %v5966_v7, %v1917_v63 }
 0x20b   : > { %2531 = vst [vmem:[#allocation1 + $0x4] ss:$9 sm:$0xff] %v2206_v47  ;;  %v2292_v47 = vshrl.u32 %v2011_v8, 16  ;;  %v2297_v54 = vshll.u32 %v2014_v17, 16  ;;  %v2041_v32 = vrot.slane %v2039_v44, 2  ;;  %v2307_v24 = vsel %vm5241_vm2, %v2300_v15, %v2305_v22 }
 0x20c   : > { %2533 = vst [vmem:[#allocation1 + $0x5] ss:$9 sm:$0xff] %v2213_v56  ;;  %v2029_v56 = vsel %vm261_vm13, %v4852_v27, %v1916_v28  ;;  %v2313_v12 = vshll.u32 %v2023_v62, 16  ;;  %v2316_v33 = vshrl.u32 %v2023_v62, 16  ;;  %v2339_v31 = vshrl.u32 %v2035_v19, 16 }
 0x20d   : > { %2535 = vst [vmem:[#allocation1 + $0x6] ss:$9 sm:$0xff] %v2221_v59  ;;  %v2032_v59 = vrot.slane %v2030_v2, 1  ;;  %v2299_v60 = vsel %vm5241_vm2, %v2292_v47, %v2297_v54  ;;  %v2328_v57 = vshll.u32 %v2029_v56, 16  ;;  %v2331_v37 = vshrl.u32 %v2029_v56, 16 }
 0x20e   : > { %2537 = vst [vmem:[#allocation1 + $0x7] ss:$9 sm:$0xff] %v2229_v16  ;;  %v2038_v16 = vrot.slane %v2036_v55, 1  ;;  %v2315_v5 = vsel %vm5241_vm2, %v2308_v4, %v2313_v12  ;;  %v2323_v46 = vsel %vm5241_vm2, %v2316_v33, %v2321_v36  ;;  %v2042_v30 = vsel %vm273_vm12, %v5966_v7, %v1917_v63  ;;  %v4857_v63 = vld [vmem:[%s5218_s21 + $0x48] sm:$0xf] }
 0x20f   : > { %v2336_v39 = vshll.u32 %v2032_v59, 16  ;;  %v2330_v53 = vsel %vm5241_vm2, %v2324_v45, %v2328_v57  ;;  %v1920_v27 = vrot.slane %v4856_v11, 3  ;;  %v2047_v7 = vsel %vm261_vm13, %v4854_v18, %v1918_v61  ;;  %v4858_v54 = vld [vmem:[%s5218_s21 + $0x4c] sm:$0x3]  ;;  %v4859_v22 = vld [vmem:[%s5218_s21 + $0x50] sm:$0xf] }
 0x210   : > { %v2344_v41 = vshll.u32 %v2038_v16, 16  ;;  %v2347_v8 = vshrl.u32 %v2038_v16, 16  ;;  %v2355_v29 = vshrl.u32 %v2041_v32, 16  ;;  %v2062_v1 = vrot.slane %v2060_v43, 3 }
 0x211   : > { %v2066_v28 = vsel %vm265_vm8, %v4856_v11, %v1920_v27  ;;  %v2367_v17 = vshll.u32 %v2047_v7, 16  ;;  %v2370_v21 = vshrl.u32 %v2047_v7, 16  ;;  %v2065_v52 = vsel %vm261_vm13, %v4856_v11, %v1920_v27 }
 0x212   : > { %v2346_v40 = vsel %vm5241_vm2, %v2339_v31, %v2344_v41  ;;  %v2068_v58 = vrot.slane %v2066_v28, 1  ;;  %v2378_v62 = vshrl.u32 %v2053_v14, 16  ;;  %v2383_v2 = vshll.u32 %v2056_v25, 16 }
 0x213   : > { %v1921_v6 = vrot.slane %v4857_v63, 3  ;;  %v2386_v44 = vshrl.u32 %v2056_v25, 16  ;;  %v2399_v15 = vshll.u32 %v2062_v1, 16  ;;  %v2402_v4 = vshrl.u32 %v2062_v1, 16 }
 0x214   : > { %v2406_v12 = vshll.u32 %v2065_v52, 16  ;;  %v2385_v19 = vsel %vm5241_vm2, %v2378_v62, %v2383_v2  ;;  %v2414_v33 = vshll.u32 %v2068_v58, 16  ;;  %v1922_v36 = vrot.slane %v4858_v54, 3 }
 0x215   : > { %v2538_v10 = vld [vmem:[#allocation1] sm:$0xff]  ;;  %v1923_v45 = vrot.slane %v4859_v22, 3  ;;  %v2075_v57 = vsel %vm269_vm11, %v4857_v63, %v1921_v6  ;;  %v2071_v31 = vsel %vm261_vm13, %v4857_v63, %v1921_v6 }
 0x216   : > { %2540 = vst [vmem:[#allocation1] ss:$9 sm:$0xff] %v2237_v9  ;;  %v2352_v9 = vshll.u32 %v2041_v32, 16  ;;  %v2409_v32 = vshrl.u32 %v2065_v52, 16  ;;  %v2077_v41 = vrot.slane %v2075_v57, 2 }
 0x217   : > { %2542 = vst [vmem:[#allocation1 + $0x1] ss:$9 sm:$0xff] %v2245_v23  ;;  %4918 = vmatmul.msk.bf16.gmra.mxu0 %vm1035_vm3, %v2538_v10  ;;  %v2338_v23 = vsel %vm5241_vm2, %v2331_v37, %v2336_v39  ;;  %v2057_v10 = vsel %vm269_vm11, %v4855_v51, %v1919_v48  ;;  %v2072_v51 = vsel %vm265_vm8, %v4857_v63, %v1921_v6  ;;  %v4929_v57 = vld [vmem:[%s5218_s21 + $0x1c] sm:$0x3] }
 0x218   : > { %2544 = vst [vmem:[#allocation1 + $0x2] ss:$9 sm:$0xff] %v2252_v35  ;;  %v2044_v35 = vrot.slane %v2042_v30, 3  ;;  %v2354_v42 = vsel %vm5241_vm2, %v2347_v8, %v2352_v9  ;;  %v2078_v37 = vsel %vm273_vm12, %v4857_v63, %v1921_v6  ;;  %v2408_v39 = vsel %vm5241_vm2, %v2402_v4, %v2406_v12 }
 0x219   : > { %2546 = vst [vmem:[#allocation1 + $0x3] ss:$9 sm:$0xff] %v2260_v13  ;;  %v2050_v13 = vrot.slane %v2048_v34, 1  ;;  %v2074_v61 = vrot.slane %v2072_v51, 1  ;;  %v2080_v48 = vrot.slane %v2078_v37, 3  ;;  %v2083_v8 = vsel %vm261_vm13, %v4858_v54, %v1922_v36 }
 0x21a   : > { %2548 = vst [vmem:[#allocation1 + $0x4] ss:$9 sm:$0xff] %v2268_v26  ;;  %v2059_v26 = vrot.slane %v2057_v10, 2  ;;  %v2093_v9 = vsel %vm269_vm11, %v4859_v22, %v1923_v45  ;;  %v2096_v30 = vsel %vm273_vm12, %v4859_v22, %v1923_v45  ;;  %v2430_v27 = vshll.u32 %v2077_v41, 16 }
 0x21b   : > { %2550 = vst [vmem:[#allocation1 + $0x5] ss:$9 sm:$0xff] %v2276_v0  ;;  %v2360_v0 = vshll.u32 %v2044_v35, 16  ;;  %v2089_v38 = vsel %vm261_vm13, %v4859_v22, %v1923_v45  ;;  %v2433_v10 = vshrl.u32 %v2077_v41, 16  ;;  %v2438_v7 = vshll.u32 %v2080_v48, 16 }
 0x21c   : > { %2552 = vst [vmem:[#allocation1 + $0x6] ss:$9 sm:$0xff] %v2284_v3  ;;  %v2363_v3 = vshrl.u32 %v2044_v35, 16  ;;  %v2391_v47 = vshll.u32 %v2059_v26, 16  ;;  %v2394_v59 = vshrl.u32 %v2059_v26, 16  ;;  %v2441_v43 = vshrl.u32 %v2080_v48, 16 }
 0x21d   : > { %2554 = vst [vmem:[#allocation1 + $0x7] ss:$9 sm:$0xff] %v2291_v49  ;;  %v2375_v49 = vshll.u32 %v2050_v13, 16  ;;  %v2362_v55 = vsel %vm5241_vm2, %v2355_v29, %v2360_v0  ;;  %v4860_v35 = vld [vmem:[%s5218_s21 + $0x54] sm:$0x3]  ;;  %v2098_v13 = vrot.slane %v2096_v30, 3 }
 0x21e   : > { %v2369_v56 = vsel %vm5241_vm2, %v2363_v3, %v2367_v17  ;;  %v2445_v14 = vshll.u32 %v2083_v8, 16  ;;  %v2448_v26 = vshrl.u32 %v2083_v8, 16  ;;  %v1924_v29 = vrot.slane %v4860_v35, 3  ;;  %v4931_v41 = vld [vmem:[%s5218_s21 + $0x24] sm:$0x3] }
 0x21f   : > { %v2377_v16 = vsel %vm5241_vm2, %v2370_v21, %v2375_v49  ;;  %v2456_v63 = vshrl.u32 %v2089_v38, 16  ;;  %v2440_v3 = vsel %vm5241_vm2, %v2433_v10, %v2438_v7  ;;  %v2477_v62 = vshll.u32 %v2098_v13, 16  ;;  %v4933_v30 = vld [vmem:[%s5218_s21 + $0x2c] sm:$0x3]  ;;  %v4935_v38 = vld [vmem:[%s5218_s21 + $0x34] sm:$0x3] }
 0x220   : > { %v2447_v52 = vsel %vm5241_vm2, %v2441_v43, %v2445_v14  ;;  %v2102_v6 = vsel %vm265_vm8, %v4860_v35, %v1924_v29  ;;  %v4934_v14 = vld [vmem:[%s5218_s21 + $0x30] sm:$0xe] }
 0x224   : > { %v2555_v50 = vld [vmem:[#allocation1] sm:$0xff] }
 0x225   : > { %2557 = vst [vmem:[#allocation1] ss:$9 sm:$0xff] %v2299_v60  ;;  %v2393_v60 = vsel %vm5241_vm2, %v2386_v44, %v2391_v47 }
 0x226   : > { %2559 = vst [vmem:[#allocation1 + $0x1] ss:$9 sm:$0xff] %v2307_v24  ;;  %v2401_v24 = vsel %vm5241_vm2, %v2394_v59, %v2399_v15  ;;  %v2480_v59 = vshrl.u32 %v2098_v13, 16 }
 0x227   : > { %2561 = vst [vmem:[#allocation1 + $0x2] ss:$9 sm:$0xff] %v2315_v5  ;;  %4919 = vmatmul.msk.bf16.gmra.mxu0 %vm1035_vm3, %v2555_v50  ;;  %v2416_v5 = vsel %vm5241_vm2, %v2409_v32, %v2414_v33  ;;  %v2084_v50 = vsel %vm265_vm8, %v4858_v54, %v1922_v36  ;;  %v2101_v54 = vsel %vm261_vm13, %v4860_v35, %v1924_v29  ;;  %v4924_v32 = vld [vmem:[%s5218_s21 + $0x8] sm:$0xe]  ;;  %v4927_v33 = vld [vmem:[%s5218_s21 + $0x14] sm:$0x3] }
 0x228   : > { %2563 = vst [vmem:[#allocation1 + $0x3] ss:$9 sm:$0xff] %v2323_v46  ;;  %v2090_v46 = vsel %vm265_vm8, %v4859_v22, %v1923_v45  ;;  %v2086_v11 = vrot.slane %v2084_v50, 1  ;;  %v2484_v15 = vshll.u32 %v2101_v54, 16  ;;  %v2487_v22 = vshrl.u32 %v2101_v54, 16 }
 0x229   : > { %2565 = vst [vmem:[#allocation1 + $0x4] ss:$9 sm:$0xff] %v2330_v53  ;;  %v2417_v53 = vshrl.u32 %v2071_v31, 16  ;;  %v2092_v34 = vrot.slane %v2090_v46, 1  ;;  %v4926_v45 = vld [vmem:[%s5218_s21 + $0x10] sm:$0xe] }
 0x22a   : > { %2567 = vst [vmem:[#allocation1 + $0x5] ss:$9 sm:$0xff] %v2338_v23  ;;  %v2422_v23 = vshll.u32 %v2074_v61, 16  ;;  %v2453_v28 = vshll.u32 %v2086_v11, 16  ;;  %v2486_v4 = vsel %vm5241_vm2, %v2480_v59, %v2484_v15  ;;  %v4928_v31 = vld [vmem:[%s5218_s21 + $0x18] sm:$0xe] }
 0x22b   : > { %2569 = vst [vmem:[#allocation1 + $0x6] ss:$9 sm:$0xff] %v2346_v40  ;;  %v2425_v40 = vshrl.u32 %v2074_v61, 16  ;;  %v2461_v1 = vshll.u32 %v2092_v34, 16  ;;  %v2464_v17 = vshrl.u32 %v2092_v34, 16 }
 0x22c   : > { %2571 = vst [vmem:[#allocation1 + $0x7] ss:$9 sm:$0xff] %v2354_v42  ;;  %v2095_v42 = vrot.slane %v2093_v9, 2  ;;  %v2424_v25 = vsel %vm5241_vm2, %v2417_v53, %v2422_v23  ;;  %v2455_v2 = vsel %vm5241_vm2, %v2448_v26, %v2453_v28  ;;  %v4930_v11 = vld [vmem:[%s5218_s21 + $0x20] sm:$0xe] }
 0x22d   : > { %v2432_v0 = vsel %vm5241_vm2, %v2425_v40, %v2430_v27  ;;  %v4932_v35 = vld [vmem:[%s5218_s21 + $0x28] sm:$0xe]  ;;  %v4943_v59 = vld [vmem:[%s5218_s21 + $0x54] sm:$0x3] }
 0x22e   : > { %v2469_v21 = vshll.u32 %v2095_v42, 16  ;;  %v2472_v58 = vshrl.u32 %v2095_v42, 16 }
 0x230   : > { %v2471_v44 = vsel %vm5241_vm2, %v2464_v17, %v2469_v21  ;;  %v2479_v47 = vsel %vm5241_vm2, %v2472_v58, %v2477_v62  ;;  %v4938_v62 = vld [vmem:[%s5218_s21 + $0x40] sm:$0xe] }
 0x233   : > { %v2572_v18 = vld [vmem:[#allocation1] sm:$0xff] }
 0x234   : > { %2574 = vst [vmem:[#allocation1] ss:$9 sm:$0xff] %v2362_v55  ;;  %v2463_v55 = vsel %vm5241_vm2, %v2456_v63, %v2461_v1  ;;  %v4936_v1 = vld [vmem:[%s5218_s21 + $0x38] sm:$0xe] }
 0x235   : > { %2576 = vst [vmem:[#allocation1 + $0x1] ss:$9 sm:$0xff] %v2369_v56  ;;  %v2104_v56 = vrot.slane %v2102_v6, 1 }
 0x236   : > { %2578 = vst [vmem:[#allocation1 + $0x2] ss:$9 sm:$0xff] %v2377_v16 }
 0x237   : > { %2580 = vst [vmem:[#allocation1 + $0x3] ss:$9 sm:$0xff] %v2385_v19  ;;  %4920 = vmatmul.msk.bf16.gmra.mxu0 %vm1035_vm3, %v2572_v18  ;;  %v2492_v16 = vshll.u32 %v2104_v56, 16  ;;  %v4925_v19 = vld [vmem:[%s5218_s21 + $0xc] sm:$0x3] }
 0x238   : > { %2582 = vst [vmem:[#allocation1 + $0x4] ss:$9 sm:$0xff] %v2393_v60  ;;  %v4940_v56 = vld [vmem:[%s5218_s21 + $0x48] sm:$0xe] }
 0x239   : > { %2584 = vst [vmem:[#allocation1 + $0x5] ss:$9 sm:$0xff] %v2401_v24  ;;  %v2494_v12 = vsel %vm5241_vm2, %v2487_v22, %v2492_v16 }
 0x23a   : > { %2586 = vst [vmem:[#allocation1 + $0x6] ss:$9 sm:$0xff] %v2408_v39 }
 0x23b   : > { %2588 = vst [vmem:[#allocation1 + $0x7] ss:$9 sm:$0xff] %v2416_v5 }
 0x242   : > { %v2589_v49 = vld [vmem:[#allocation1] sm:$0xff] }
 0x243   : > { %2591 = vst [vmem:[#allocation1] ss:$9 sm:$0xff] %v2424_v25  ;;  %v4937_v25 = vld [vmem:[%s5218_s21 + $0x3c] sm:$0x3] }
 0x244   : > { %2593 = vst [vmem:[#allocation1 + $0x1] ss:$9 sm:$0xff] %v2432_v0 }
 0x245   : > { %2595 = vst [vmem:[#allocation1 + $0x2] ss:$9 sm:$0xff] %v2440_v3  ;;  %v4939_v3 = vld [vmem:[%s5218_s21 + $0x44] sm:$0x3] }
 0x246   : > { %2597 = vst [vmem:[#allocation1 + $0x3] ss:$9 sm:$0xff] %v2447_v52 }
 0x247   : > { %2599 = vst [vmem:[#allocation1 + $0x4] ss:$9 sm:$0xff] %v2455_v2  ;;  %4921 = vmatmul.msk.bf16.gmra.mxu0 %vm1035_vm3, %v2589_v49  ;;  %v4941_v2 = vld [vmem:[%s5218_s21 + $0x4c] sm:$0x3] }
 0x248   : > { %2601 = vst [vmem:[#allocation1 + $0x5] ss:$9 sm:$0xff] %v2463_v55 }
 0x249   : > { %2603 = vst [vmem:[#allocation1 + $0x6] ss:$9 sm:$0xff] %v2471_v44 }
 0x24a   : > { %2605 = vst [vmem:[#allocation1 + $0x7] ss:$9 sm:$0xff] %v2479_v47 }
 0x251   : > { %v2606_v18 = vld [vmem:[#allocation1] sm:$0xff] }
 0x252   : > { %2608 = vst [vmem:[#allocation1] ss:$9 sm:$0xff] %v2486_v4 }
 0x253   : > { %2610 = vst [vmem:[#allocation1 + $0x1] ss:$9 sm:$0xff] %v2494_v12 }
 0x254   : > { %2711 = vst [vmem:[#allocation1 + $0x20] sm:$0xff] %v4925_v19 }
 0x257   : > { %4922 = vmatmul.msk.bf16.gmra.mxu0 %vm1035_vm3, %v2606_v18  ;;  %v4942_v18 = vld [vmem:[%s5218_s21 + $0x50] sm:$0xe] }
 0x25a   : > { %v2611_v36 = vld [vmem:[#allocation1] sm:$0xff] }
 0x25b   : > { %2709 = vst [vmem:[#allocation1] sm:$0xff] %v4924_v32  ;;  %v6081_v51 = vld [vmem:[#allocation1 + $0x20] ss:$4 sm:$0xff]  ;;  %v6083_v60 = vld [vmem:[#allocation1 + $0x21] ss:$4 sm:$0xff] }
 0x25c   : > { %2725 = vst [vmem:[#allocation1 + $0x20] sm:$0xff] %v4927_v33 }
 0x262   : > { %v6087_v24 = vld [vmem:[#allocation1 + $0x1] ss:$4 sm:$0xff]  ;;  %v6089_v37 = vld [vmem:[#allocation1 + $0x2] ss:$4 sm:$0xff]  ;;  %v6091_v39 = vld [vmem:[#allocation1 + $0x3] ss:$4 sm:$0xff] }
 0x263   : > { %2723 = vst [vmem:[#allocation1] sm:$0xff] %v4926_v45  ;;  %v6093_v61 = vld [vmem:[#allocation1 + $0x20] ss:$4 sm:$0xff]  ;;  %v6095_v5 = vld [vmem:[#allocation1 + $0x21] ss:$4 sm:$0xff] }
 0x264   : > { %2734 = vst [vmem:[#allocation1 + $0x20] sm:$0xff] %v4929_v57 }
 0x267   : > { %4923 = vmatmul.msk.bf16.gmra.mxu0 %vm1035_vm3, %v2611_v36 }
 0x26a   : > { %v6100_v50 = vld [vmem:[#allocation1 + $0x1] ss:$4 sm:$0xff]  ;;  %v6102_v48 = vld [vmem:[#allocation1 + $0x2] ss:$4 sm:$0xff]  ;;  %v6104_v46 = vld [vmem:[#allocation1 + $0x3] ss:$4 sm:$0xff] }
 0x26b   : > { %2732 = vst [vmem:[#allocation1] sm:$0xff] %v4928_v31  ;;  %v6106_v8 = vld [vmem:[#allocation1 + $0x20] ss:$4 sm:$0xff]  ;;  %v6108_v9 = vld [vmem:[#allocation1 + $0x21] ss:$4 sm:$0xff] }
 0x26c   : > { %2743 = vst [vmem:[#allocation1 + $0x20] sm:$0xff] %v4931_v41 }
 0x272   : > { %v6112_v53 = vld [vmem:[#allocation1 + $0x1] ss:$4 sm:$0xff]  ;;  %v6114_v23 = vld [vmem:[#allocation1 + $0x2] ss:$4 sm:$0xff]  ;;  %v6116_v34 = vld [vmem:[#allocation1 + $0x3] ss:$4 sm:$0xff] }
 0x273   : > { %2741 = vst [vmem:[#allocation1] sm:$0xff] %v4930_v11  ;;  %v6118_v40 = vld [vmem:[#allocation1 + $0x20] ss:$4 sm:$0xff]  ;;  %v6120_v27 = vld [vmem:[#allocation1 + $0x21] ss:$4 sm:$0xff] }
 0x274   : > { %2752 = vst [vmem:[#allocation1 + $0x20] sm:$0xff] %v4933_v30  ;;  %v5114_v11 = vld [vmem:[%s7072_s1 + $0x30] sm:$0xff]  ;;  %v6269_v30 = vpop.f32.mrf.mxu2 }
 0x275   : > { %3284 = vmatpush.bf16.msra.mxu2 %v5114_v11 }
 0x27a   : > { %v6124_v42 = vld [vmem:[#allocation1 + $0x1] ss:$4 sm:$0xff]  ;;  %v6126_v10 = vld [vmem:[#allocation1 + $0x2] ss:$4 sm:$0xff]  ;;  %v6128_v7 = vld [vmem:[#allocation1 + $0x3] ss:$4 sm:$0xff] }
 0x27b   : > { %2750 = vst [vmem:[#allocation1] sm:$0xff] %v4932_v35  ;;  %v6130_v13 = vld [vmem:[#allocation1 + $0x20] ss:$4 sm:$0xff]  ;;  %v6132_v43 = vld [vmem:[#allocation1 + $0x21] ss:$4 sm:$0xff] }
 0x27c   : > { %2761 = vst [vmem:[#allocation1 + $0x20] sm:$0xff] %v4935_v38  ;;  %v4959_v38 = vld [vmem:[%s5218_s21 + $0x18] sm:$0xf] }
 0x282   : > { %v6136_v26 = vld [vmem:[#allocation1 + $0x1] ss:$4 sm:$0xff]  ;;  %v6138_v28 = vld [vmem:[#allocation1 + $0x2] ss:$4 sm:$0xff]  ;;  %v6140_v29 = vld [vmem:[#allocation1 + $0x3] ss:$4 sm:$0xff] }
 0x283   : > { %2759 = vst [vmem:[#allocation1] sm:$0xff] %v4934_v14  ;;  %v6142_v0 = vld [vmem:[#allocation1 + $0x20] ss:$4 sm:$0xff]  ;;  %v6144_v63 = vld [vmem:[#allocation1 + $0x21] ss:$4 sm:$0xff] }
 0x284   : > { %2770 = vst [vmem:[#allocation1 + $0x20] sm:$0xff] %v4937_v25 }
 0x28a   : > { %v6148_v17 = vld [vmem:[#allocation1 + $0x1] ss:$4 sm:$0xff]  ;;  %v6150_v21 = vld [vmem:[#allocation1 + $0x2] ss:$4 sm:$0xff]  ;;  %v6152_v49 = vld [vmem:[#allocation1 + $0x3] ss:$4 sm:$0xff] }
 0x28b   : > { %2768 = vst [vmem:[#allocation1] sm:$0xff] %v4936_v1  ;;  %v6154_v52 = vld [vmem:[#allocation1 + $0x20] ss:$4 sm:$0xff]  ;;  %v6156_v58 = vld [vmem:[#allocation1 + $0x21] ss:$4 sm:$0xff] }
 0x28c   : > { %2779 = vst [vmem:[#allocation1 + $0x20] sm:$0xff] %v4939_v3 }
 0x292   : > { %v6160_v6 = vld [vmem:[#allocation1 + $0x1] ss:$4 sm:$0xff]  ;;  %v6162_v55 = vld [vmem:[#allocation1 + $0x2] ss:$4 sm:$0xff]  ;;  %v6164_v44 = vld [vmem:[#allocation1 + $0x3] ss:$4 sm:$0xff] }
 0x293   : > { %2777 = vst [vmem:[#allocation1] sm:$0xff] %v4938_v62  ;;  %v6166_v47 = vld [vmem:[#allocation1 + $0x20] ss:$4 sm:$0xff]  ;;  %v6168_v54 = vld [vmem:[#allocation1 + $0x21] ss:$4 sm:$0xff] }
 0x294   : > { %2788 = vst [vmem:[#allocation1 + $0x20] sm:$0xff] %v4941_v2  ;;  %v4961_v62 = vld [vmem:[%s5218_s21 + $0x20] sm:$0xf]  ;;  %v4960_v2 = vld [vmem:[%s5218_s21 + $0x1c] sm:$0x1] }
 0x29a   : > { %v6172_v15 = vld [vmem:[#allocation1 + $0x1] ss:$4 sm:$0xff]  ;;  %v6174_v22 = vld [vmem:[#allocation1 + $0x2] ss:$4 sm:$0xff]  ;;  %v6176_v16 = vld [vmem:[#allocation1 + $0x3] ss:$4 sm:$0xff] }
 0x29b   : > { %2786 = vst [vmem:[#allocation1] sm:$0xff] %v4940_v56  ;;  %v6178_v4 = vld [vmem:[#allocation1 + $0x20] ss:$4 sm:$0xff]  ;;  %v6180_v12 = vld [vmem:[#allocation1 + $0x21] ss:$4 sm:$0xff] }
 0x29c   : > { %2797 = vst [vmem:[#allocation1 + $0x20] sm:$0xff] %v4943_v59  ;;  %v4962_v59 = vld [vmem:[%s5218_s21 + $0x24] sm:$0x1] }
 0x2a2   : > { %v6183_v19 = vld [vmem:[#allocation1 + $0x1] ss:$4 sm:$0xff]  ;;  %v6185_v32 = vld [vmem:[#allocation1 + $0x2] ss:$4 sm:$0xff]  ;;  %v6187_v33 = vld [vmem:[#allocation1 + $0x3] ss:$4 sm:$0xff] }
 0x2a3   : > { %2795 = vst [vmem:[#allocation1] sm:$0xff] %v4942_v18  ;;  %v6189_v36 = vld [vmem:[#allocation1 + $0x20] ss:$4 sm:$0xff]  ;;  %v6191_v45 = vld [vmem:[#allocation1 + $0x21] ss:$4 sm:$0xff] }
 0x2aa   : > { %v6193_v57 = vld [vmem:[#allocation1 + $0x2] ss:$4 sm:$0xff]  ;;  %v6195_v31 = vld [vmem:[#allocation1 + $0x3] ss:$4 sm:$0xff]  ;;  %v6197_v41 = vld [vmem:[#allocation1 + $0x1] ss:$4 sm:$0xff] }
 0x2ab   : > { %2818 = vst [vmem:[#allocation1 + $0x6] ss:$9 sm:$0xff] %v6102_v48  ;;  %v6210_v48 = vpop.f32.mrf.mxu1 }
 0x2ac   : > { %2806 = vst [vmem:[#allocation1] ss:$9 sm:$0xff] %v6087_v24 }
 0x2ad   : > { %2808 = vst [vmem:[#allocation1 + $0x1] ss:$9 sm:$0xff] %v6089_v37 }
 0x2ae   : > { %2810 = vst [vmem:[#allocation1 + $0x2] ss:$9 sm:$0xff] %v6091_v39 }
 0x2af   : > { %2812 = vst [vmem:[#allocation1 + $0x3] ss:$9 sm:$0xff] %v6081_v51 }
 0x2b0   : > { %2814 = vst [vmem:[#allocation1 + $0x4] ss:$9 sm:$0xff] %v6083_v60 }
 0x2b1   : > { %2816 = vst [vmem:[#allocation1 + $0x5] ss:$9 sm:$0xff] %v6100_v50 }
 0x2b2   : > { %2820 = vst [vmem:[#allocation1 + $0x7] ss:$9 sm:$0xff] %v6104_v46 }
 0x2b3   : > { %v6220_v51 = vpop.f32.mrf.mxu1 }
 0x2b9   : > { %v2821_v24 = vld [vmem:[#allocation1] sm:$0xff] }
 0x2ba   : > { %4950 = vmatmul.msk.bf16.vlgmr.msra.gmra.mxu1 %vm1035_vm3, %v2821_v24  ;;  %2822 = vst [vmem:[#allocation1] ss:$9 sm:$0xff] %v6093_v61 }
 0x2bb   : > { %2823 = vst [vmem:[#allocation1 + $0x1] ss:$9 sm:$0xff] %v6095_v5  ;;  %v6226_v37 = vpop.f32.mrf.mxu1 }
 0x2bc   : > { %2824 = vst [vmem:[#allocation1 + $0x2] ss:$9 sm:$0xff] %v6112_v53 }
 0x2bd   : > { %2825 = vst [vmem:[#allocation1 + $0x3] ss:$9 sm:$0xff] %v6114_v23  ;;  %v4957_v23 = vld [vmem:[%s5218_s21 + $0x10] sm:$0xf] }
 0x2be   : > { %2826 = vst [vmem:[#allocation1 + $0x4] ss:$9 sm:$0xff] %v6116_v34 }
 0x2bf   : > { %2827 = vst [vmem:[#allocation1 + $0x5] ss:$9 sm:$0xff] %v6106_v8 }
 0x2c0   : > { %2828 = vst [vmem:[#allocation1 + $0x6] ss:$9 sm:$0xff] %v6108_v9 }
 0x2c1   : > { %2829 = vst [vmem:[#allocation1 + $0x7] ss:$9 sm:$0xff] %v6124_v42  ;;  %v4958_v42 = vld [vmem:[%s5218_s21 + $0x14] sm:$0x1] }
 0x2c2   : > { %v2991_v14 = vrot.slane %v4958_v42, 3 }
 0x2c3   : > { %v6234_v39 = vpop.f32.mrf.mxu1 }
 0x2c8   : > { %v2830_v60 = vld [vmem:[#allocation1] sm:$0xff] }
 0x2c9   : > { %2831 = vst [vmem:[#allocation1] ss:$9 sm:$0xff] %v6126_v10 }
 0x2ca   : > { %4951 = vmatmul.msk.bf16.gmra.mxu1 %vm1035_vm3, %v2830_v60  ;;  %2832 = vst [vmem:[#allocation1 + $0x1] ss:$9 sm:$0xff] %v6128_v7  ;;  %v2992_v7 = vrot.slane %v4959_v38, 3  ;;  %v4965_v60 = vld [vmem:[%s5218_s21 + $0x30] sm:$0xf] }
 0x2cb   : > { %2833 = vst [vmem:[#allocation1 + $0x2] ss:$9 sm:$0xff] %v6118_v40  ;;  %v6244_v5 = vpop.f32.mrf.mxu1  ;;  %v2990_v40 = vrot.slane %v4957_v23, 3 }
 0x2cc   : > { %2834 = vst [vmem:[#allocation1 + $0x3] ss:$9 sm:$0xff] %v6120_v27  ;;  %v6275_v27 = vpop.f32.mrf.mxu2  ;;  %v3031_v1 = vsel %vm269_vm11, %v4959_v38, %v2992_v7 }
 0x2cd   : > { %2835 = vst [vmem:[#allocation1 + $0x4] ss:$9 sm:$0xff] %v6136_v26  ;;  %v3013_v10 = vsel %vm265_vm8, %v4957_v23, %v2990_v40  ;;  %v3012_v25 = vsel %vm261_vm13, %v4957_v23, %v2990_v40 }
 0x2ce   : > { %2836 = vst [vmem:[#allocation1 + $0x5] ss:$9 sm:$0xff] %v6138_v28  ;;  %v3015_v26 = vrot.slane %v3013_v10, 1 }
 0x2cf   : > { %2837 = vst [vmem:[#allocation1 + $0x6] ss:$9 sm:$0xff] %v6140_v29 }
 0x2d0   : > { %2838 = vst [vmem:[#allocation1 + $0x7] ss:$9 sm:$0xff] %v6130_v13  ;;  %v3016_v13 = vsel %vm269_vm11, %v4957_v23, %v2990_v40 }
 0x2d1   : > { %v3018_v28 = vrot.slane %v3016_v13, 2 }
 0x2d3   : > { %v6249_v46 = vpop.f32.mrf.mxu1 }
 0x2d7   : > { %v2839_v61 = vld [vmem:[#allocation1] sm:$0xff] }
 0x2d8   : > { %2840 = vst [vmem:[#allocation1] ss:$9 sm:$0xff] %v6132_v43  ;;  %v3019_v43 = vsel %vm273_vm12, %v4957_v23, %v2990_v40  ;;  %v2998_v23 = vrot.slane %v4965_v60, 3 }
 0x2d9   : > { %2841 = vst [vmem:[#allocation1 + $0x1] ss:$9 sm:$0xff] %v6148_v17  ;;  %v6291_v17 = vpop.f32.mrf.mxu2 }
 0x2da   : > { %4952 = vmatmul.msk.bf16.gmra.mxu1 %vm1035_vm3, %v2839_v61  ;;  %2842 = vst [vmem:[#allocation1 + $0x2] ss:$9 sm:$0xff] %v6150_v21  ;;  %v3024_v21 = vsel %vm261_vm13, %v4958_v42, %v2991_v14  ;;  %v3073_v14 = vsel %vm265_vm8, %v4965_v60, %v2998_v23 }
 0x2db   : > { %2843 = vst [vmem:[#allocation1 + $0x3] ss:$9 sm:$0xff] %v6152_v49  ;;  %v6258_v8 = vpop.f32.mrf.mxu1  ;;  %v3027_v49 = vsel %vm261_vm13, %v4959_v38, %v2992_v7 }
 0x2dc   : > { %2844 = vst [vmem:[#allocation1 + $0x4] ss:$9 sm:$0xff] %v6142_v0  ;;  %v3021_v0 = vrot.slane %v3019_v43, 3 }
 0x2dd   : > { %2845 = vst [vmem:[#allocation1 + $0x5] ss:$9 sm:$0xff] %v6144_v63  ;;  %v3028_v63 = vsel %vm265_vm8, %v4959_v38, %v2992_v7 }
 0x2de   : > { %2846 = vst [vmem:[#allocation1 + $0x6] ss:$9 sm:$0xff] %v6160_v6  ;;  %v2994_v6 = vrot.slane %v4961_v62, 3 }
 0x2df   : > { %2847 = vst [vmem:[#allocation1 + $0x7] ss:$9 sm:$0xff] %v6162_v55  ;;  %v3034_v55 = vsel %vm273_vm12, %v4959_v38, %v2992_v7 }
 0x2e0   : > { %v3036_v56 = vrot.slane %v3034_v55, 3  ;;  %v4968_v55 = vld [vmem:[%s5218_s21 + $0x3c] sm:$0x1] }
 0x2e3   : > { %v6271_v53 = vpop.f32.mrf.mxu1 }
 0x2e6   : > { %v2848_v50 = vld [vmem:[#allocation1] sm:$0xff] }
 0x2e7   : > { %2849 = vst [vmem:[#allocation1] ss:$9 sm:$0xff] %v6164_v44 }
 0x2e8   : > { %2850 = vst [vmem:[#allocation1 + $0x1] ss:$9 sm:$0xff] %v6154_v52  ;;  %v3030_v52 = vrot.slane %v3028_v63, 1  ;;  %v3075_v63 = vrot.slane %v3073_v14, 1 }
 0x2e9   : > { %2851 = vst [vmem:[#allocation1 + $0x2] ss:$9 sm:$0xff] %v6156_v58  ;;  %v3033_v58 = vrot.slane %v3031_v1, 2 }
 0x2ea   : > { %2852 = vst [vmem:[#allocation1 + $0x3] ss:$9 sm:$0xff] %v6172_v15  ;;  %4953 = vmatmul.msk.bf16.gmra.mxu1 %vm1035_vm3, %v2848_v50  ;;  %v3043_v15 = vsel %vm265_vm8, %v4961_v62, %v2994_v6  ;;  %v4964_v50 = vld [vmem:[%s5218_s21 + $0x2c] sm:$0x1] }
 0x2eb   : > { %2853 = vst [vmem:[#allocation1 + $0x4] ss:$9 sm:$0xff] %v6174_v22  ;;  %v6277_v35 = vpop.f32.mrf.mxu1  ;;  %v4963_v22 = vld [vmem:[%s5218_s21 + $0x28] sm:$0xf]  ;;  %v2997_v7 = vrot.slane %v4964_v50, 3 }
 0x2ec   : > { %2854 = vst [vmem:[#allocation1 + $0x5] ss:$9 sm:$0xff] %v6176_v16  ;;  %v3046_v16 = vsel %vm269_vm11, %v4961_v62, %v2994_v6 }
 0x2ed   : > { %2855 = vst [vmem:[#allocation1 + $0x6] ss:$9 sm:$0xff] %v6166_v47  ;;  %v6300_v47 = vpop.f32.mrf.mxu2 }
 0x2ee   : > { %2856 = vst [vmem:[#allocation1 + $0x7] ss:$9 sm:$0xff] %v6168_v54  ;;  %v2993_v54 = vrot.slane %v4960_v2, 3 }
 0x2f3   : > { %v6289_v3 = vpop.f32.mrf.mxu1 }
 0x2f5   : > { %v2857_v9 = vld [vmem:[#allocation1] sm:$0xff] }
 0x2f6   : > { %2858 = vst [vmem:[#allocation1] ss:$9 sm:$0xff] %v6183_v19  ;;  %v2995_v19 = vrot.slane %v4962_v59, 3 }
 0x2f7   : > { %2859 = vst [vmem:[#allocation1 + $0x1] ss:$9 sm:$0xff] %v6185_v32  ;;  %v3042_v32 = vsel %vm261_vm13, %v4961_v62, %v2994_v6 }
 0x2f8   : > { %2860 = vst [vmem:[#allocation1 + $0x2] ss:$9 sm:$0xff] %v6187_v33  ;;  %v3045_v33 = vrot.slane %v3043_v15, 1  ;;  %v3054_v11 = vsel %vm261_vm13, %v4962_v59, %v2995_v19 }
 0x2f9   : > { %2861 = vst [vmem:[#allocation1 + $0x3] ss:$9 sm:$0xff] %v6178_v4  ;;  %v3039_v4 = vsel %vm261_vm13, %v4960_v2, %v2993_v54  ;;  %v4969_v2 = vld [vmem:[%s5218_s21 + $0x40] sm:$0xf] }
 0x2fa   : > { %2862 = vst [vmem:[#allocation1 + $0x4] ss:$9 sm:$0xff] %v6180_v12  ;;  %4954 = vmatmul.msk.bf16.gmra.mxu1 %vm1035_vm3, %v2857_v9  ;;  %v3049_v12 = vsel %vm273_vm12, %v4961_v62, %v2994_v6 }
 0x2fb   : > { %2863 = vst [vmem:[#allocation1 + $0x5] ss:$9 sm:$0xff] %v6197_v41  ;;  %v6298_v44 = vpop.f32.mrf.mxu1  ;;  %v6313_v41 = vpop.f32.mrf.mxu2 }
 0x2fc   : > { %2864 = vst [vmem:[#allocation1 + $0x6] ss:$9 sm:$0xff] %v6193_v57  ;;  %v3051_v57 = vrot.slane %v3049_v12, 3 }
 0x2fd   : > { %2865 = vst [vmem:[#allocation1 + $0x7] ss:$9 sm:$0xff] %v6195_v31 }
 0x303   : > { %v6311_v31 = vpop.f32.mrf.mxu1  ;;  %v6321_v40 = vpop.f32.mrf.mxu2 }
 0x304   : > { %v2866_v34 = vld [vmem:[#allocation1] sm:$0xff] }
 0x305   : > { %2867 = vst [vmem:[#allocation1] ss:$9 sm:$0xff] %v6189_v36  ;;  %v2996_v36 = vrot.slane %v4963_v22, 3 }
 0x306   : > { %2868 = vst [vmem:[#allocation1 + $0x1] ss:$9 sm:$0xff] %v6191_v45  ;;  %v3048_v45 = vrot.slane %v3046_v16, 2  ;;  %v3001_v16 = vrot.slane %v4968_v55, 3 }
 0x307   : > { %v3057_v24 = vsel %vm261_vm13, %v4963_v22, %v2996_v36  ;;  %v3058_v61 = vsel %vm265_vm8, %v4963_v22, %v2996_v36  ;;  %v3061_v9 = vsel %vm269_vm11, %v4963_v22, %v2996_v36  ;;  %v3064_v38 = vsel %vm273_vm12, %v4963_v22, %v2996_v36 }
 0x308   : > { %v3060_v10 = vrot.slane %v3058_v61, 1  ;;  %v3063_v13 = vrot.slane %v3061_v9, 2  ;;  %v3066_v43 = vrot.slane %v3064_v38, 3  ;;  %v3099_v36 = vsel %vm261_vm13, %v4968_v55, %v3001_v16  ;;  %v4972_v38 = vld [vmem:[%s5218_s21 + $0x4c] sm:$0x1] }
 0x30a   : > { %4955 = vmatmul.msk.bf16.gmra.mxu1 %vm1035_vm3, %v2866_v34 }
 0x30b   : > { %v1206_v34 = vpop.f32.mrf.mxu1  ;;  %v1441_v1 = vpop.f32.mrf.mxu2 }
 0x30c   : > { %v6325_v42 = vadd.f32 %v1206_v34, %v6269_v30  ;;  %v3072_v30 = vsel %vm261_vm13, %v4965_v60, %v2998_v23 }
 0x30d   : > { %v2869_v29 = vld [vmem:[#allocation1] sm:$0xff] }
 0x30e   : > { %3163 = vst [vmem:[#allocation1] ss:$9 sm:$0xff] %v3012_v25  ;;  %v1197_v25 = vadd.f32 %v6277_v35, %v6210_v48  ;;  %v5115_v48 = vld [vmem:[%s7072_s1 + $0x38] sm:$0xff] }
 0x30f   : > { %3166 = vst [vmem:[#allocation1 + $0x1] ss:$9 sm:$0xff] %v3015_v26  ;;  %4107 = vmatpush.bf16.msra.mxu3 %v5115_v48 }
 0x310   : > { %3169 = vst [vmem:[#allocation1 + $0x2] ss:$9 sm:$0xff] %v3018_v28  ;;  %v3076_v28 = vsel %vm269_vm11, %v4965_v60, %v2998_v23 }
 0x311   : > { %3172 = vst [vmem:[#allocation1 + $0x3] ss:$9 sm:$0xff] %v3021_v0  ;;  %v3079_v0 = vsel %vm273_vm12, %v4965_v60, %v2998_v23  ;;  %v3078_v35 = vrot.slane %v3076_v28, 2 }
 0x312   : > { %3174 = vst [vmem:[#allocation1 + $0x4] ss:$9 sm:$0xff] %v3024_v21  ;;  %v3081_v21 = vrot.slane %v3079_v0, 3  ;;  %v1084_v0 = vpop.f32.mrf.mxu3 }
 0x313   : > { %3176 = vst [vmem:[#allocation1 + $0x5] ss:$9 sm:$0xff] %v3027_v49  ;;  %v4967_v49 = vld [vmem:[%s5218_s21 + $0x38] sm:$0xf] }
 0x314   : > { %3179 = vst [vmem:[#allocation1 + $0x6] ss:$9 sm:$0xff] %v3030_v52  ;;  %v6339_v52 = vadd.f32 %v1441_v1, %v1197_v25  ;;  %v3000_v62 = vrot.slane %v4967_v49, 3  ;;  %v3005_v25 = vrot.slane %v4972_v38, 3  ;;  %v4975_v1 = vld [vmem:[%s5218_s21 + $0x58] sm:$0xf] }
 0x315   : > { %3182 = vst [vmem:[#allocation1 + $0x7] ss:$9 sm:$0xff] %v3033_v58  ;;  %v4966_v58 = vld [vmem:[%s5218_s21 + $0x34] sm:$0x1] }
 0x316   : > { %v2999_v6 = vrot.slane %v4966_v58, 3  ;;  %v3088_v54 = vsel %vm265_vm8, %v4967_v49, %v3000_v62  ;;  %v3091_v59 = vsel %vm269_vm11, %v4967_v49, %v3000_v62  ;;  %v3094_v22 = vsel %vm273_vm12, %v4967_v49, %v3000_v62 }
 0x317   : > { %v3090_v12 = vrot.slane %v3088_v54, 1  ;;  %v3093_v19 = vrot.slane %v3091_v59, 2  ;;  %v3129_v48 = vsel %vm261_vm13, %v4972_v38, %v3005_v25  ;;  %v6374_v59 = vpop.f32.mrf.mxu1  ;;  %v1443_v38 = vpop.f32.mrf.mxu2  ;;  %v1202_v25 = vadd.f32 %v6298_v44, %v6226_v37 }
 0x318   : > { %v3084_v15 = vsel %vm261_vm13, %v4966_v58, %v2999_v6  ;;  %v3008_v58 = vrot.slane %v4975_v1, 3 }
 0x31a   : > { %4956 = vmatmul.msk.bf16.gmra.mxu1 %vm1035_vm3, %v2869_v29  ;;  %v3069_v29 = vsel %vm261_vm13, %v4964_v50, %v2997_v7  ;;  %v6371_v6 = vpop.f32.mrf.mxu3  ;;  %v3148_v16 = vsel %vm265_vm8, %v4975_v1, %v3008_v58 }
 0x31c   : > { %v3183_v18 = vld [vmem:[#allocation1] sm:$0xff] }
 0x31d   : > { %4983 = vmatmul.msk.bf16.vlgmr.msra.gmra.mxu2 %vm1035_vm3, %v3183_v18  ;;  %3185 = vst [vmem:[#allocation1] ss:$9 sm:$0xff] %v3036_v56  ;;  %v3002_v56 = vrot.slane %v4969_v2, 3 }
 0x31e   : > { %3186 = vst [vmem:[#allocation1 + $0x1] ss:$9 sm:$0xff] %v3039_v4  ;;  %v3087_v4 = vsel %vm261_vm13, %v4967_v49, %v3000_v62 }
 0x31f   : > { %3187 = vst [vmem:[#allocation1 + $0x2] ss:$9 sm:$0xff] %v3042_v32  ;;  %v3096_v32 = vrot.slane %v3094_v22, 3  ;;  %v3106_v60 = vsel %vm269_vm11, %v4969_v2, %v3002_v56  ;;  %v3109_v50 = vsel %vm273_vm12, %v4969_v2, %v3002_v56 }
 0x320   : > { %3189 = vst [vmem:[#allocation1 + $0x3] ss:$9 sm:$0xff] %v3045_v33  ;;  %v3103_v33 = vsel %vm265_vm8, %v4969_v2, %v3002_v56  ;;  %v3108_v23 = vrot.slane %v3106_v60, 2  ;;  %v3111_v34 = vrot.slane %v3109_v50, 3  ;;  %v1059_v60 = vpop.f32.mrf.mxu0 }
 0x321   : > { %3191 = vst [vmem:[#allocation1 + $0x4] ss:$9 sm:$0xff] %v3048_v45  ;;  %v3102_v45 = vsel %vm261_vm13, %v4969_v2, %v3002_v56 }
 0x322   : > { %3193 = vst [vmem:[#allocation1 + $0x5] ss:$9 sm:$0xff] %v3051_v57  ;;  %v3105_v57 = vrot.slane %v3103_v33, 1 }
 0x323   : > { %3194 = vst [vmem:[#allocation1 + $0x6] ss:$9 sm:$0xff] %v3054_v11  ;;  %v4971_v11 = vld [vmem:[%s5218_s21 + $0x48] sm:$0xf] }
 0x324   : > { %3195 = vst [vmem:[#allocation1 + $0x7] ss:$9 sm:$0xff] %v3057_v24  ;;  %v4970_v24 = vld [vmem:[%s5218_s21 + $0x44] sm:$0x1]  ;;  %v3004_v61 = vrot.slane %v4971_v11, 3 }
 0x325   : > { %v3003_v9 = vrot.slane %v4970_v24, 3 }
 0x326   : > { %v3121_v7 = vsel %vm269_vm11, %v4971_v11, %v3004_v61  ;;  %v3124_v14 = vsel %vm273_vm12, %v4971_v11, %v3004_v61 }
 0x328   : > { %v6407_v37 = vpop.f32.mrf.mxu0 }
 0x32b   : > { %v3196_v26 = vld [vmem:[#allocation1] sm:$0xff] }
 0x32c   : > { %3198 = vst [vmem:[#allocation1] ss:$9 sm:$0xff] %v3060_v10  ;;  %v3118_v10 = vsel %vm265_vm8, %v4971_v11, %v3004_v61 }
 0x32d   : > { %4984 = vmatmul.msk.bf16.gmra.mxu2 %vm1035_vm3, %v3196_v26  ;;  %3200 = vst [vmem:[#allocation1 + $0x1] ss:$9 sm:$0xff] %v3063_v13  ;;  %v3117_v26 = vsel %vm261_vm13, %v4971_v11, %v3004_v61  ;;  %v3120_v28 = vrot.slane %v3118_v10, 1  ;;  %v4991_v11 = vld [vmem:[%s5218_s21 + $0x14] sm:$0x3]  ;;  %v6386_v61 = vpop.f32.mrf.mxu3 }
 0x32e   : > { %3202 = vst [vmem:[#allocation1 + $0x2] ss:$9 sm:$0xff] %v3066_v43  ;;  %v3114_v43 = vsel %vm261_vm13, %v4970_v24, %v3003_v9  ;;  %v3154_v9 = vsel %vm273_vm12, %v4975_v1, %v3008_v58  ;;  %v3374_v10 = vrot.slane %v4991_v11, 3 }
 0x32f   : > { %3203 = vst [vmem:[#allocation1 + $0x3] ss:$9 sm:$0xff] %v3069_v29  ;;  %v3123_v29 = vrot.slane %v3121_v7, 2 }
 0x330   : > { %3204 = vst [vmem:[#allocation1 + $0x4] ss:$9 sm:$0xff] %v3072_v30  ;;  %v4973_v30 = vld [vmem:[%s5218_s21 + $0x50] sm:$0xf] }
 0x331   : > { %3206 = vst [vmem:[#allocation1 + $0x5] ss:$9 sm:$0xff] %v3075_v63  ;;  %v3126_v63 = vrot.slane %v3124_v14, 3 }
 0x332   : > { %3208 = vst [vmem:[#allocation1 + $0x6] ss:$9 sm:$0xff] %v3078_v35  ;;  %v3006_v35 = vrot.slane %v4973_v30, 3 }
 0x333   : > { %3210 = vst [vmem:[#allocation1 + $0x7] ss:$9 sm:$0xff] %v3081_v21  ;;  %v4974_v21 = vld [vmem:[%s5218_s21 + $0x54] sm:$0x1] }
 0x334   : > { %v3133_v49 = vsel %vm265_vm8, %v4973_v30, %v3006_v35  ;;  %v3136_v62 = vsel %vm269_vm11, %v4973_v30, %v3006_v35  ;;  %v3139_v2 = vsel %vm273_vm12, %v4973_v30, %v3006_v35  ;;  %v3007_v55 = vrot.slane %v4974_v21, 3 }
 0x335   : > { %v3132_v54 = vsel %vm261_vm13, %v4973_v30, %v3006_v35  ;;  %v3135_v56 = vrot.slane %v3133_v49, 1  ;;  %v3141_v22 = vrot.slane %v3139_v2, 3  ;;  %v1091_v44 = vpop.f32.mrf.mxu3 }
 0x33a   : > { %v3211_v18 = vld [vmem:[#allocation1] sm:$0xff] }
 0x33b   : > { %3212 = vst [vmem:[#allocation1] ss:$9 sm:$0xff] %v3084_v15  ;;  %v3138_v15 = vrot.slane %v3136_v62, 2 }
 0x33c   : > { %3213 = vst [vmem:[#allocation1 + $0x1] ss:$9 sm:$0xff] %v3087_v4 }
 0x33d   : > { %4985 = vmatmul.msk.bf16.gmra.mxu2 %vm1035_vm3, %v3211_v18  ;;  %3215 = vst [vmem:[#allocation1 + $0x2] ss:$9 sm:$0xff] %v3090_v12  ;;  %v3151_v12 = vsel %vm269_vm11, %v4975_v1, %v3008_v58  ;;  %v3144_v18 = vsel %vm261_vm13, %v4974_v21, %v3007_v55 }
 0x33e   : > { %3217 = vst [vmem:[#allocation1 + $0x3] ss:$9 sm:$0xff] %v3093_v19  ;;  %v3147_v19 = vsel %vm261_vm13, %v4975_v1, %v3008_v58  ;;  %v3153_v33 = vrot.slane %v3151_v12, 2  ;;  %v3407_v58 = vsel %vm261_vm13, %v4991_v11, %v3374_v10 }
 0x33f   : > { %3219 = vst [vmem:[#allocation1 + $0x4] ss:$9 sm:$0xff] %v3096_v32  ;;  %v3150_v32 = vrot.slane %v3148_v16, 1 }
 0x340   : > { %3220 = vst [vmem:[#allocation1 + $0x5] ss:$9 sm:$0xff] %v3099_v36  ;;  %v4990_v36 = vld [vmem:[%s5218_s21 + $0x10] sm:$0xf] }
 0x341   : > { %3221 = vst [vmem:[#allocation1 + $0x6] ss:$9 sm:$0xff] %v3102_v45  ;;  %v1199_v45 = vadd.f32 %v6289_v3, %v6220_v51  ;;  %v3373_v24 = vrot.slane %v4990_v36, 3 }
 0x342   : > { %3223 = vst [vmem:[#allocation1 + $0x7] ss:$9 sm:$0xff] %v3105_v57  ;;  %v4976_v57 = vld [vmem:[%s5218_s21 + $0x5c] sm:$0x1] }
 0x343   : > { %v3009_v50 = vrot.slane %v4976_v57, 3  ;;  %v3396_v51 = vsel %vm265_vm8, %v4990_v36, %v3373_v24  ;;  %v3399_v3 = vsel %vm269_vm11, %v4990_v36, %v3373_v24 }
 0x344   : > { %v3398_v30 = vrot.slane %v3396_v51, 1 }
 0x349   : > { %v3224_v13 = vld [vmem:[#allocation1] sm:$0xff] }
 0x34a   : > { %3226 = vst [vmem:[#allocation1] ss:$9 sm:$0xff] %v3108_v23  ;;  %v4992_v23 = vld [vmem:[%s5218_s21 + $0x18] sm:$0xf] }
 0x34b   : > { %3228 = vst [vmem:[#allocation1 + $0x1] ss:$9 sm:$0xff] %v3111_v34  ;;  %v1211_v34 = vpop.f32.mrf.mxu1  ;;  %v3375_v14 = vrot.slane %v4992_v23, 3 }
 0x34c   : > { %3229 = vst [vmem:[#allocation1 + $0x2] ss:$9 sm:$0xff] %v3114_v43  ;;  %v6390_v7 = vadd.f32 %v1211_v34, %v1084_v0  ;;  %v3156_v43 = vrot.slane %v3154_v9, 3  ;;  %v3401_v0 = vrot.slane %v3399_v3, 2  ;;  %v1204_v34 = vadd.f32 %v6311_v31, %v6234_v39  ;;  %v1064_v39 = vpop.f32.mrf.mxu0 }
 0x34d   : > { %4986 = vmatmul.msk.bf16.gmra.mxu2 %vm1035_vm3, %v3224_v13  ;;  %3230 = vst [vmem:[#allocation1 + $0x3] ss:$9 sm:$0xff] %v3117_v26  ;;  %v6392_v13 = vadd.f32 %v1443_v38, %v1199_v45  ;;  %v3159_v26 = vsel %vm261_vm13, %v4976_v57, %v3009_v50  ;;  %v3414_v1 = vsel %vm265_vm8, %v4992_v23, %v3375_v14  ;;  %v4993_v45 = vld [vmem:[%s5218_s21 + $0x1c] sm:$0x3]  ;;  %v4994_v57 = vld [vmem:[%s5218_s21 + $0x20] sm:$0xf] }
 0x34e   : > { %3232 = vst [vmem:[#allocation1 + $0x4] ss:$9 sm:$0xff] %v3120_v28  ;;  %v3402_v28 = vsel %vm273_vm12, %v4990_v36, %v3373_v24  ;;  %v3417_v21 = vsel %vm269_vm11, %v4992_v23, %v3375_v14  ;;  %v6405_v49 = vsel %vm273_vm12, %v4992_v23, %v3375_v14  ;;  %v3604_v50 = vshrl.u32 %v3407_v58, 16 }
 0x34f   : > { %3234 = vst [vmem:[#allocation1 + $0x5] ss:$9 sm:$0xff] %v3123_v29  ;;  %v3395_v29 = vsel %vm261_vm13, %v4990_v36, %v3373_v24  ;;  %v3404_v35 = vrot.slane %v3402_v28, 3  ;;  %v3419_v12 = vrot.slane %v3417_v21, 2  ;;  %v1187_v36 = vadd.f32 %v6244_v5, %v1059_v60  ;;  %v5116_v28 = vld [vmem:[%s7072_s1 + $0x40] sm:$0xff] }
 0x350   : > { %3236 = vst [vmem:[#allocation1 + $0x6] ss:$9 sm:$0xff] %v3126_v63  ;;  %v3408_v63 = vsel %vm265_vm8, %v4991_v11, %v3374_v10  ;;  %v3573_v2 = vshrl.u32 %v3395_v29, 16  ;;  %v3601_v24 = vshll.u32 %v3407_v58, 16  ;;  %v3376_v5 = vrot.slane %v4993_v45, 3  ;;  %4365 = vmatpush.bf16.msra.mxu0 %v5116_v28 }
 0x351   : > { %3237 = vst [vmem:[#allocation1 + $0x7] ss:$9 sm:$0xff] %v3129_v48  ;;  %v3410_v62 = vrot.slane %v3408_v63, 1  ;;  %v3597_v11 = vshrl.u32 %v3404_v35, 16  ;;  %v3377_v60 = vrot.slane %v4994_v57, 3  ;;  %v1465_v31 = vadd.f32 %v6291_v17, %v1187_v36 }
 0x352   : > { %v6442_v17 = vld [vmem:[%s5218_s21 + $0x28] sm:$0xf] }
 0x353   : > { %v6410_v55 = vpop.f32.mrf.mxu1  ;;  %v3609_v9 = vshll.u32 %v3410_v62, 16  ;;  %v3603_v29 = vsel %vm5241_vm2, %v3597_v11, %v3601_v24  ;;  %v3431_v36 = vsel %vm261_vm13, %v4994_v57, %v3377_v60 }
 0x358   : > { %v3238_v4 = vld [vmem:[#allocation1] sm:$0xff] }
 0x359   : > { %3239 = vst [vmem:[#allocation1] ss:$9 sm:$0xff] %v3132_v54  ;;  %v1446_v54 = vpop.f32.mrf.mxu2 }
 0x35a   : > { %3241 = vst [vmem:[#allocation1 + $0x1] ss:$9 sm:$0xff] %v3135_v56  ;;  %v3578_v56 = vshll.u32 %v3398_v30, 16  ;;  %v6412_v16 = vadd.f32 %v1446_v54, %v1202_v25  ;;  %v3625_v25 = vshll.u32 %v3419_v12, 16  ;;  %v3432_v54 = vsel %vm265_vm8, %v4994_v57, %v3377_v60 }
 0x35b   : > { %3243 = vst [vmem:[#allocation1 + $0x2] ss:$9 sm:$0xff] %v3138_v15  ;;  %v3581_v15 = vshrl.u32 %v3398_v30, 16  ;;  %v3611_v30 = vsel %vm5241_vm2, %v3604_v50, %v3609_v9  ;;  %v6467_v9 = vpop.f32.mrf.mxu0 }
 0x35c   : > { %3245 = vst [vmem:[#allocation1 + $0x3] ss:$9 sm:$0xff] %v3141_v22  ;;  %v3586_v22 = vshll.u32 %v3401_v0, 16  ;;  %v3580_v38 = vsel %vm5241_vm2, %v3573_v2, %v3578_v56  ;;  %v3426_v2 = vsel %vm265_vm8, %v4993_v45, %v3376_v5 }
 0x35d   : > { %3246 = vst [vmem:[#allocation1 + $0x4] ss:$9 sm:$0xff] %v3144_v18  ;;  %4987 = vmatmul.msk.bf16.gmra.mxu2 %vm1035_vm3, %v3238_v4  ;;  %v3416_v4 = vrot.slane %v3414_v1, 1  ;;  %v3422_v18 = vrot.slane %v6405_v49, 3 }
 0x35e   : > { %3247 = vst [vmem:[#allocation1 + $0x5] ss:$9 sm:$0xff] %v3147_v19  ;;  %v3413_v19 = vsel %vm261_vm13, %v4992_v23, %v3375_v14  ;;  %v3588_v23 = vsel %vm5241_vm2, %v3581_v15, %v3586_v22 }
 0x35f   : > { %3249 = vst [vmem:[#allocation1 + $0x6] ss:$9 sm:$0xff] %v3150_v32  ;;  %v3589_v32 = vshrl.u32 %v3401_v0, 16  ;;  %v3612_v10 = vshrl.u32 %v3413_v19, 16  ;;  %v3617_v51 = vshll.u32 %v3416_v4, 16  ;;  %v3620_v14 = vshrl.u32 %v3416_v4, 16 }
 0x360   : > { %3251 = vst [vmem:[#allocation1 + $0x7] ss:$9 sm:$0xff] %v3153_v33  ;;  %v3594_v33 = vshll.u32 %v3404_v35, 16  ;;  %v3628_v0 = vshrl.u32 %v3419_v12, 16  ;;  %v3633_v63 = vshll.u32 %v3422_v18, 16  ;;  %v1216_v35 = vpop.f32.mrf.mxu1  ;;  %v6461_v4 = vrot.slane %v6442_v17, 3 }
 0x361   : > { %v1448_v1 = vpop.f32.mrf.mxu2  ;;  %v6445_v21 = vadd.f32 %v1216_v35, %v6386_v61  ;;  %v3619_v62 = vsel %vm5241_vm2, %v3612_v10, %v3617_v51  ;;  %v3627_v56 = vsel %vm5241_vm2, %v3620_v14, %v3625_v25  ;;  %v3435_v61 = vsel %vm269_vm11, %v4994_v57, %v3377_v60 }
 0x362   : > { %v6447_v44 = vadd.f32 %v1448_v1, %v1204_v34  ;;  %v3635_v22 = vsel %vm5241_vm2, %v3628_v0, %v3633_v63  ;;  %v3438_v12 = vsel %vm273_vm12, %v4994_v57, %v3377_v60  ;;  %v3425_v19 = vsel %vm261_vm13, %v4993_v45, %v3376_v5 }
 0x363   : > { %v3437_v11 = vrot.slane %v3435_v61, 2  ;;  %v3440_v24 = vrot.slane %v3438_v12, 3  ;;  %v3636_v45 = vshrl.u32 %v3422_v18, 16  ;;  %v3643_v10 = vshrl.u32 %v3425_v19, 16 }
 0x364   : > { %v3651_v60 = vshrl.u32 %v3431_v36, 16  ;;  %v3449_v49 = vsel %vm261_vm13, %v6442_v17, %v6461_v4  ;;  %v3453_v61 = vsel %vm269_vm11, %v6442_v17, %v6461_v4 }
 0x365   : > { %v3664_v28 = vshll.u32 %v3437_v11, 16  ;;  %v3667_v0 = vshrl.u32 %v3437_v11, 16  ;;  %v3672_v63 = vshll.u32 %v3440_v24, 16 }
 0x367   : > { %v3252_v48 = vld [vmem:[#allocation1] sm:$0xff] }
 0x368   : > { %3254 = vst [vmem:[#allocation1] ss:$9 sm:$0xff] %v3156_v43  ;;  %v3596_v43 = vsel %vm5241_vm2, %v3589_v32, %v3594_v33  ;;  %v3428_v32 = vrot.slane %v3426_v2, 1  ;;  %v3434_v33 = vrot.slane %v3432_v54, 1  ;;  %v1218_v57 = vpop.f32.mrf.mxu1 }
 0x369   : > { %3255 = vst [vmem:[#allocation1 + $0x1] ss:$9 sm:$0xff] %v3159_v26  ;;  %v1818_v26 = vpop.f32.mrf.mxu3  ;;  %v1451_v51 = vpop.f32.mrf.mxu2 }
 0x36a   : > { %v6449_v58 = vadd.f32 %v1818_v26, %v1465_v31  ;;  %v3648_v5 = vshll.u32 %v3428_v32, 16  ;;  %v6479_v14 = vadd.f32 %v1451_v51, %v6325_v42  ;;  %v3659_v26 = vshrl.u32 %v3434_v33, 16 }
 0x36b   : > { %v3674_v32 = vsel %vm5241_vm2, %v3667_v0, %v3672_v63 }
 0x36c   : > { %v3650_v35 = vsel %vm5241_vm2, %v3643_v10, %v3648_v5  ;;  %v4999_v10 = vld [vmem:[%s5218_s21 + $0x34] sm:$0x3] }
 0x36d   : > { %4988 = vmatmul.msk.bf16.gmra.mxu2 %vm1035_vm3, %v3252_v48  ;;  %v4995_v48 = vld [vmem:[%s5218_s21 + $0x24] sm:$0x3] }
 0x36e   : > { %v3378_v15 = vrot.slane %v4995_v48, 3 }
 0x370   : > { %v6426_v3 = vld [vmem:[#allocation1] sm:$0xff]  ;;  %v3444_v50 = vsel %vm265_vm8, %v4995_v48, %v3378_v15  ;;  %v3443_v25 = vsel %vm261_vm13, %v4995_v48, %v3378_v15  ;;  %v4997_v48 = vld [vmem:[%s5218_s21 + $0x2c] sm:$0x3] }
 0x371   : > { %3967 = vst [vmem:[#allocation1] ss:$9 sm:$0xff] %v3580_v38  ;;  %v6469_v34 = vpop.f32.mrf.mxu3  ;;  %v6474_v38 = vsel %vm265_vm8, %v6442_v17, %v6461_v4  ;;  %v3446_v31 = vrot.slane %v3444_v50, 1  ;;  %v1453_v11 = vpop.f32.mrf.mxu2 }
 0x372   : > { %3970 = vst [vmem:[#allocation1 + $0x1] ss:$9 sm:$0xff] %v3588_v23  ;;  %v3640_v23 = vshll.u32 %v3425_v19, 16  ;;  %v3452_v18 = vrot.slane %v6474_v38, 1  ;;  %v3456_v38 = vsel %vm273_vm12, %v6442_v17, %v6461_v4 }
 0x373   : > { %3973 = vst [vmem:[#allocation1 + $0x2] ss:$9 sm:$0xff] %v3596_v43  ;;  %v3656_v43 = vshll.u32 %v3434_v33, 16  ;;  %v3687_v54 = vshll.u32 %v3446_v31, 16  ;;  %v3458_v17 = vrot.slane %v3456_v38, 3 }
 0x374   : > { %3976 = vst [vmem:[#allocation1 + $0x3] ss:$9 sm:$0xff] %v3603_v29  ;;  %v1192_v29 = vadd.f32 %v6258_v8, %v1064_v39  ;;  %v3642_v42 = vsel %vm5241_vm2, %v3636_v45, %v3640_v23  ;;  %v3679_v8 = vshll.u32 %v3443_v25, 16  ;;  %v4998_v39 = vld [vmem:[%s5218_s21 + $0x30] sm:$0xf]  ;;  %v3695_v15 = vshll.u32 %v3452_v18, 16 }
 0x375   : > { %3979 = vst [vmem:[#allocation1 + $0x4] ss:$9 sm:$0xff] %v3611_v30  ;;  %v1209_v30 = vadd.f32 %v6374_v59, %v6275_v27  ;;  %v3658_v1 = vsel %vm5241_vm2, %v3651_v60, %v3656_v43  ;;  %v3666_v27 = vsel %vm5241_vm2, %v3659_v26, %v3664_v28  ;;  %v3682_v59 = vshrl.u32 %v3443_v25, 16  ;;  %v6554_v38 = vld [vmem:[%s5218_s21 + $0x40] sm:$0xf] }
 0x376   : > { %3982 = vst [vmem:[#allocation1 + $0x5] ss:$9 sm:$0xff] %v3619_v62  ;;  %v3675_v62 = vshrl.u32 %v3440_v24, 16  ;;  %v1467_v12 = vadd.f32 %v6313_v41, %v1192_v29  ;;  %v3381_v33 = vrot.slane %v4998_v39, 3  ;;  %v2899_v24 = vpop.f32.mrf.mxu1  ;;  %v3382_v43 = vrot.slane %v4999_v10, 3 }
 0x377   : > { %3985 = vst [vmem:[#allocation1 + $0x6] ss:$9 sm:$0xff] %v3627_v56  ;;  %v3690_v56 = vshrl.u32 %v3449_v49, 16  ;;  %v6514_v45 = vadd.f32 %v1453_v11, %v1209_v30  ;;  %v3689_v23 = vsel %vm5241_vm2, %v3682_v59, %v3687_v54  ;;  %v3698_v28 = vshrl.u32 %v3452_v18, 16 }
 0x378   : > { %3988 = vst [vmem:[#allocation1 + $0x7] ss:$9 sm:$0xff] %v3635_v22  ;;  %v2641_v22 = vpop.f32.mrf.mxu0  ;;  %v3681_v50 = vsel %vm5241_vm2, %v3675_v62, %v3679_v8  ;;  %v3468_v4 = vsel %vm265_vm8, %v4998_v39, %v3381_v33  ;;  %v3471_v60 = vsel %vm269_vm11, %v4998_v39, %v3381_v33  ;;  %v3474_v25 = vsel %vm273_vm12, %v4998_v39, %v3381_v33 }
 0x379   : > { %v1823_v19 = vpop.f32.mrf.mxu3  ;;  %v2675_v36 = vadd.f32 %v2641_v22, %v6449_v58  ;;  %v3455_v58 = vrot.slane %v3453_v61, 2  ;;  %v3697_v51 = vsel %vm5241_vm2, %v3690_v56, %v3695_v15  ;;  %v3467_v29 = vsel %vm261_vm13, %v4998_v39, %v3381_v33  ;;  %v1456_v8 = vpop.f32.mrf.mxu2 }
 0x37a   : > { %v6516_v41 = vadd.f32 %v1823_v19, %v1467_v12  ;;  %v3470_v30 = vrot.slane %v3468_v4, 1  ;;  %v3711_v62 = vshll.u32 %v3458_v17, 16  ;;  %v3714_v18 = vshrl.u32 %v3458_v17, 16 }
 0x37b   : > { %v6521_v57 = vadd.f32 %v2899_v24, %v2675_v36  ;;  %v3703_v49 = vshll.u32 %v3455_v58, 16  ;;  %v6542_v39 = vadd.f32 %v1456_v8, %v6390_v7  ;;  %v1214_v36 = vadd.f32 %v6410_v55, %v6371_v6 }
 0x37c   : > { %v3734_v61 = vshll.u32 %v3470_v30, 16  ;;  %v3737_v22 = vshrl.u32 %v3470_v30, 16 }
 0x37d   : > { %4989 = vmatmul.msk.bf16.gmra.mxu2 %vm1035_vm3, %v6426_v3  ;;  %v3380_v3 = vrot.slane %v4997_v48, 3  ;;  %v3705_v54 = vsel %vm5241_vm2, %v3698_v28, %v3703_v49 }
 0x37f   : > { %v3989_v2 = vld [vmem:[#allocation1] sm:$0xff]  ;;  %v3462_v5 = vsel %vm265_vm8, %v4997_v48, %v3380_v3  ;;  %v3461_v31 = vsel %vm261_vm13, %v4997_v48, %v3380_v3  ;;  %v6539_v48 = vsel %vm261_vm13, %v4999_v10, %v3382_v43  ;;  %v3729_v3 = vshrl.u32 %v3467_v29, 16 }
 0x380   : > { %5066 = vmatmul.msk.bf16.vlgmr.msra.gmra.mxu3 %vm1035_vm3, %v3989_v2  ;;  %3991 = vst [vmem:[#allocation1] ss:$9 sm:$0xff] %v3642_v42  ;;  %v3464_v26 = vrot.slane %v3462_v5, 1  ;;  %v3473_v42 = vrot.slane %v3471_v60, 2  ;;  %v6531_v0 = vpop.f32.mrf.mxu0  ;;  %v6535_v2 = vpop.f32.mrf.mxu1  ;;  %v3718_v59 = vshll.u32 %v3461_v31, 16  ;;  %v3721_v56 = vshrl.u32 %v3461_v31, 16 }
 0x381   : > { %3993 = vst [vmem:[#allocation1 + $0x1] ss:$9 sm:$0xff] %v3650_v35  ;;  %v6533_v63 = vpop.f32.mrf.mxu3  ;;  %v3476_v35 = vrot.slane %v3474_v25, 3  ;;  %v3757_v5 = vshll.u32 %v6539_v48, 16  ;;  %v3736_v6 = vsel %vm5241_vm2, %v3729_v3, %v3734_v61  ;;  %v1458_v31 = vpop.f32.mrf.mxu2 }
 0x382   : > { %3995 = vst [vmem:[#allocation1 + $0x2] ss:$9 sm:$0xff] %v3658_v1  ;;  %v3706_v1 = vshrl.u32 %v3455_v58, 16  ;;  %v3726_v15 = vshll.u32 %v3464_v26, 16  ;;  %v3742_v12 = vshll.u32 %v3473_v42, 16  ;;  %v3745_v33 = vshrl.u32 %v3473_v42, 16 }
 0x383   : > { %3997 = vst [vmem:[#allocation1 + $0x3] ss:$9 sm:$0xff] %v3666_v27  ;;  %v5000_v27 = vld [vmem:[%s5218_s21 + $0x38] sm:$0xf]  ;;  %v3720_v11 = vsel %vm5241_vm2, %v3714_v18, %v3718_v59  ;;  %v3750_v24 = vshll.u32 %v3476_v35, 16  ;;  %v6576_v42 = vadd.f32 %v1458_v31, %v1214_v36 }
 0x384   : > { %3999 = vst [vmem:[#allocation1 + $0x4] ss:$9 sm:$0xff] %v3674_v32  ;;  %v3383_v19 = vrot.slane %v5000_v27, 3  ;;  %v3713_v32 = vsel %vm5241_vm2, %v3706_v1, %v3711_v62  ;;  %v3728_v58 = vsel %vm5241_vm2, %v3721_v56, %v3726_v15  ;;  %v3744_v55 = vsel %vm5241_vm2, %v3737_v22, %v3742_v12 }
 0x385   : > { %4001 = vst [vmem:[#allocation1 + $0x5] ss:$9 sm:$0xff] %v3681_v50  ;;  %v5001_v50 = vld [vmem:[%s5218_s21 + $0x3c] sm:$0x3]  ;;  %v3752_v29 = vsel %vm5241_vm2, %v3745_v33, %v3750_v24  ;;  %v1189_v22 = vadd.f32 %v6249_v46, %v6407_v37 }
 0x386   : > { %4003 = vst [vmem:[#allocation1 + $0x6] ss:$9 sm:$0xff] %v3689_v23  ;;  %v3480_v23 = vsel %vm265_vm8, %v4999_v10, %v3382_v43  ;;  %v3486_v17 = vsel %vm265_vm8, %v5000_v27, %v3383_v19  ;;  %v3384_v60 = vrot.slane %v5001_v50, 3  ;;  %v6567_v43 = vrot.slane %v6554_v38, 3 }
 0x387   : > { %4005 = vst [vmem:[#allocation1 + $0x7] ss:$9 sm:$0xff] %v3697_v51  ;;  %v3753_v51 = vshrl.u32 %v3476_v35, 16  ;;  %v3482_v49 = vrot.slane %v3480_v23, 1  ;;  %v3489_v30 = vsel %vm269_vm11, %v5000_v27, %v3383_v19  ;;  %v3488_v1 = vrot.slane %v3486_v17, 1 }
 0x388   : > { %v2646_v4 = vpop.f32.mrf.mxu0  ;;  %v2904_v28 = vpop.f32.mrf.mxu1  ;;  %v3491_v8 = vrot.slane %v3489_v30, 2  ;;  %v3498_v18 = vsel %vm265_vm8, %v5001_v50, %v3384_v60  ;;  %v3504_v59 = vsel %vm265_vm8, %v6554_v38, %v6567_v43  ;;  %v6592_v3 = vsel %vm269_vm11, %v6554_v38, %v6567_v43 }
 0x389   : > { %v1828_v10 = vpop.f32.mrf.mxu3  ;;  %v2677_v25 = vadd.f32 %v2646_v4, %v6516_v41  ;;  %v3759_v35 = vsel %vm5241_vm2, %v3753_v51, %v3757_v5  ;;  %v3492_v41 = vsel %vm273_vm12, %v5000_v27, %v3383_v19  ;;  %v3765_v15 = vshll.u32 %v3482_v49, 16  ;;  %v1461_v24 = vpop.f32.mrf.mxu2  ;;  %v5003_v5 = vld [vmem:[%s5218_s21 + $0x44] sm:$0x3]  ;;  %v5004_v4 = vld [vmem:[%s5218_s21 + $0x48] sm:$0xf] }
 0x38a   : > { %v6571_v26 = vadd.f32 %v1828_v10, %v6339_v52  ;;  %v3485_v52 = vsel %vm261_vm13, %v5000_v27, %v3383_v19  ;;  %v3494_v56 = vrot.slane %v3492_v41, 3  ;;  %v3773_v27 = vshll.u32 %v3488_v1, 16  ;;  %v5005_v41 = vld [vmem:[%s5218_s21 + $0x4c] sm:$0x3] }
 0x38b   : > { %v6581_v62 = vadd.f32 %v2904_v28, %v2677_v25  ;;  %v3768_v61 = vshrl.u32 %v3485_v52, 16  ;;  %v3497_v12 = vsel %vm261_vm13, %v5001_v50, %v3384_v60  ;;  %v3500_v19 = vrot.slane %v3498_v18, 1 }
 0x38c   : > { %v3503_v36 = vsel %vm261_vm13, %v6554_v38, %v6567_v43  ;;  %v3509_v37 = vrot.slane %v6592_v3, 2  ;;  %v3784_v50 = vshrl.u32 %v3491_v8, 16  ;;  %v6609_v51 = vadd.f32 %v1461_v24, %v6445_v21 }
 0x38d   : > { %v3792_v17 = vshrl.u32 %v3494_v56, 16  ;;  %v3799_v10 = vshrl.u32 %v3497_v12, 16  ;;  %v3804_v60 = vshll.u32 %v3500_v19, 16  ;;  %v3807_v25 = vshrl.u32 %v3503_v36, 16 }
 0x38e   : > { %v4006_v7 = vld [vmem:[#allocation1] sm:$0xff]  ;;  %v1466_v30 = vadd.f32 %v6300_v47, %v1189_v22  ;;  %v3387_v52 = vrot.slane %v5004_v4, 3  ;;  %v3510_v18 = vsel %vm273_vm12, %v6554_v38, %v6567_v43 }
 0x38f   : > { %4008 = vst [vmem:[#allocation1] ss:$9 sm:$0xff] %v3705_v54  ;;  %v3760_v54 = vshrl.u32 %v6539_v48, 16  ;;  %v3806_v47 = vsel %vm5241_vm2, %v3799_v10, %v3804_v60  ;;  %v3512_v19 = vrot.slane %v3510_v18, 3 }
 0x390   : > { %5067 = vmatmul.msk.bf16.gmra.mxu3 %vm1035_vm3, %v4006_v7  ;;  %4010 = vst [vmem:[#allocation1 + $0x1] ss:$9 sm:$0xff] %v3713_v32  ;;  %v3506_v32 = vrot.slane %v3504_v59, 1  ;;  %v6597_v33 = vpop.f32.mrf.mxu0  ;;  %v3776_v7 = vshrl.u32 %v3488_v1, 16  ;;  %v6605_v46 = vpop.f32.mrf.mxu1  ;;  %v3820_v1 = vshll.u32 %v3509_v37, 16  ;;  %v1853_v22 = vadd.f32 %v6469_v34, %v1466_v30 }
 0x391   : > { %4012 = vst [vmem:[#allocation1 + $0x2] ss:$9 sm:$0xff] %v3720_v11  ;;  %v1830_v48 = vpop.f32.mrf.mxu3  ;;  %v3781_v11 = vshll.u32 %v3491_v8, 16  ;;  %v3521_v34 = vsel %vm261_vm13, %v5004_v4, %v3387_v52  ;;  %v3831_v60 = vshrl.u32 %v3512_v19, 16 }
 0x392   : > { %4014 = vst [vmem:[#allocation1 + $0x3] ss:$9 sm:$0xff] %v3728_v58  ;;  %v6603_v23 = vadd.f32 %v1830_v48, %v6392_v13  ;;  %v3789_v58 = vshll.u32 %v3494_v56, 16  ;;  %v3796_v13 = vshll.u32 %v3497_v12, 16  ;;  %v3812_v31 = vshll.u32 %v3506_v32, 16 }
 0x393   : > { %4016 = vst [vmem:[#allocation1 + $0x4] ss:$9 sm:$0xff] %v3736_v6  ;;  %v3767_v6 = vsel %vm5241_vm2, %v3760_v54, %v3765_v15  ;;  %v3783_v21 = vsel %vm5241_vm2, %v3776_v7, %v3781_v11  ;;  %v3815_v49 = vshrl.u32 %v3506_v32, 16  ;;  %v3388_v15 = vrot.slane %v5005_v41, 3 }
 0x394   : > { %4018 = vst [vmem:[#allocation1 + $0x5] ss:$9 sm:$0xff] %v3744_v55  ;;  %v3775_v55 = vsel %vm5241_vm2, %v3768_v61, %v3773_v27  ;;  %v3798_v8 = vsel %vm5241_vm2, %v3792_v17, %v3796_v13  ;;  %v3814_v59 = vsel %vm5241_vm2, %v3807_v25, %v3812_v31  ;;  %v1463_v27 = vpop.f32.mrf.mxu2  ;;  %v3522_v32 = vsel %vm265_vm8, %v5004_v4, %v3387_v52  ;;  %v5006_v17 = vld [vmem:[%s5218_s21 + $0x50] sm:$0xf] }
 0x395   : > { %4020 = vst [vmem:[#allocation1 + $0x6] ss:$9 sm:$0xff] %v3752_v29  ;;  %v3386_v29 = vrot.slane %v5003_v5, 3  ;;  %v3822_v12 = vsel %vm5241_vm2, %v3815_v49, %v3820_v1  ;;  %v3525_v48 = vsel %vm269_vm11, %v5004_v4, %v3387_v52  ;;  %v3528_v7 = vsel %vm273_vm12, %v5004_v4, %v3387_v52  ;;  %v5008_v27 = vld [vmem:[%s5218_s21 + $0x58] sm:$0xf] }
 0x396   : > { %4022 = vst [vmem:[#allocation1 + $0x7] ss:$9 sm:$0xff] %v3759_v35  ;;  %v3791_v35 = vsel %vm5241_vm2, %v3784_v50, %v3789_v58  ;;  %v3524_v11 = vrot.slane %v3522_v32, 1  ;;  %v3534_v24 = vsel %vm265_vm8, %v5005_v41, %v3388_v15  ;;  %v2676_v50 = vadd.f32 %v6531_v0, %v1853_v22 }
 0x397   : > { %v3516_v3 = vsel %vm265_vm8, %v5003_v5, %v3386_v29  ;;  %v3527_v58 = vrot.slane %v3525_v48, 2  ;;  %v3530_v13 = vrot.slane %v3528_v7, 3  ;;  %v3533_v10 = vsel %vm261_vm13, %v5005_v41, %v3388_v15 }
 0x398   : > { %v2651_v54 = vpop.f32.mrf.mxu0  ;;  %v2909_v43 = vpop.f32.mrf.mxu1  ;;  %v3536_v25 = vrot.slane %v3534_v24, 1  ;;  %v3389_v1 = vrot.slane %v5006_v17, 3  ;;  %v3854_v52 = vshrl.u32 %v3524_v11, 16 }
 0x399   : > { %v1833_v56 = vpop.f32.mrf.mxu3  ;;  %v2679_v61 = vadd.f32 %v2651_v54, %v6571_v26  ;;  %v3518_v26 = vrot.slane %v3516_v3, 1  ;;  %v3870_v3 = vshrl.u32 %v3530_v13, 16 }
 0x39a   : > { %v6636_v38 = vadd.f32 %v1833_v56, %v6412_v16  ;;  %v3515_v16 = vsel %vm261_vm13, %v5003_v5, %v3386_v29  ;;  %v3851_v29 = vshll.u32 %v3524_v11, 16  ;;  %v3882_v22 = vshll.u32 %v3536_v25, 16 }
 0x39b   : > { %v6643_v36 = vadd.f32 %v2909_v43, %v2679_v61  ;;  %v3835_v5 = vshll.u32 %v3515_v16, 16  ;;  %v3838_v31 = vshrl.u32 %v3515_v16, 16  ;;  %v3874_v61 = vshll.u32 %v3533_v10, 16 }
 0x39c   : > { %v3543_v7 = vsel %vm269_vm11, %v5006_v17, %v3389_v1 }
 0x39d   : > { %v4023_v28 = vld [vmem:[#allocation1] sm:$0xff] }
 0x39e   : > { %4025 = vst [vmem:[#allocation1] ss:$9 sm:$0xff] %v3767_v6  ;;  %v3823_v6 = vshrl.u32 %v3509_v37, 16 }
 0x39f   : > { %4027 = vst [vmem:[#allocation1 + $0x1] ss:$9 sm:$0xff] %v3775_v55  ;;  %v3828_v55 = vshll.u32 %v3512_v19, 16  ;;  %v2934_v19 = vadd.f32 %v6535_v2, %v2676_v50  ;;  %v3546_v2 = vsel %vm273_vm12, %v5006_v17, %v3389_v1 }
 0x3a0   : > { %5068 = vmatmul.msk.bf16.gmra.mxu3 %vm1035_vm3, %v4023_v28  ;;  %4029 = vst [vmem:[#allocation1 + $0x2] ss:$9 sm:$0xff] %v3783_v21  ;;  %v3843_v28 = vshll.u32 %v3518_v26, 16  ;;  %v3846_v21 = vshrl.u32 %v3521_v34, 16  ;;  %v2653_v49 = vpop.f32.mrf.mxu0  ;;  %v2911_v37 = vpop.f32.mrf.mxu1  ;;  %v3391_v26 = vrot.slane %v5008_v27, 3  ;;  %v3876_v34 = vsel %vm5241_vm2, %v3870_v3, %v3874_v61 }
 0x3a1   : > { %4031 = vst [vmem:[#allocation1 + $0x3] ss:$9 sm:$0xff] %v3791_v35  ;;  %v1835_v4 = vpop.f32.mrf.mxu3  ;;  %v2680_v30 = vadd.f32 %v2653_v49, %v6603_v23  ;;  %v3286_v35 = vpop.f32.mrf.mxu2  ;;  %v3830_v41 = vsel %vm5241_vm2, %v3823_v6, %v3828_v55  ;;  %v3867_v23 = vshll.u32 %v3530_v13, 16  ;;  %v3539_v6 = vsel %vm261_vm13, %v5006_v17, %v3389_v1 }
 0x3a2   : > { %4033 = vst [vmem:[#allocation1 + $0x4] ss:$9 sm:$0xff] %v3798_v8  ;;  %v6654_v0 = vadd.f32 %v1835_v4, %v6447_v44  ;;  %v3859_v8 = vshll.u32 %v3527_v58, 16  ;;  %v6659_v18 = vadd.f32 %v3286_v35, %v6521_v57  ;;  %v5007_v44 = vld [vmem:[%s5218_s21 + $0x54] sm:$0x3]  ;;  %v3845_v15 = vsel %vm5241_vm2, %v3838_v31, %v3843_v28 }
 0x3a3   : > { %4035 = vst [vmem:[#allocation1 + $0x5] ss:$9 sm:$0xff] %v3806_v47  ;;  %v3837_v47 = vsel %vm5241_vm2, %v3831_v60, %v3835_v5  ;;  %v6663_v54 = vadd.f32 %v2911_v37, %v2680_v30  ;;  %v3853_v43 = vsel %vm5241_vm2, %v3846_v21, %v3851_v29  ;;  %v3877_v57 = vshrl.u32 %v3533_v10, 16  ;;  %v5009_v29 = vld [vmem:[%s5218_s21 + $0x5c] sm:$0x3] }
 0x3a4   : > { %4037 = vst [vmem:[#allocation1 + $0x6] ss:$9 sm:$0xff] %v3814_v59  ;;  %v3862_v59 = vshrl.u32 %v3527_v58, 16  ;;  %v3861_v32 = vsel %vm5241_vm2, %v3854_v52, %v3859_v8  ;;  %v3390_v48 = vrot.slane %v5007_v44, 3  ;;  %v3545_v5 = vrot.slane %v3543_v7, 2 }
 0x3a5   : > { %4039 = vst [vmem:[#allocation1 + $0x7] ss:$9 sm:$0xff] %v3822_v12  ;;  %v3540_v12 = vsel %vm265_vm8, %v5006_v17, %v3389_v1  ;;  %v3884_v58 = vsel %vm5241_vm2, %v3877_v57, %v3882_v22  ;;  %v3548_v28 = vrot.slane %v3546_v2, 3  ;;  %v3558_v21 = vsel %vm265_vm8, %v5008_v27, %v3391_v26 }
 0x3a6   : > { %v3869_v16 = vsel %vm5241_vm2, %v3862_v59, %v3867_v23  ;;  %v3542_v11 = vrot.slane %v3540_v12, 1  ;;  %v3552_v25 = vsel %vm265_vm8, %v5007_v44, %v3390_v48  ;;  %v3885_v17 = vshrl.u32 %v3539_v6, 16 }
 0x3a7   : > { %v3551_v30 = vsel %vm261_vm13, %v5007_v44, %v3390_v48  ;;  %v3554_v37 = vrot.slane %v3552_v25, 1  ;;  %v3557_v35 = vsel %vm261_vm13, %v5008_v27, %v3391_v26  ;;  %v3560_v1 = vrot.slane %v3558_v21, 1 }
 0x3a8   : > { %v2656_v24 = vpop.f32.mrf.mxu0  ;;  %v2914_v10 = vpop.f32.mrf.mxu1  ;;  %v3890_v4 = vshll.u32 %v3542_v11, 16  ;;  %v3898_v52 = vshll.u32 %v3545_v5, 16  ;;  %v3901_v59 = vshrl.u32 %v3545_v5, 16  ;;  %v3906_v23 = vshll.u32 %v3548_v28, 16 }
 0x3a9   : > { %v1838_v50 = vpop.f32.mrf.mxu3  ;;  %v2681_v55 = vadd.f32 %v2656_v24, %v6636_v38  ;;  %v3288_v60 = vpop.f32.mrf.mxu2  ;;  %v3561_v38 = vsel %vm269_vm11, %v5008_v27, %v3391_v26  ;;  %v3909_v3 = vshrl.u32 %v3548_v28, 16  ;;  %v3913_v61 = vshll.u32 %v3551_v30, 16 }
 0x3aa   : > { %v6687_v13 = vadd.f32 %v1838_v50, %v6479_v14  ;;  %v6690_v31 = vadd.f32 %v3288_v60, %v2934_v19  ;;  %v3564_v14 = vsel %vm273_vm12, %v5008_v27, %v3391_v26  ;;  %v3563_v8 = vrot.slane %v3561_v38, 2 }
 0x3ab   : > { %v6693_v49 = vadd.f32 %v2914_v10, %v2681_v55  ;;  %v3916_v22 = vshrl.u32 %v3551_v30, 16  ;;  %v3921_v44 = vshll.u32 %v3554_v37, 16  ;;  %v3924_v48 = vshrl.u32 %v3557_v35, 16  ;;  %v5073_v37 = vld [vmem:[%s5218_s21 + $0x10] sm:$0xe] }
 0x3ac   : > { %v4040_v56 = vld [vmem:[#allocation1] sm:$0xff]  ;;  %v3932_v2 = vshrl.u32 %v3560_v1, 16  ;;  %v3937_v24 = vshll.u32 %v3563_v8, 16  ;;  %v3940_v50 = vshrl.u32 %v3563_v8, 16  ;;  %v5076_v35 = vld [vmem:[%s5218_s21 + $0x1c] sm:$0x3] }
 0x3ad   : > { %4042 = vst [vmem:[#allocation1] ss:$9 sm:$0xff] %v3830_v41  ;;  %v3893_v41 = vshrl.u32 %v3542_v11, 16  ;;  %v3908_v11 = vsel %vm5241_vm2, %v3901_v59, %v3906_v23  ;;  %v3923_v6 = vsel %vm5241_vm2, %v3916_v22, %v3921_v44  ;;  %v5078_v8 = vld [vmem:[%s5218_s21 + $0x24] sm:$0x3] }
 0x3ae   : > { %4044 = vst [vmem:[#allocation1 + $0x1] ss:$9 sm:$0xff] %v3837_v47  ;;  %v3566_v47 = vrot.slane %v3564_v14, 3  ;;  %v3939_v10 = vsel %vm5241_vm2, %v3932_v2, %v3937_v24 }
 0x3af   : > { %4046 = vst [vmem:[#allocation1 + $0x2] ss:$9 sm:$0xff] %v3845_v15  ;;  %v3892_v15 = vsel %vm5241_vm2, %v3885_v17, %v3890_v4 }
 0x3b0   : > { %5069 = vmatmul.msk.bf16.gmra.mxu3 %vm1035_vm3, %v4040_v56  ;;  %4048 = vst [vmem:[#allocation1 + $0x3] ss:$9 sm:$0xff] %v3853_v43  ;;  %v3392_v56 = vrot.slane %v5009_v29, 3  ;;  %v2658_v43 = vpop.f32.mrf.mxu0  ;;  %v2916_v26 = vpop.f32.mrf.mxu1  ;;  %v3948_v28 = vshrl.u32 %v3566_v47, 16 }
 0x3b1   : > { %4050 = vst [vmem:[#allocation1 + $0x4] ss:$9 sm:$0xff] %v3861_v32  ;;  %v1840_v57 = vpop.f32.mrf.mxu3  ;;  %v2682_v12 = vadd.f32 %v2658_v43, %v6654_v0  ;;  %v3291_v19 = vpop.f32.mrf.mxu2  ;;  %v3900_v32 = vsel %vm5241_vm2, %v3893_v41, %v3898_v52 }
 0x3b2   : > { %4052 = vst [vmem:[#allocation1 + $0x5] ss:$9 sm:$0xff] %v3869_v16  ;;  %v6704_v27 = vadd.f32 %v1840_v57, %v6514_v45  ;;  %v3929_v16 = vshll.u32 %v3560_v1, 16  ;;  %v6709_v7 = vadd.f32 %v3291_v19, %v6581_v62  ;;  %v3915_v45 = vsel %vm5241_vm2, %v3909_v3, %v3913_v61  ;;  %v5077_v3 = vld [vmem:[%s5218_s21 + $0x20] sm:$0xe] }
 0x3b3   : > { %4054 = vst [vmem:[#allocation1 + $0x6] ss:$9 sm:$0xff] %v3876_v34  ;;  %v6713_v0 = vadd.f32 %v2916_v26, %v2682_v12  ;;  %v3570_v62 = vsel %vm265_vm8, %v5009_v29, %v3392_v56  ;;  %v3569_v5 = vsel %vm261_vm13, %v5009_v29, %v3392_v56  ;;  %v5074_v29 = vld [vmem:[%s5218_s21 + $0x14] sm:$0x3]  ;;  %v5080_v61 = vld [vmem:[%s5218_s21 + $0x2c] sm:$0x3] }
 0x3b4   : > { %4056 = vst [vmem:[#allocation1 + $0x7] ss:$9 sm:$0xff] %v3884_v58  ;;  %v3945_v58 = vshll.u32 %v3566_v47, 16  ;;  %v3931_v55 = vsel %vm5241_vm2, %v3924_v48, %v3929_v16  ;;  %v3572_v25 = vrot.slane %v3570_v62, 1  ;;  %v3952_v21 = vshll.u32 %v3569_v5, 16 }
 0x3b5   : > { %v3955_v38 = vshrl.u32 %v3569_v5, 16  ;;  %v5079_v26 = vld [vmem:[%s5218_s21 + $0x28] sm:$0xe]  ;;  %v5084_v5 = vld [vmem:[%s5218_s21 + $0x3c] sm:$0x3] }
 0x3b6   : > { %v3947_v60 = vsel %vm5241_vm2, %v3940_v50, %v3945_v58  ;;  %v3960_v14 = vshll.u32 %v3572_v25, 16  ;;  %v3954_v17 = vsel %vm5241_vm2, %v3948_v28, %v3952_v21 }
 0x3b8   : > { %v3962_v4 = vsel %vm5241_vm2, %v3955_v38, %v3960_v14  ;;  %v2661_v19 = vpop.f32.mrf.mxu0  ;;  %v6765_v48 = vpop.f32.mrf.mxu1 }
 0x3b9   : > { %v3293_v16 = vpop.f32.mrf.mxu2 }
 0x3bb   : > { %v4057_v34 = vld [vmem:[#allocation1] sm:$0xff] }
 0x3bc   : > { %4059 = vst [vmem:[#allocation1] ss:$9 sm:$0xff] %v3892_v15 }
 0x3bd   : > { %4061 = vst [vmem:[#allocation1 + $0x1] ss:$9 sm:$0xff] %v3900_v32  ;;  %v1843_v32 = vpop.f32.mrf.mxu3 }
 0x3be   : > { %4063 = vst [vmem:[#allocation1 + $0x2] ss:$9 sm:$0xff] %v3908_v11 }
 0x3bf   : > { %4065 = vst [vmem:[#allocation1 + $0x3] ss:$9 sm:$0xff] %v3915_v45 }
 0x3c0   : > { %5070 = vmatmul.msk.bf16.gmra.mxu3 %vm1035_vm3, %v4057_v34  ;;  %4067 = vst [vmem:[#allocation1 + $0x4] ss:$9 sm:$0xff] %v3923_v6  ;;  %v5082_v34 = vld [vmem:[%s5218_s21 + $0x34] sm:$0x3]  ;;  %v2663_v58 = vpop.f32.mrf.mxu0  ;;  %v1194_v6 = vadd.f32 %v6271_v53, %v6467_v9 }
 0x3c1   : > { %4069 = vst [vmem:[#allocation1 + $0x5] ss:$9 sm:$0xff] %v3931_v55  ;;  %v2921_v55 = vpop.f32.mrf.mxu1 }
 0x3c2   : > { %4071 = vst [vmem:[#allocation1 + $0x6] ss:$9 sm:$0xff] %v3939_v10  ;;  %v3296_v10 = vpop.f32.mrf.mxu2  ;;  %v1468_v25 = vadd.f32 %v6321_v40, %v1194_v6  ;;  %v5086_v40 = vld [vmem:[%s5218_s21 + $0x44] sm:$0x3] }
 0x3c3   : > { %4073 = vst [vmem:[#allocation1 + $0x7] ss:$9 sm:$0xff] %v3947_v60  ;;  %v5081_v60 = vld [vmem:[%s5218_s21 + $0x30] sm:$0xe] }
 0x3c4   : > { %v1855_v9 = vadd.f32 %v6533_v63, %v1468_v25  ;;  %v1862_v63 = vadd.f32 %v1843_v32, %v6542_v39  ;;  %v5088_v32 = vld [vmem:[%s5218_s21 + $0x4c] sm:$0x3] }
 0x3c5   : > { %v1845_v62 = vpop.f32.mrf.mxu3 }
 0x3c8   : > { %v2666_v53 = vpop.f32.mrf.mxu0 }
 0x3c9   : > { %v2685_v6 = vadd.f32 %v2666_v53, %v1862_v63  ;;  %v2684_v53 = vadd.f32 %v2663_v58, %v6704_v27 }
 0x3ca   : > { %v4074_v30 = vld [vmem:[#allocation1] sm:$0xff] }
 0x3cb   : > { %4076 = vst [vmem:[#allocation1] ss:$9 sm:$0xff] %v3954_v17 }
 0x3cc   : > { %4078 = vst [vmem:[#allocation1 + $0x1] ss:$9 sm:$0xff] %v3962_v4 }
 0x3cd   : > { %4179 = vst [vmem:[#allocation1 + $0x20] sm:$0xff] %v5074_v29  ;;  %v1848_v4 = vpop.f32.mrf.mxu3  ;;  %v3298_v29 = vpop.f32.mrf.mxu2 }
 0x3d0   : > { %5071 = vmatmul.msk.bf16.gmra.mxu3 %vm1035_vm3, %v4074_v30  ;;  %v2924_v30 = vpop.f32.mrf.mxu1 }
 0x3d3   : > { %v4079_v1 = vld [vmem:[#allocation1] sm:$0xff] }
 0x3d4   : > { %4177 = vst [vmem:[#allocation1] sm:$0xff] %v5073_v37  ;;  %v6736_v41 = vld [vmem:[#allocation1 + $0x20] ss:$4 sm:$0xff]  ;;  %v6738_v52 = vld [vmem:[#allocation1 + $0x21] ss:$4 sm:$0xff] }
 0x3d5   : > { %4193 = vst [vmem:[#allocation1 + $0x20] sm:$0xff] %v5076_v35  ;;  %v5083_v37 = vld [vmem:[%s5218_s21 + $0x38] sm:$0xe]  ;;  %v2678_v35 = vadd.f32 %v6597_v33, %v1855_v9  ;;  %v6811_v33 = vadd.f32 %v3296_v10, %v6643_v36  ;;  %v1850_v9 = vpop.f32.mrf.mxu3  ;;  %v3301_v39 = vpop.f32.mrf.mxu2 }
 0x3d7   : > { %v2936_v25 = vadd.f32 %v6605_v46, %v2678_v35  ;;  %v6839_v35 = vadd.f32 %v3301_v39, %v6693_v49 }
 0x3d9   : > { %v6830_v46 = vadd.f32 %v3293_v16, %v2936_v25 }
 0x3db   : > { %v6742_v47 = vld [vmem:[#allocation1 + $0x1] ss:$4 sm:$0xff]  ;;  %v6744_v59 = vld [vmem:[#allocation1 + $0x2] ss:$4 sm:$0xff]  ;;  %v6746_v23 = vld [vmem:[#allocation1 + $0x3] ss:$4 sm:$0xff] }
 0x3dc   : > { %4191 = vst [vmem:[#allocation1] sm:$0xff] %v5075_v20  ;;  %v6748_v56 = vld [vmem:[#allocation1 + $0x20] ss:$4 sm:$0xff]  ;;  %v6750_v15 = vld [vmem:[#allocation1 + $0x21] ss:$4 sm:$0xff] }
 0x3dd   : > { %4202 = vst [vmem:[#allocation1 + $0x20] sm:$0xff] %v5078_v8  ;;  %v3303_v16 = vpop.f32.mrf.mxu2 }
 0x3de   : > { %v6847_v58 = vadd.f32 %v3303_v16, %v6713_v0 }
 0x3e0   : > { %5072 = vmatmul.msk.bf16.gmra.mxu3 %vm1035_vm3, %v4079_v1 }
 0x3e3   : > { %v6755_v43 = vld [vmem:[#allocation1 + $0x1] ss:$4 sm:$0xff]  ;;  %v6757_v57 = vld [vmem:[#allocation1 + $0x2] ss:$4 sm:$0xff]  ;;  %v6759_v22 = vld [vmem:[#allocation1 + $0x3] ss:$4 sm:$0xff] }
 0x3e4   : > { %4200 = vst [vmem:[#allocation1] sm:$0xff] %v5077_v3  ;;  %v6761_v44 = vld [vmem:[#allocation1 + $0x20] ss:$4 sm:$0xff]  ;;  %v6763_v12 = vld [vmem:[#allocation1 + $0x21] ss:$4 sm:$0xff] }
 0x3e5   : > { %4211 = vst [vmem:[#allocation1 + $0x20] sm:$0xff] %v5080_v61 }
 0x3eb   : > { %v6769_v11 = vld [vmem:[#allocation1 + $0x1] ss:$4 sm:$0xff]  ;;  %v6771_v2 = vld [vmem:[#allocation1 + $0x2] ss:$4 sm:$0xff]  ;;  %v6773_v24 = vld [vmem:[#allocation1 + $0x3] ss:$4 sm:$0xff] }
 0x3ec   : > { %4209 = vst [vmem:[#allocation1] sm:$0xff] %v5079_v26  ;;  %v6775_v45 = vld [vmem:[#allocation1 + $0x20] ss:$4 sm:$0xff]  ;;  %v6777_v50 = vld [vmem:[#allocation1 + $0x21] ss:$4 sm:$0xff]  ;;  %v1863_v26 = vadd.f32 %v1845_v62, %v6576_v42 }
 0x3ed   : > { %4220 = vst [vmem:[#allocation1 + $0x20] sm:$0xff] %v5082_v34  ;;  %v2668_v34 = vpop.f32.mrf.mxu0  ;;  %v5085_v42 = vld [vmem:[%s5218_s21 + $0x40] sm:$0xe] }
 0x3f3   : > { %v6784_v28 = vld [vmem:[#allocation1 + $0x1] ss:$4 sm:$0xff]  ;;  %v6786_v21 = vld [vmem:[#allocation1 + $0x2] ss:$4 sm:$0xff]  ;;  %v6788_v38 = vld [vmem:[#allocation1 + $0x3] ss:$4 sm:$0xff] }
 0x3f4   : > { %4218 = vst [vmem:[#allocation1] sm:$0xff] %v5081_v60  ;;  %v6790_v14 = vld [vmem:[#allocation1 + $0x20] ss:$4 sm:$0xff]  ;;  %v6792_v17 = vld [vmem:[#allocation1 + $0x21] ss:$4 sm:$0xff]  ;;  %v6814_v60 = vadd.f32 %v3298_v29, %v6663_v54  ;;  %v2683_v54 = vadd.f32 %v2661_v19, %v6687_v13  ;;  %v2942_v13 = vadd.f32 %v2921_v55, %v2684_v53 }
 0x3f5   : > { %4229 = vst [vmem:[#allocation1 + $0x20] sm:$0xff] %v5084_v5  ;;  %v2686_v5 = vadd.f32 %v2668_v34, %v1863_v26  ;;  %v2671_v39 = vpop.f32.mrf.mxu0 }
 0x3f6   : > { %v2941_v63 = vadd.f32 %v6765_v48, %v2683_v54  ;;  %v3306_v54 = vpop.f32.mrf.mxu2 }
 0x3fb   : > { %v6798_v1 = vld [vmem:[#allocation1 + $0x1] ss:$4 sm:$0xff]  ;;  %v6800_v20 = vld [vmem:[#allocation1 + $0x2] ss:$4 sm:$0xff]  ;;  %v6802_v8 = vld [vmem:[#allocation1 + $0x3] ss:$4 sm:$0xff] }
 0x3fc   : > { %4227 = vst [vmem:[#allocation1] sm:$0xff] %v5083_v37  ;;  %v6804_v3 = vld [vmem:[#allocation1 + $0x20] ss:$4 sm:$0xff]  ;;  %v6806_v61 = vld [vmem:[#allocation1 + $0x21] ss:$4 sm:$0xff]  ;;  %v2926_v37 = vpop.f32.mrf.mxu1 }
 0x3fd   : > { %7077 = vst [vmem:[#allocation2_spill] sm:$0xff] %v6804_v3  ;;  %v6819_v3 = vadd.f32 %v2926_v37, %v2686_v5 }
 0x3fe   : > { %7078 = vst [vmem:[#allocation3_spill] sm:$0xff] %v6806_v61  ;;  %v6817_v61 = vadd.f32 %v2924_v30, %v2685_v6  ;;  %v1864_v30 = vadd.f32 %v1848_v4, %v6609_v51  ;;  %v5087_v51 = vld [vmem:[%s5218_s21 + $0x48] sm:$0xe]  ;;  %v5090_v4 = vld [vmem:[%s5218_s21 + $0x54] sm:$0x3] }
 0x3ff   : > { %4238 = vst [vmem:[#allocation1 + $0x20] sm:$0xff] %v5086_v40  ;;  %v5089_v6 = vld [vmem:[%s5218_s21 + $0x50] sm:$0xe] }
 0x403   : > { %v6823_v62 = vld [vmem:[#allocation1 + $0x1] ss:$4 sm:$0xff]  ;;  %v6825_v36 = vld [vmem:[#allocation1 + $0x2] ss:$4 sm:$0xff]  ;;  %v6827_v10 = vld [vmem:[#allocation1 + $0x3] ss:$4 sm:$0xff]  ;;  %v4109_v19 = vpop.f32.mrf.mxu3 }
 0x404   : > { %4236 = vst [vmem:[#allocation1] sm:$0xff] %v5085_v42  ;;  %v6843_v27 = vadd.f32 %v4109_v19, %v6659_v18  ;;  %v5092_v18 = vld [vmem:[%s5218_s21 + $0x5c] sm:$0x3]  ;;  %v2687_v42 = vadd.f32 %v2671_v39, %v1864_v30  ;;  %v6872_v19 = vadd.f32 %v3306_v54, %v2941_v63 }
 0x406   : > { %v6834_v29 = vld [vmem:[#allocation1 + $0x20] ss:$4 sm:$0xff]  ;;  %v6836_v40 = vld [vmem:[#allocation1 + $0x21] ss:$4 sm:$0xff]  ;;  %7079 = vst [vmem:[#allocation4_spill] sm:$0xff] %v6843_v27 }
 0x407   : > { %4247 = vst [vmem:[#allocation1 + $0x20] sm:$0xff] %v5088_v32  ;;  %v2929_v32 = vpop.f32.mrf.mxu1 }
 0x408   : > { %v2945_v53 = vadd.f32 %v2929_v32, %v2687_v42 }
 0x40b   : > { %v6850_v26 = vld [vmem:[#allocation1 + $0x1] ss:$4 sm:$0xff]  ;;  %v6852_v49 = vld [vmem:[#allocation1 + $0x2] ss:$4 sm:$0xff]  ;;  %v6854_v34 = vld [vmem:[#allocation1 + $0x3] ss:$4 sm:$0xff]  ;;  %v4111_v16 = vpop.f32.mrf.mxu3 }
 0x40c   : > { %4245 = vst [vmem:[#allocation1] sm:$0xff] %v5087_v51  ;;  %v6875_v51 = vadd.f32 %v4111_v16, %v6690_v31 }
 0x40e   : > { %v6856_v48 = vld [vmem:[#allocation1 + $0x20] ss:$4 sm:$0xff]  ;;  %v6858_v55 = vld [vmem:[#allocation1 + $0x21] ss:$4 sm:$0xff]  ;;  %7082 = vst [vmem:[#allocation7_spill] sm:$0xff] %v6875_v51 }
 0x40f   : > { %4256 = vst [vmem:[#allocation1 + $0x20] sm:$0xff] %v5090_v4  ;;  %v5091_v4 = vld [vmem:[%s5218_s21 + $0x58] sm:$0xe]  ;;  %v2931_v30 = vpop.f32.mrf.mxu1 }
 0x413   : > { %v6862_v5 = vld [vmem:[#allocation1 + $0x1] ss:$4 sm:$0xff]  ;;  %v6864_v0 = vld [vmem:[#allocation1 + $0x2] ss:$4 sm:$0xff]  ;;  %v6866_v25 = vld [vmem:[#allocation1 + $0x3] ss:$4 sm:$0xff]  ;;  %v4114_v42 = vpop.f32.mrf.mxu3 }
 0x414   : > { %4254 = vst [vmem:[#allocation1] sm:$0xff] %v5089_v6  ;;  %v6887_v63 = vadd.f32 %v4114_v42, %v6709_v7 }
 0x416   : > { %v6868_v9 = vld [vmem:[#allocation1 + $0x20] ss:$4 sm:$0xff]  ;;  %v6870_v37 = vld [vmem:[#allocation1 + $0x21] ss:$4 sm:$0xff] }
 0x417   : > { %7080 = vst [vmem:[#allocation5_spill] sm:$0xff] %v6868_v9 }
 0x418   : > { %7081 = vst [vmem:[#allocation6_spill] sm:$0xff] %v6870_v37  ;;  %v2673_v37 = vpop.f32.mrf.mxu0 }
 0x419   : > { %4265 = vst [vmem:[#allocation1 + $0x20] sm:$0xff] %v5092_v18  ;;  %v3308_v18 = vpop.f32.mrf.mxu2 }
 0x41a   : > { %v6884_v39 = vadd.f32 %v3308_v18, %v2942_v13 }
 0x41b   : > { %v6878_v27 = vld [vmem:[#allocation1 + $0x1] ss:$4 sm:$0xff]  ;;  %v6880_v6 = vld [vmem:[#allocation1 + $0x2] ss:$4 sm:$0xff]  ;;  %v6882_v9 = vld [vmem:[#allocation1 + $0x3] ss:$4 sm:$0xff]  ;;  %v4116_v37 = vpop.f32.mrf.mxu3 }
 0x41c   : > { %4263 = vst [vmem:[#allocation1] sm:$0xff] %v5091_v4  ;;  %v6906_v4 = vadd.f32 %v4116_v37, %v6830_v46 }
 0x420   : > { %v6889_v32 = vld [vmem:[#allocation1 + $0x20] ss:$4 sm:$0xff]  ;;  %v6891_v31 = vld [vmem:[#allocation1 + $0x21] ss:$4 sm:$0xff] }
 0x421   : > { %v3311_v13 = vpop.f32.mrf.mxu2 }
 0x422   : > { %v3330_v7 = vadd.f32 %v3311_v13, %v6817_v61 }
 0x423   : > { %v6893_v54 = vld [vmem:[#allocation1 + $0x2] ss:$4 sm:$0xff]  ;;  %v6895_v16 = vld [vmem:[#allocation1 + $0x3] ss:$4 sm:$0xff]  ;;  %v6897_v51 = vld [vmem:[#allocation1 + $0x1] ss:$4 sm:$0xff] }
 0x424   : > { %4274 = vst [vmem:[#allocation1] ss:$9 sm:$0xff] %v6742_v47 }
 0x425   : > { %4276 = vst [vmem:[#allocation1 + $0x1] ss:$9 sm:$0xff] %v6744_v59 }
 0x426   : > { %4278 = vst [vmem:[#allocation1 + $0x2] ss:$9 sm:$0xff] %v6746_v23  ;;  %v4119_v23 = vpop.f32.mrf.mxu3 }
 0x427   : > { %4280 = vst [vmem:[#allocation1 + $0x3] ss:$9 sm:$0xff] %v6736_v41  ;;  %v6913_v41 = vadd.f32 %v4119_v23, %v6811_v33 }
 0x428   : > { %4282 = vst [vmem:[#allocation1 + $0x4] ss:$9 sm:$0xff] %v6738_v52 }
 0x429   : > { %4284 = vst [vmem:[#allocation1 + $0x5] ss:$9 sm:$0xff] %v6755_v43  ;;  %v3313_v47 = vpop.f32.mrf.mxu2 }
 0x42a   : > { %4286 = vst [vmem:[#allocation1 + $0x6] ss:$9 sm:$0xff] %v6757_v57  ;;  %v3331_v59 = vadd.f32 %v3313_v47, %v6819_v3 }
 0x42b   : > { %4288 = vst [vmem:[#allocation1 + $0x7] ss:$9 sm:$0xff] %v6759_v22 }
 0x42e   : > { %v4121_v57 = vpop.f32.mrf.mxu3 }
 0x42f   : > { %v6923_v22 = vadd.f32 %v4121_v57, %v6814_v60 }
 0x431   : > { %v3316_v52 = vpop.f32.mrf.mxu2 }
 0x432   : > { %v4289_v61 = vld [vmem:[#allocation1] sm:$0xff]  ;;  %v3332_v43 = vadd.f32 %v3316_v52, %v2945_v53 }
 0x433   : > { %5099 = vmatmul.msk.bf16.vlgmr.msra.gmra.mxu0 %vm1035_vm3, %v4289_v61  ;;  %4290 = vst [vmem:[#allocation1] ss:$9 sm:$0xff] %v6748_v56 }
 0x434   : > { %4291 = vst [vmem:[#allocation1 + $0x1] ss:$9 sm:$0xff] %v6750_v15 }
 0x435   : > { %4292 = vst [vmem:[#allocation1 + $0x2] ss:$9 sm:$0xff] %v6769_v11 }
 0x436   : > { %4293 = vst [vmem:[#allocation1 + $0x3] ss:$9 sm:$0xff] %v6771_v2  ;;  %v4124_v15 = vpop.f32.mrf.mxu3 }
 0x437   : > { %4294 = vst [vmem:[#allocation1 + $0x4] ss:$9 sm:$0xff] %v6773_v24  ;;  %v6928_v11 = vadd.f32 %v4124_v15, %v6839_v35  ;;  %v6988_v35 = vld [vmem:[%s7073_s2] ss:$0 sm:$0xff] }
 0x438   : > { %4295 = vst [vmem:[#allocation1 + $0x5] ss:$9 sm:$0xff] %v6761_v44 }
 0x439   : > { %4296 = vst [vmem:[#allocation1 + $0x6] ss:$9 sm:$0xff] %v6763_v12  ;;  %v3318_v56 = vpop.f32.mrf.mxu2 }
 0x43a   : > { %4297 = vst [vmem:[#allocation1 + $0x7] ss:$9 sm:$0xff] %v6784_v28 }
 0x43e   : > { %v4126_v44 = vpop.f32.mrf.mxu3 }
 0x43f   : > { %v6939_v12 = vadd.f32 %v4126_v44, %v6847_v58  ;;  %v7087_v58 = vld [vmem:[#allocation4_spill] sm:$0xff] }
 0x441   : > { %v4298_v2 = vld [vmem:[#allocation1] sm:$0xff] }
 0x442   : > { %4299 = vst [vmem:[#allocation1] ss:$9 sm:$0xff] %v6786_v21 }
 0x443   : > { %5100 = vmatmul.msk.bf16.gmra.mxu0 %vm1035_vm3, %v4298_v2  ;;  %4300 = vst [vmem:[#allocation1 + $0x1] ss:$9 sm:$0xff] %v6788_v38 }
 0x444   : > { %4301 = vst [vmem:[#allocation1 + $0x2] ss:$9 sm:$0xff] %v6775_v45  ;;  %v7083_v45 = vld [vmem:[#allocation2_spill] sm:$0xff] }
 0x445   : > { %4302 = vst [vmem:[#allocation1 + $0x3] ss:$9 sm:$0xff] %v6777_v50  ;;  %v7084_v50 = vld [vmem:[#allocation3_spill] sm:$0xff] }
 0x446   : > { %4303 = vst [vmem:[#allocation1 + $0x4] ss:$9 sm:$0xff] %v6798_v1  ;;  %v4129_v24 = vpop.f32.mrf.mxu3 }
 0x447   : > { %4304 = vst [vmem:[#allocation1 + $0x5] ss:$9 sm:$0xff] %v6800_v20  ;;  %v6943_v21 = vadd.f32 %v4129_v24, %v6872_v19 }
 0x448   : > { %4305 = vst [vmem:[#allocation1 + $0x6] ss:$9 sm:$0xff] %v6802_v8 }
 0x449   : > { %4306 = vst [vmem:[#allocation1 + $0x7] ss:$9 sm:$0xff] %v6790_v14 }
 0x44e   : > { %v4131_v38 = vpop.f32.mrf.mxu3 }
 0x44f   : > { %v6955_v14 = vadd.f32 %v4131_v38, %v6884_v39 }
 0x450   : > { %v4307_v28 = vld [vmem:[#allocation1] sm:$0xff] }
 0x451   : > { %4308 = vst [vmem:[#allocation1] ss:$9 sm:$0xff] %v6792_v17 }
 0x452   : > { %4309 = vst [vmem:[#allocation1 + $0x1] ss:$9 sm:$0xff] %v6823_v62 }
 0x453   : > { %5101 = vmatmul.msk.bf16.gmra.mxu0 %vm1035_vm3, %v4307_v28  ;;  %4310 = vst [vmem:[#allocation1 + $0x2] ss:$9 sm:$0xff] %v6825_v36  ;;  %v7085_v36 = vld [vmem:[#allocation5_spill] sm:$0xff] }
 0x454   : > { %4311 = vst [vmem:[#allocation1 + $0x3] ss:$9 sm:$0xff] %v6827_v10  ;;  %v7086_v10 = vld [vmem:[#allocation6_spill] sm:$0xff] }
 0x455   : > { %4312 = vst [vmem:[#allocation1 + $0x4] ss:$9 sm:$0xff] %v7083_v45 }
 0x456   : > { %4313 = vst [vmem:[#allocation1 + $0x5] ss:$9 sm:$0xff] %v7084_v50  ;;  %v4134_v1 = vpop.f32.mrf.mxu3 }
 0x457   : > { %4314 = vst [vmem:[#allocation1 + $0x6] ss:$9 sm:$0xff] %v6850_v26  ;;  %v6958_v20 = vadd.f32 %v4134_v1, %v3330_v7 }
 0x458   : > { %4315 = vst [vmem:[#allocation1 + $0x7] ss:$9 sm:$0xff] %v6852_v49 }
 0x45e   : > { %v4136_v8 = vpop.f32.mrf.mxu3 }
 0x45f   : > { %v4316_v17 = vld [vmem:[#allocation1] sm:$0xff]  ;;  %v6968_v3 = vadd.f32 %v4136_v8, %v3331_v59 }
 0x460   : > { %4317 = vst [vmem:[#allocation1] ss:$9 sm:$0xff] %v6854_v34 }
 0x461   : > { %4318 = vst [vmem:[#allocation1 + $0x1] ss:$9 sm:$0xff] %v6834_v29 }
 0x462   : > { %4319 = vst [vmem:[#allocation1 + $0x2] ss:$9 sm:$0xff] %v6836_v40 }
 0x463   : > { %5102 = vmatmul.msk.bf16.gmra.mxu0 %vm1035_vm3, %v4316_v17  ;;  %4320 = vst [vmem:[#allocation1 + $0x3] ss:$9 sm:$0xff] %v6862_v5 }
 0x464   : > { %4321 = vst [vmem:[#allocation1 + $0x4] ss:$9 sm:$0xff] %v6864_v0  ;;  %v7088_v0 = vld [vmem:[#allocation7_spill] sm:$0xff] }
 0x465   : > { %4322 = vst [vmem:[#allocation1 + $0x5] ss:$9 sm:$0xff] %v6866_v25 }
 0x466   : > { %4323 = vst [vmem:[#allocation1 + $0x6] ss:$9 sm:$0xff] %v6856_v48  ;;  %v4139_v60 = vpop.f32.mrf.mxu3 }
 0x467   : > { %4324 = vst [vmem:[#allocation1 + $0x7] ss:$9 sm:$0xff] %v6858_v55  ;;  %v6972_v62 = vadd.f32 %v4139_v60, %v3332_v43 }
 0x46e   : > { %v4325_v33 = vld [vmem:[#allocation1] sm:$0xff]  ;;  %v4141_v46 = vpop.f32.mrf.mxu3 }
 0x46f   : > { %4326 = vst [vmem:[#allocation1] ss:$9 sm:$0xff] %v6878_v27 }
 0x470   : > { %4327 = vst [vmem:[#allocation1 + $0x1] ss:$9 sm:$0xff] %v6880_v6 }
 0x471   : > { %4328 = vst [vmem:[#allocation1 + $0x2] ss:$9 sm:$0xff] %v6882_v9 }
 0x472   : > { %4329 = vst [vmem:[#allocation1 + $0x3] ss:$9 sm:$0xff] %v7085_v36 }
 0x473   : > { %5103 = vmatmul.msk.bf16.gmra.mxu0 %vm1035_vm3, %v4325_v33  ;;  %4330 = vst [vmem:[#allocation1 + $0x4] ss:$9 sm:$0xff] %v7086_v10 }
 0x474   : > { %4331 = vst [vmem:[#allocation1 + $0x5] ss:$9 sm:$0xff] %v6897_v51 }
 0x475   : > { %4332 = vst [vmem:[#allocation1 + $0x6] ss:$9 sm:$0xff] %v6893_v54 }
 0x476   : > { %4333 = vst [vmem:[#allocation1 + $0x7] ss:$9 sm:$0xff] %v6895_v16 }
 0x47d   : > { %v4334_v29 = vld [vmem:[#allocation1] sm:$0xff] }
 0x47e   : > { %4335 = vst [vmem:[#allocation1] ss:$9 sm:$0xff] %v6889_v32 }
 0x47f   : > { %4336 = vst [vmem:[#allocation1 + $0x1] ss:$9 sm:$0xff] %v6891_v31 }
 0x483   : > { %5104 = vmatmul.msk.bf16.gmra.mxu0 %vm1035_vm3, %v4334_v29 }
 0x486   : > { %v4337_v40 = vld [vmem:[#allocation1] sm:$0xff] }
 0x493   : > { %5105 = vmatmul.msk.bf16.gmra.mxu0 %vm1035_vm3, %v4337_v40 }
 0x4b0   : > { %v4367_v27 = vpop.f32.mrf.mxu0 }
 0x4b1   : > { %v4401_v26 = vadd.f32 %v4367_v27, %v7087_v58 }
 0x4b3   : > { %v4418_v49 = vadd.f32 %v6988_v35, %v4401_v26 }
 0x4b5   : > { %v4444_v34 = vrot.slane %v4418_v49, 2  ;;  %v4445_v48 = vrot.slane %v4418_v49, 4  ;;  %v4446_v55 = vrot.slane %v4418_v49, 6  ;;  %4481 = vst [vmem:[#allocation1] ss:$4 sm:$0xff] %v4418_v49 }
 0x4b7   : > { %4483 = vst [vmem:[#allocation1 + $0x1] ss:$4 sm:$0xff] %v4444_v34 }
 0x4b8   : > { %4485 = vst [vmem:[#allocation1 + $0x2] ss:$4 sm:$0xff] %v4445_v48  ;;  %v4369_v5 = vpop.f32.mrf.mxu0 }
 0x4b9   : > { %4487 = vst [vmem:[#allocation1 + $0x3] ss:$4 sm:$0xff] %v4446_v55  ;;  %v4402_v25 = vadd.f32 %v4369_v5, %v7088_v0 }
 0x4bb   : > { %v4419_v9 = vadd.f32 %v6988_v35, %v4402_v25 }
 0x4bd   : > { %v4447_v53 = vrot.slane %v4419_v9, 2  ;;  %4489 = vst [vmem:[#allocation1 + $0x20] ss:$4 sm:$0xff] %v4419_v9  ;;  %v4448_v19 = vrot.slane %v4419_v9, 4  ;;  %v4449_v51 = vrot.slane %v4419_v9, 6 }
 0x4c0   : > { %v4490_v6 = vld.sshfl [vmem:[#allocation1] sm:$0xff pattern:$0x73625140]  ;;  %v4372_v18 = vpop.f32.mrf.mxu0 }
 0x4c1   : > { %4492 = vst [vmem:[#allocation1] ss:$4 sm:$0xff] %v4447_v53  ;;  %v4403_v30 = vadd.f32 %v4372_v18, %v6887_v63  ;;  %v4575_v39 = vpack.c.bf16 %v4490_v6, %v4490_v6 }
 0x4c2   : > { %4493 = vst [vmem:[#allocation1 + $0x1] ss:$4 sm:$0xff] %v4448_v19 }
 0x4c3   : > { %4494 = vst [vmem:[#allocation1 + $0x2] ss:$4 sm:$0xff] %v4449_v51  ;;  %v4420_v42 = vadd.f32 %v6988_v35, %v4403_v30 }
 0x4c4   : > { %v4491_v32 = vld.sshfl [vmem:[#allocation1 + $0x20] sm:$0xff pattern:$0x73625140]  ;;  %4596 = vst.msk [vmem:[%s6999_s20] sm:$0xf] %vm4595_vm4, %v4575_v39 }
 0x4c5   : > { %v4450_v31 = vrot.slane %v4420_v42, 2  ;;  %4495 = vst [vmem:[#allocation1 + $0x3] ss:$4 sm:$0xff] %v4420_v42  ;;  %v4576_v54 = vpack.c.bf16 %v4491_v32, %v4491_v32  ;;  %v4451_v13 = vrot.slane %v4420_v42, 4  ;;  %v4452_v37 = vrot.slane %v4420_v42, 6 }
 0x4c7   : > { %4496 = vst [vmem:[#allocation1 + $0x20] ss:$4 sm:$0xff] %v4450_v31 }
 0x4c8   : > { %v4374_v63 = vpop.f32.mrf.mxu0  ;;  %4598 = vst.msk [vmem:[%s6999_s20 + $0x4] sm:$0x1] %vm4597_vm5, %v4576_v54 }
 0x4c9   : > { %v4404_v16 = vadd.f32 %v4374_v63, %v6906_v4 }
 0x4cb   : > { %v4421_v7 = vadd.f32 %v6988_v35, %v4404_v16 }
 0x4cc   : > { %v4497_v47 = vld.sshfl [vmem:[#allocation1] sm:$0xff pattern:$0x73625140] }
 0x4cd   : > { %4499 = vst [vmem:[#allocation1] ss:$4 sm:$0xff] %v4451_v13  ;;  %v4453_v59 = vrot.slane %v4421_v7, 2  ;;  %v4454_v23 = vrot.slane %v4421_v7, 4  ;;  %v4577_v52 = vpack.c.bf16 %v4497_v47, %v4497_v47  ;;  %v4455_v15 = vrot.slane %v4421_v7, 6 }
 0x4ce   : > { %4500 = vst [vmem:[#allocation1 + $0x1] ss:$4 sm:$0xff] %v4452_v37  ;;  %v4498_v61 = vld.sshfl [vmem:[#allocation1 + $0x20] sm:$0xff pattern:$0x73625140] }
 0x4cf   : > { %4501 = vst [vmem:[#allocation1 + $0x2] ss:$4 sm:$0xff] %v4421_v7  ;;  %v4578_v43 = vpack.c.bf16 %v4498_v61, %v4498_v61 }
 0x4d0   : > { %4502 = vst [vmem:[#allocation1 + $0x3] ss:$4 sm:$0xff] %v4453_v59  ;;  %v4377_v57 = vpop.f32.mrf.mxu0 }
 0x4d1   : > { %v4405_v56 = vadd.f32 %v4377_v57, %v6913_v41  ;;  %4503 = vst [vmem:[#allocation1 + $0x20] ss:$4 sm:$0xff] %v4454_v23 }
 0x4d2   : > { %4599 = vst.msk [vmem:[%s6999_s20 + $0x8] sm:$0xf] %vm4595_vm4, %v4577_v52 }
 0x4d3   : > { %v4422_v4 = vadd.f32 %v6988_v35, %v4405_v56  ;;  %4600 = vst.msk [vmem:[%s6999_s20 + $0xc] sm:$0x1] %vm4597_vm5, %v4578_v43 }
 0x4d5   : > { %v4456_v2 = vrot.slane %v4422_v4, 2  ;;  %v4457_v24 = vrot.slane %v4422_v4, 4  ;;  %v4458_v28 = vrot.slane %v4422_v4, 6 }
 0x4d7   : > { %v4504_v44 = vld.sshfl [vmem:[#allocation1] sm:$0xff pattern:$0x73625140] }
 0x4d8   : > { %4506 = vst [vmem:[#allocation1] ss:$4 sm:$0xff] %v4455_v15  ;;  %v4379_v45 = vpop.f32.mrf.mxu0  ;;  %v4505_v50 = vld.sshfl [vmem:[#allocation1 + $0x20] sm:$0xff pattern:$0x73625140]  ;;  %v4579_v38 = vpack.c.bf16 %v4504_v44, %v4504_v44 }
 0x4d9   : > { %4507 = vst [vmem:[#allocation1 + $0x1] ss:$4 sm:$0xff] %v4422_v4  ;;  %v4406_v41 = vadd.f32 %v4379_v45, %v6923_v22  ;;  %v4580_v17 = vpack.c.bf16 %v4505_v50, %v4505_v50 }
 0x4da   : > { %4508 = vst [vmem:[#allocation1 + $0x2] ss:$4 sm:$0xff] %v4456_v2 }
 0x4db   : > { %4509 = vst [vmem:[#allocation1 + $0x3] ss:$4 sm:$0xff] %v4457_v24  ;;  %v4423_v1 = vadd.f32 %v6988_v35, %v4406_v41 }
 0x4dc   : > { %4510 = vst [vmem:[#allocation1 + $0x20] ss:$4 sm:$0xff] %v4458_v28 }
 0x4dd   : > { %4601 = vst.msk [vmem:[%s6999_s20 + $0x10] sm:$0xf] %vm4595_vm4, %v4579_v38  ;;  %v4459_v8 = vrot.slane %v4423_v1, 2  ;;  %v4460_v60 = vrot.slane %v4423_v1, 4  ;;  %v4461_v10 = vrot.slane %v4423_v1, 6 }
 0x4de   : > { %4602 = vst.msk [vmem:[%s6999_s20 + $0x14] sm:$0x1] %vm4597_vm5, %v4580_v17 }
 0x4e0   : > { %v4382_v33 = vpop.f32.mrf.mxu0 }
 0x4e1   : > { %v4407_v36 = vadd.f32 %v4382_v33, %v6928_v11 }
 0x4e2   : > { %v4511_v22 = vld.sshfl [vmem:[#allocation1] sm:$0xff pattern:$0x73625140] }
 0x4e3   : > { %4513 = vst [vmem:[#allocation1] ss:$4 sm:$0xff] %v4423_v1  ;;  %v4424_v46 = vadd.f32 %v6988_v35, %v4407_v36  ;;  %v4512_v29 = vld.sshfl [vmem:[#allocation1 + $0x20] sm:$0xff pattern:$0x73625140]  ;;  %v4581_v40 = vpack.c.bf16 %v4511_v22, %v4511_v22 }
 0x4e4   : > { %4514 = vst [vmem:[#allocation1 + $0x1] ss:$4 sm:$0xff] %v4459_v8  ;;  %v4582_v27 = vpack.c.bf16 %v4512_v29, %v4512_v29 }
 0x4e5   : > { %4515 = vst [vmem:[#allocation1 + $0x2] ss:$4 sm:$0xff] %v4460_v60  ;;  %v4462_v11 = vrot.slane %v4424_v46, 2  ;;  %v4463_v49 = vrot.slane %v4424_v46, 4  ;;  %v4464_v48 = vrot.slane %v4424_v46, 6 }
 0x4e6   : > { %4516 = vst [vmem:[#allocation1 + $0x3] ss:$4 sm:$0xff] %v4461_v10 }
 0x4e7   : > { %4517 = vst [vmem:[#allocation1 + $0x20] ss:$4 sm:$0xff] %v4424_v46 }
 0x4e8   : > { %v4384_v58 = vpop.f32.mrf.mxu0  ;;  %4603 = vst.msk [vmem:[%s6999_s20 + $0x18] sm:$0xf] %vm4595_vm4, %v4581_v40 }
 0x4e9   : > { %v4408_v26 = vadd.f32 %v4384_v58, %v6939_v12  ;;  %4604 = vst.msk [vmem:[%s6999_s20 + $0x1c] sm:$0x1] %vm4597_vm5, %v4582_v27 }
 0x4eb   : > { %v4425_v34 = vadd.f32 %v6988_v35, %v4408_v26 }
 0x4ed   : > { %v4518_v55 = vld.sshfl [vmem:[#allocation1] sm:$0xff pattern:$0x73625140]  ;;  %v4465_v5 = vrot.slane %v4425_v34, 2  ;;  %v4466_v51 = vrot.slane %v4425_v34, 4  ;;  %v4467_v6 = vrot.slane %v4425_v34, 6 }
 0x4ee   : > { %4520 = vst [vmem:[#allocation1] ss:$4 sm:$0xff] %v4462_v11  ;;  %v4519_v0 = vld.sshfl [vmem:[#allocation1 + $0x20] sm:$0xff pattern:$0x73625140]  ;;  %v4583_v25 = vpack.c.bf16 %v4518_v55, %v4518_v55 }
 0x4ef   : > { %4521 = vst [vmem:[#allocation1 + $0x1] ss:$4 sm:$0xff] %v4463_v49  ;;  %v4584_v53 = vpack.c.bf16 %v4519_v0, %v4519_v0 }
 0x4f0   : > { %4522 = vst [vmem:[#allocation1 + $0x2] ss:$4 sm:$0xff] %v4464_v48  ;;  %v4387_v9 = vpop.f32.mrf.mxu0 }
 0x4f1   : > { %4523 = vst [vmem:[#allocation1 + $0x3] ss:$4 sm:$0xff] %v4425_v34  ;;  %v4409_v12 = vadd.f32 %v4387_v9, %v6943_v21 }
 0x4f2   : > { %4524 = vst [vmem:[#allocation1 + $0x20] ss:$4 sm:$0xff] %v4465_v5 }
 0x4f3   : > { %4605 = vst.msk [vmem:[%s6999_s20 + $0x20] sm:$0xf] %vm4595_vm4, %v4583_v25  ;;  %v4426_v19 = vadd.f32 %v6988_v35, %v4409_v12 }
 0x4f4   : > { %4606 = vst.msk [vmem:[%s6999_s20 + $0x24] sm:$0x1] %vm4597_vm5, %v4584_v53 }
 0x4f5   : > { %v4468_v30 = vrot.slane %v4426_v19, 2  ;;  %v4469_v42 = vrot.slane %v4426_v19, 4  ;;  %v4470_v13 = vrot.slane %v4426_v19, 6 }
 0x4f8   : > { %v4525_v18 = vld.sshfl [vmem:[#allocation1] sm:$0xff pattern:$0x73625140]  ;;  %v4389_v39 = vpop.f32.mrf.mxu0 }
 0x4f9   : > { %4527 = vst [vmem:[#allocation1] ss:$4 sm:$0xff] %v4466_v51  ;;  %v4526_v32 = vld.sshfl [vmem:[#allocation1 + $0x20] sm:$0xff pattern:$0x73625140]  ;;  %v4410_v21 = vadd.f32 %v4389_v39, %v6955_v14  ;;  %v4585_v31 = vpack.c.bf16 %v4525_v18, %v4525_v18 }
 0x4fa   : > { %4528 = vst [vmem:[#allocation1 + $0x1] ss:$4 sm:$0xff] %v4467_v6  ;;  %v4586_v54 = vpack.c.bf16 %v4526_v32, %v4526_v32 }
 0x4fb   : > { %4529 = vst [vmem:[#allocation1 + $0x2] ss:$4 sm:$0xff] %v4426_v19  ;;  %v4427_v63 = vadd.f32 %v6988_v35, %v4410_v21 }
 0x4fc   : > { %4530 = vst [vmem:[#allocation1 + $0x3] ss:$4 sm:$0xff] %v4468_v30 }
 0x4fd   : > { %4531 = vst [vmem:[#allocation1 + $0x20] ss:$4 sm:$0xff] %v4469_v42  ;;  %v4471_v7 = vrot.slane %v4427_v63, 2  ;;  %v4472_v47 = vrot.slane %v4427_v63, 4  ;;  %v4473_v14 = vrot.slane %v4427_v63, 6 }
 0x4fe   : > { %4607 = vst.msk [vmem:[%s6999_s20 + $0x28] sm:$0xf] %vm4595_vm4, %v4585_v31 }
 0x4ff   : > { %4608 = vst.msk [vmem:[%s6999_s20 + $0x2c] sm:$0x1] %vm4597_vm5, %v4586_v54 }
 0x500   : > { %v4392_v16 = vpop.f32.mrf.mxu0 }
 0x501   : > { %v4411_v59 = vadd.f32 %v4392_v16, %v6958_v20 }
 0x503   : > { %v4532_v37 = vld.sshfl [vmem:[#allocation1] sm:$0xff pattern:$0x73625140]  ;;  %v4428_v43 = vadd.f32 %v6988_v35, %v4411_v59 }
 0x504   : > { %4534 = vst [vmem:[#allocation1] ss:$4 sm:$0xff] %v4470_v13  ;;  %v4533_v23 = vld.sshfl [vmem:[#allocation1 + $0x20] sm:$0xff pattern:$0x73625140]  ;;  %v4587_v61 = vpack.c.bf16 %v4532_v37, %v4532_v37 }
 0x505   : > { %4535 = vst [vmem:[#allocation1 + $0x1] ss:$4 sm:$0xff] %v4427_v63  ;;  %v4588_v52 = vpack.c.bf16 %v4533_v23, %v4533_v23  ;;  %v4474_v56 = vrot.slane %v4428_v43, 2  ;;  %v4475_v4 = vrot.slane %v4428_v43, 4  ;;  %v4476_v15 = vrot.slane %v4428_v43, 6 }
 0x506   : > { %4536 = vst [vmem:[#allocation1 + $0x2] ss:$4 sm:$0xff] %v4471_v7 }
 0x507   : > { %4537 = vst [vmem:[#allocation1 + $0x3] ss:$4 sm:$0xff] %v4472_v47 }
 0x508   : > { %4538 = vst [vmem:[#allocation1 + $0x20] ss:$4 sm:$0xff] %v4473_v14  ;;  %v4394_v57 = vpop.f32.mrf.mxu0 }
 0x509   : > { %4609 = vst.msk [vmem:[%s6999_s20 + $0x30] sm:$0xf] %vm4595_vm4, %v4587_v61  ;;  %v4412_v20 = vadd.f32 %v4394_v57, %v6968_v3 }
 0x50a   : > { %4610 = vst.msk [vmem:[%s6999_s20 + $0x34] sm:$0x1] %vm4597_vm5, %v4588_v52 }
 0x50b   : > { %v4429_v50 = vadd.f32 %v6988_v35, %v4412_v20 }
 0x50d   : > { %v4477_v3 = vrot.slane %v4429_v50, 2  ;;  %v4478_v38 = vrot.slane %v4429_v50, 4  ;;  %v4479_v33 = vrot.slane %v4429_v50, 6 }
 0x50e   : > { %v4539_v2 = vld.sshfl [vmem:[#allocation1] sm:$0xff pattern:$0x73625140] }
 0x50f   : > { %v4540_v44 = vld.sshfl [vmem:[#allocation1 + $0x20] sm:$0xff pattern:$0x73625140]  ;;  %4541 = vst [vmem:[#allocation1] ss:$4 sm:$0xff] %v4428_v43  ;;  %v4589_v24 = vpack.c.bf16 %v4539_v2, %v4539_v2 }
 0x510   : > { %4542 = vst [vmem:[#allocation1 + $0x1] ss:$4 sm:$0xff] %v4474_v56  ;;  %v4590_v28 = vpack.c.bf16 %v4540_v44, %v4540_v44  ;;  %v4397_v45 = vpop.f32.mrf.mxu0 }
 0x511   : > { %4543 = vst [vmem:[#allocation1 + $0x2] ss:$4 sm:$0xff] %v4475_v4  ;;  %v4413_v41 = vadd.f32 %v4397_v45, %v6972_v62 }
 0x512   : > { %4544 = vst [vmem:[#allocation1 + $0x3] ss:$4 sm:$0xff] %v4476_v15 }
 0x513   : > { %4611 = vst.msk [vmem:[%s6999_s20 + $0x38] sm:$0xf] %vm4595_vm4, %v4589_v24  ;;  %v4430_v17 = vadd.f32 %v6988_v35, %v4413_v41 }
 0x514   : > { %4612 = vst.msk [vmem:[%s6999_s20 + $0x3c] sm:$0x1] %vm4597_vm5, %v4590_v28 }
 0x515   : > { %4545 = vst [vmem:[#allocation1 + $0x20] ss:$4 sm:$0xff] %v4429_v50  ;;  %v4480_v10 = vrot.slane %v4430_v17, 2 }
 0x518   : > { %v4399_v1 = vpop.f32.mrf.mxu0 }
 0x519   : > { %v4546_v8 = vld.sshfl [vmem:[#allocation1] sm:$0xff pattern:$0x73625140] }
 0x51a   : > { %v4591_v60 = vpack.c.bf16 %v4546_v8, %v4546_v8  ;;  %4548 = vst [vmem:[#allocation1] ss:$4 sm:$0xff] %v4477_v3 }
 0x51b   : > { %4549 = vst [vmem:[#allocation1 + $0x1] ss:$4 sm:$0xff] %v4478_v38 }
 0x51c   : > { %4613 = vst.msk [vmem:[%s6999_s20 + $0x40] sm:$0xf] %vm4595_vm4, %v4591_v60  ;;  %v4547_v36 = vld.sshfl [vmem:[#allocation1 + $0x20] sm:$0xff pattern:$0x73625140] }
 0x51d   : > { %4550 = vst [vmem:[#allocation1 + $0x2] ss:$4 sm:$0xff] %v4479_v33  ;;  %v4592_v62 = vpack.c.bf16 %v4547_v36, %v4547_v36 }
 0x51e   : > { %4551 = vst [vmem:[#allocation1 + $0x3] ss:$4 sm:$0xff] %v4430_v17 }
 0x51f   : > { %4614 = vst.msk [vmem:[%s6999_s20 + $0x44] sm:$0x1] %vm4597_vm5, %v4592_v62 }
 0x520   : > { %4552 = vst [vmem:[#allocation1 + $0x20] ss:$4 sm:$0xff] %v4480_v10 }
 0x525   : > { %v4553_v22 = vld.sshfl [vmem:[#allocation1] sm:$0xff pattern:$0x73625140] }
 0x526   : > { %v4593_v35 = vpack.c.bf16 %v4553_v22, %v4553_v22 }
 0x527   : > { %v4554_v46 = vld.sshfl [vmem:[#allocation1 + $0x20] sm:$0xff pattern:$0x73625140] }
 0x528   : > { %v4594_v29 = vpack.c.bf16 %v4554_v46, %v4554_v46  ;;  %4615 = vst.msk [vmem:[%s6999_s20 + $0x48] sm:$0xf] %vm4595_vm4, %v4593_v35 }
 0x52a   : > { %4616 = vst.msk [vmem:[%s6999_s20 + $0x4c] sm:$0x1] %vm4597_vm5, %v4594_v29 }
 0x52b PF: > { %s13_s14 = sadd.s32 1, %s5169_s14   ;;  %s7089_s12 = smov %s5165_s13 }
 0x52c   : > { %p10_p5 = scmp.ge.s32.totalorder %s13_s14, 4   ;;  %s7090_s13 = smov %s7092_s15 }
 0x52e   :  { %12 = sbr.rel (!%p10_p5) target bundleno = 2 (0x2), region = 155 }

</bundles_post_ra>
